<compile_context>
chip_gen: v7x
topology: tpu7x:2x2x1
jax: 0.10.0
libtpu: 0.0.40
codegen_flags: <defaults>
</compile_context>

<pallas_src>
import functools

import jax
import jax.numpy as jnp
from jax.experimental import pallas as pl
from jax.experimental.pallas import tpu as pltpu

KSIZE = 7          # spatial attention kernel size
PAD = KSIZE // 2   # "same" padding


def _sigmoid(v):
    # exact sigmoid: operands are (Bt, C) and (Bt, HWp) — tiny vs. the slab.
    v = jnp.clip(v, -30.0, 30.0)
    return pl.reciprocal(1.0 + jnp.exp(-v))


def cbam_kernel(x_ref, w1t_ref, w2t_ref, wmask_ref, *rest,
                width, true_hw, padded, use_mxu_avg):
    # x_ref:     (Bt, C, HWp)       lane-dense slab (io dtype)
    # w1t_ref:   (C, Cr)            ChannelAttention.fc1 weight, transposed
    # w2t_ref:   (Cr, C)            ChannelAttention.fc2 weight, transposed
    # wmask_ref: (K*K, 2*HWp)       conv-weight * row-mask * col-mask, avg half then max half
    # optional:  sel_ref (Bt, Bt*C) block-diag 1/C selector (MXU channel-mean)
    # optional:  nb_ref  (1, HWp)   0 in valid lanes, -1e30 in pad lanes (padded maps only)
    idx = 0
    sel_ref = None
    nb_ref = None
    if use_mxu_avg:
        sel_ref = rest[idx]; idx += 1
    if padded:
        nb_ref = rest[idx]; idx += 1
    o_ref = rest[idx]

    Bt, C, HWp = x_ref.shape
    W = width

    x = x_ref[...].astype(jnp.float32)                        # (Bt, C, HWp)

    # ---------------- Channel attention ----------------
    # pad lanes of x are zero -> plain sum / true_hw is the exact mean
    avg_c = jnp.sum(x, axis=-1) * (1.0 / true_hw)              # (Bt, C)
    if padded:
        max_c = jnp.max(x + nb_ref[...], axis=-1)              # bias pad lanes to -1e30
    else:
        max_c = jnp.max(x, axis=-1)                            # (Bt, C)
    pooled = jnp.concatenate([avg_c, max_c], axis=0)           # (2*Bt, C)

    hid = jnp.maximum(
        jnp.dot(pooled, w1t_ref[...], preferred_element_type=jnp.float32), 0.0)
    mlp = jnp.dot(hid, w2t_ref[...], preferred_element_type=jnp.float32)  # (2*Bt, C)
    ca = _sigmoid(mlp[:Bt, :] + mlp[Bt:, :])                   # (Bt, C)

    y = x * ca[:, :, None]                                     # (Bt, C, HWp)

    # ---------------- Spatial attention ----------------
    if use_mxu_avg:
        # channel-direction mean on the MXU via a block-diagonal selector matmul
        avg_s = jnp.dot(sel_ref[...], y.reshape(Bt * C, HWp),
                        preferred_element_type=jnp.float32)    # (Bt, HWp)
    else:
        avg_s = jnp.mean(y, axis=1)
    max_s = jnp.max(y, axis=1)                                 # (Bt, HWp)

    # TODO(synk): BasicConv is not defined in the provided source; implemented as a
    # plain 7x7 conv (padding=3, bias=False) without BN/activation (canonical CBAM).
    #
    # Lane-stacked flat-layout conv: avg map in lanes [0, HWp), max map in
    # [HWp, 2*HWp).  Each tap = one roll + one FMA against a precomputed weighted
    # mask; wrapped / out-of-image values are killed by the mask zeros.
    s = jnp.concatenate([avg_s, max_s], axis=-1)               # (Bt, 2*HWp)
    acc = jnp.zeros_like(s)
    L2 = 2 * HWp
    for kh in range(KSIZE):
        for kw in range(KSIZE):
            delta = (kh - PAD) * W + (kw - PAD)
            shift = (-delta) % L2
            t = pltpu.roll(s, shift, 1) if shift else s
            kk = kh * KSIZE + kw
            acc = acc + t * wmask_ref[kk:kk + 1, :]            # (1, 2*HWp) row, lazy load
    conv = acc[:, :HWp] + acc[:, HWp:]                         # (Bt, HWp), 128-aligned slices

    sa = _sigmoid(conv)                                        # (Bt, HWp)
    o_ref[...] = (y * sa[:, None, :]).astype(o_ref.dtype)      # single lane-dense store


def _vmem_capacity_bytes():
    """Physical VMEM per core; conservative (v7x) fallback if query fails."""
    try:
        info = pltpu.get_tpu_info()
        for name in ("vmem_capacity_bytes", "vmem_size_bytes", "vmem_bytes"):
            v = getattr(info, name, None)
            if v:
                return int(v)
    except Exception:
        pass
    return 64 * 1024 * 1024


def _pick_block_batch(B, C, HWp, io_itemsize, budget_bytes):
    """Batch elements per grid step under a VMEM budget, vreg cap and pipeline depth."""
    # per element: double-buffered in + out blocks (io dtype) + ~3 f32 slab copies
    per_b = C * HWp * (4 * io_itemsize + 12)
    fixed = (2 * KSIZE * KSIZE + 4) * HWp * 4
    cap_vmem = max(1, (budget_bytes - fixed) // max(per_b, 1))
    # conv live set: stacked src + rolled temp + acc, each (Bt, 2*HWp) f32
    cap_conv = max(1, (20 * 8 * 128) // (2 * HWp))
    # >= ~4 pipelined grid steps per TensorCore (>= 8 total covers v7x's 2 TCs)
    cap_pipe = max(1, B // 8)
    cap = max(1, min(B, cap_vmem, cap_conv, cap_pipe))
    for bt in range(cap, 0, -1):
        if B % bt == 0:
            return bt
    return 1


def cbam_pallas(x, w_fc1, w_fc2, w_sa, *, io_dtype=None):
    """x: (B, C, H, W). w_fc1: (Cr, C). w_fc2: (C, Cr). w_sa: (1, 2, K, K).

    io_dtype: dtype of the HBM-resident slab (compute is always f32 inside).
    Pass jnp.bfloat16 to halve HBM traffic (fast path on v5e/v6e/v7x); the output
    is returned in that dtype.
    """
    B, C, H, W = x.shape
    assert H >= 4 and W >= 4, "flat-layout 7x7 conv assumes H, W > kernel half-width"
    HW = H * W
    HWp = ((HW + 127) // 128) * 128          # lane-dense padded spatial length
    padded = HWp != HW
    Cr = w_fc1.shape[0]
    use_mxu_avg = (C % 8 == 0)               # free reshape (Bt,C,HWp)->(Bt*C,HWp)

    io_dtype = jnp.dtype(x.dtype) if io_dtype is None else jnp.dtype(io_dtype)
    io_itemsize = io_dtype.itemsize

    # generation-aware VMEM budgeting (v7x: 64 MiB physical; v5e/v6e: 128 MiB)
    vmem_cap = _vmem_capacity_bytes()
    if vmem_cap <= 64 * 1024 * 1024:
        budget, limit_max = 24 * 1024 * 1024, 44 * 1024 * 1024
    else:
        budget, limit_max = 56 * 1024 * 1024, 96 * 1024 * 1024

    Bt = _pick_block_batch(B, C, HWp, io_itemsize, budget)
    grid = (B // Bt,)

    # lane-dense padded slab (pad lanes are zero)
    x_flat = x.astype(io_dtype).reshape(B, C, HW)
    if padded:
        x_flat = jnp.pad(x_flat, ((0, 0), (0, 0), (0, HWp - HW)))

    w1t = jnp.asarray(w_fc1, jnp.float32).T                    # (C, Cr)
    w2t = jnp.asarray(w_fc2, jnp.float32).T                    # (Cr, C)

    # One weighted mask per tap: conv weight * row validity * col validity, with
    # the avg branch in lanes [0, HWp) and the max branch in lanes [HWp, 2*HWp).
    p = jnp.arange(HWp)
    valid = p < HW
    pc = jnp.minimum(p, HW - 1)
    prow, pcol = pc // W, pc % W
    offs = jnp.arange(KSIZE) - PAD
    rmask = (valid[None, :] & ((prow[None, :] + offs[:, None]) >= 0)
             & ((prow[None, :] + offs[:, None]) < H)).astype(jnp.float32)   # (K, HWp)
    cmask = (valid[None, :] & ((pcol[None, :] + offs[:, None]) >= 0)
             & ((pcol[None, :] + offs[:, None]) < W)).astype(jnp.float32)   # (K, HWp)
    geo = rmask[:, None, :] * cmask[None, :, :]                              # (K, K, HWp)
    w = jnp.asarray(w_sa, jnp.float32).reshape(2, KSIZE, KSIZE)              # (avg, max)
    wmask = jnp.concatenate(
        [w[0][:, :, None] * geo, w[1][:, :, None] * geo], axis=-1
    ).reshape(KSIZE * KSIZE, 2 * HWp)                                        # (49, 2*HWp)

    operands = [x_flat, w1t, w2t, wmask]
    in_specs = [
        pl.BlockSpec((Bt, C, HWp), lambda b: (b, 0, 0)),
        pl.BlockSpec((C, Cr), lambda b: (0, 0)),
        pl.BlockSpec((Cr, C), lambda b: (0, 0)),
        pl.BlockSpec((KSIZE * KSIZE, 2 * HWp), lambda b: (0, 0)),
    ]
    if use_mxu_avg:
        # block-diagonal 1/C selector so avg over channels becomes an MXU matmul
        sel = jnp.kron(jnp.eye(Bt, dtype=jnp.float32),
                       jnp.ones((1, C), jnp.float32)) * (1.0 / C)            # (Bt, Bt*C)
        operands.append(sel)
        in_specs.append(pl.BlockSpec((Bt, Bt * C), lambda b: (0, 0)))
    if padded:
        nb = jnp.where(valid, 0.0, -1e30).astype(jnp.float32)[None, :]       # (1, HWp)
        operands.append(nb)
        in_specs.append(pl.BlockSpec((1, HWp), lambda b: (0, 0)))

    # per-step VMEM (double-buffered io blocks already counted once in per_b)
    per_b = C * HWp * (4 * io_itemsize + 12)
    fixed = ((2 * KSIZE * KSIZE + 4) * HWp + 2 * C * Cr + Bt * Bt * C) * 4
    vmem_limit = int(min(max(Bt * per_b + fixed + (8 << 20), 32 << 20), limit_max))

    out_flat = pl.pallas_call(
        functools.partial(cbam_kernel, width=W, true_hw=HW,
                          padded=padded, use_mxu_avg=use_mxu_avg),
        out_shape=jax.ShapeDtypeStruct((B, C, HWp), io_dtype),
        grid_spec=pltpu.PrefetchScalarGridSpec(
            num_scalar_prefetch=0,
            grid=grid,
            in_specs=in_specs,
            out_specs=pl.BlockSpec((Bt, C, HWp), lambda b: (b, 0, 0)),
        ),
        compiler_params=pltpu.CompilerParams(
            dimension_semantics=("parallel",),
            vmem_limit_bytes=vmem_limit,
        ),
    )(*operands)

    out = out_flat[:, :, :HW] if padded else out_flat
    return out.reshape(B, C, H, W)


def cbam_reference(x, w_fc1, w_fc2, w_sa):
    """Pure-JAX reference mirroring the PyTorch forward."""
    avg = jnp.mean(x, axis=(2, 3))                             # (B, C)
    mx = jnp.max(x, axis=(2, 3))                               # (B, C)

    def mlp(v):
        h = jnp.maximum(v @ w_fc1.T, 0.0)                      # (B, Cr)
        return h @ w_fc2.T                                     # (B, C)

    ca = jax.nn.sigmoid(mlp(avg) + mlp(mx))[:, :, None, None]
    y = ca * x
    avg_s = jnp.mean(y, axis=1, keepdims=True)
    max_s = jnp.max(y, axis=1, keepdims=True)
    s_in = jnp.concatenate([avg_s, max_s], axis=1)             # (B, 2, H, W)
    conv = jax.lax.conv_general_dilated(
        s_in, w_sa, window_strides=(1, 1), padding=[(PAD, PAD), (PAD, PAD)],
        dimension_numbers=("NCHW", "OIHW", "NCHW"))
    sa = jax.nn.sigmoid(conv)
    return sa * y


if __name__ == "__main__":
    B, C, H, W = 2, 16, 16, 16
    ratio = 8
    Cr = C // ratio

    key = jax.random.PRNGKey(0)
    k_x, k_w1, k_w2, k_ws = jax.random.split(key, 4)

    x = jax.random.normal(k_x, (B, C, H, W), dtype=jnp.float32)
    # ChannelAttention.fc1: Conv2d(C, C//ratio, 1, bias=False) -> weight (Cr, C, 1, 1)
    w_fc1 = 0.2 * jax.random.normal(k_w1, (Cr, C), dtype=jnp.float32)
    # ChannelAttention.fc2: Conv2d(C//ratio, C, 1, bias=False) -> weight (C, Cr, 1, 1)
    w_fc2 = 0.2 * jax.random.normal(k_w2, (C, Cr), dtype=jnp.float32)
    # SpatialAttention conv: Conv2d(2, 1, 7, padding=3, bias=False) -> weight (1, 2, 7, 7)
    w_sa = 0.1 * jax.random.normal(k_ws, (1, 2, KSIZE, KSIZE), dtype=jnp.float32)

    out = jax.block_until_ready(cbam_pallas(x, w_fc1, w_fc2, w_sa))
    ref = cbam_reference(x, w_fc1, w_fc2, w_sa)

    assert out.shape == (B, C, H, W) and out.dtype == x.dtype
    max_err = float(jnp.max(jnp.abs(out - ref)))
    assert jnp.allclose(out, ref, atol=1e-3, rtol=1e-3), max_err

    # bf16 I/O fast path (halved HBM traffic); loose tolerance covers bf16 rounding
    out_bf = jax.block_until_ready(
        cbam_pallas(x, w_fc1, w_fc2, w_sa, io_dtype=jnp.bfloat16))
    assert out_bf.dtype == jnp.bfloat16
    assert jnp.allclose(out_bf.astype(jnp.float32), ref, atol=1e-1, rtol=1e-1)

    print("KERNEL_OK")
</pallas_src>

<mosaic_0001>
module attributes {stable_mosaic.version = 11 : i64} {
  func.func @cbam_kernel(%arg0: i32, %arg1: memref<1x16x256xf32, #tpu.memory_space<vmem>>, %arg2: memref<16x2xf32, #tpu.memory_space<vmem>>, %arg3: memref<2x16xf32, #tpu.memory_space<vmem>>, %arg4: memref<49x512xf32, #tpu.memory_space<vmem>>, %arg5: memref<1x16xf32, #tpu.memory_space<vmem>>, %arg6: memref<1x16x256xf32, #tpu.memory_space<vmem>>) attributes {dimension_semantics = [#tpu.dimension_semantics<parallel>], iteration_bounds = array<i64: 2>, scalar_prefetch = 0 : i64, scratch_operands = 0 : i64, tpu.core_type = #tpu.core_type<tc>, window_params = [{transform_indices = @transform_0, window_bounds = array<i64: 1, 16, 256>}, {pipeline_mode = #tpu.pipeline_mode<synchronous>, transform_indices = @transform_1, window_bounds = array<i64: 16, 2>}, {pipeline_mode = #tpu.pipeline_mode<synchronous>, transform_indices = @transform_2, window_bounds = array<i64: 2, 16>}, {pipeline_mode = #tpu.pipeline_mode<synchronous>, transform_indices = @transform_3, window_bounds = array<i64: 49, 512>}, {pipeline_mode = #tpu.pipeline_mode<synchronous>, transform_indices = @transform_4, window_bounds = array<i64: 1, 16>}, {transform_indices = @transform_5, window_bounds = array<i64: 1, 16, 256>}]} {
    %c0 = arith.constant 0 : index
    %c0_0 = arith.constant 0 : index
    %c0_1 = arith.constant 0 : index
    %0 = vector.load %arg1[%c0, %c0_0, %c0_1] : memref<1x16x256xf32, #tpu.memory_space<vmem>>, vector<1x16x256xf32>
    %cst = arith.constant dense<0.000000e+00> : vector<1x16xf32>
    %1 = vector.multi_reduction <add>, %0, %cst [2] : vector<1x16x256xf32> to vector<1x16xf32>
    %cst_2 = arith.constant 3.906250e-03 : f32
    %2 = vector.broadcast %cst_2 : f32 to vector<1x16xf32>
    %3 = arith.mulf %1, %2 : vector<1x16xf32>
    %cst_3 = arith.constant dense<0xFF800000> : vector<1x16xf32>
    %4 = vector.multi_reduction <maximumf>, %0, %cst_3 [2] : vector<1x16x256xf32> to vector<1x16xf32>
    %5 = tpu.concatenate %3, %4 in 0 : vector<1x16xf32>, vector<1x16xf32> -> vector<2x16xf32>
    %c0_4 = arith.constant 0 : index
    %c0_5 = arith.constant 0 : index
    %6 = vector.load %arg2[%c0_4, %c0_5] : memref<16x2xf32, #tpu.memory_space<vmem>>, vector<16x2xf32>
    %cst_6 = arith.constant dense<0.000000e+00> : vector<2x2xf32>
    %7 = tpu.matmul %5, %6, %cst_6 {dimension_numbers = #tpu.dot_dimension_numbers<[1], [0], [0], [1], [0, 0, 1, 1], [], []>} : vector<2x16xf32>, vector<16x2xf32>, vector<2x2xf32> -> vector<2x2xf32>
    %cst_7 = arith.constant 0.000000e+00 : f32
    %8 = vector.broadcast %cst_7 : f32 to vector<2x2xf32>
    %9 = arith.maximumf %7, %8 : vector<2x2xf32>
    %c0_8 = arith.constant 0 : index
    %c0_9 = arith.constant 0 : index
    %10 = vector.load %arg3[%c0_8, %c0_9] : memref<2x16xf32, #tpu.memory_space<vmem>>, vector<2x16xf32>
    %cst_10 = arith.constant dense<0.000000e+00> : vector<2x16xf32>
    %11 = tpu.matmul %9, %10, %cst_10 {dimension_numbers = #tpu.dot_dimension_numbers<[1], [0], [0], [1], [0, 0, 1, 1], [], []>} : vector<2x2xf32>, vector<2x16xf32>, vector<2x16xf32> -> vector<2x16xf32>
    %12 = vector.extract_strided_slice %11 {offsets = [0, 0], sizes = [1, 16], strides = [1, 1]} : vector<2x16xf32> to vector<1x16xf32>
    %13 = vector.extract_strided_slice %11 {offsets = [1, 0], sizes = [1, 16], strides = [1, 1]} : vector<2x16xf32> to vector<1x16xf32>
    %14 = arith.addf %12, %13 : vector<1x16xf32>
    %cst_11 = arith.constant -3.000000e+01 : f32
    %cst_12 = arith.constant 3.000000e+01 : f32
    %15 = vector.broadcast %cst_11 : f32 to vector<1x16xf32>
    %16 = arith.maximumf %15, %14 : vector<1x16xf32>
    %17 = vector.broadcast %cst_12 : f32 to vector<1x16xf32>
    %18 = arith.minimumf %17, %16 : vector<1x16xf32>
    %cst_13 = arith.constant 0.000000e+00 : f32
    %19 = vector.broadcast %cst_13 : f32 to vector<1x16xf32>
    %20 = arith.subf %19, %18 : vector<1x16xf32>
    %21 = math.exp %20 : vector<1x16xf32>
    %cst_14 = arith.constant 1.000000e+00 : f32
    %22 = vector.broadcast %cst_14 : f32 to vector<1x16xf32>
    %23 = arith.addf %22, %21 : vector<1x16xf32>
    %24 = tpu.reciprocal %23 : vector<1x16xf32> -> vector<1x16xf32>
    %25 = vector.shape_cast %24 : vector<1x16xf32> to vector<1x16x1xf32>
    %26 = vector.broadcast %25 : vector<1x16x1xf32> to vector<1x16x256xf32>
    %27 = arith.mulf %0, %26 : vector<1x16x256xf32>
    %c0_15 = arith.constant 0 : index
    %c0_16 = arith.constant 0 : index
    %28 = vector.load %arg5[%c0_15, %c0_16] : memref<1x16xf32, #tpu.memory_space<vmem>>, vector<1x16xf32>
    %29 = vector.shape_cast %27 : vector<1x16x256xf32> to vector<16x256xf32>
    %cst_17 = arith.constant dense<0.000000e+00> : vector<1x256xf32>
    %30 = tpu.matmul %28, %29, %cst_17 {dimension_numbers = #tpu.dot_dimension_numbers<[1], [0], [0], [1], [0, 0, 1, 1], [], []>} : vector<1x16xf32>, vector<16x256xf32>, vector<1x256xf32> -> vector<1x256xf32>
    %cst_18 = arith.constant dense<0xFF800000> : vector<1x256xf32>
    %31 = vector.multi_reduction <maximumf>, %27, %cst_18 [1] : vector<1x16x256xf32> to vector<1x256xf32>
    %32 = tpu.concatenate %30, %31 in 1 : vector<1x256xf32>, vector<1x256xf32> -> vector<1x512xf32>
    %cst_19 = arith.constant 0.000000e+00 : f32
    %33 = vector.broadcast %cst_19 : f32 to vector<1x512xf32>
    %c51_i32 = arith.constant 51 : i32
    %34 = tpu.dynamic_rotate %32 by %c51_i32 dim 1 : vector<1x512xf32>, i32 -> vector<1x512xf32>
    %c0_20 = arith.constant 0 : index
    %c0_21 = arith.constant 0 : index
    %35 = vector.load %arg4[%c0_20, %c0_21] : memref<49x512xf32, #tpu.memory_space<vmem>>, vector<1x512xf32>
    %36 = arith.mulf %34, %35 : vector<1x512xf32>
    %37 = arith.addf %33, %36 : vector<1x512xf32>
    %c50_i32 = arith.constant 50 : i32
    %38 = tpu.dynamic_rotate %32 by %c50_i32 dim 1 : vector<1x512xf32>, i32 -> vector<1x512xf32>
    %c1 = arith.constant 1 : index
    %c0_22 = arith.constant 0 : index
    %39 = vector.load %arg4[%c1, %c0_22] : memref<49x512xf32, #tpu.memory_space<vmem>>, vector<1x512xf32>
    %40 = arith.mulf %38, %39 : vector<1x512xf32>
    %41 = arith.addf %37, %40 : vector<1x512xf32>
    %c49_i32 = arith.constant 49 : i32
    %42 = tpu.dynamic_rotate %32 by %c49_i32 dim 1 : vector<1x512xf32>, i32 -> vector<1x512xf32>
    %c2 = arith.constant 2 : index
    %c0_23 = arith.constant 0 : index
    %43 = vector.load %arg4[%c2, %c0_23] : memref<49x512xf32, #tpu.memory_space<vmem>>, vector<1x512xf32>
    %44 = arith.mulf %42, %43 : vector<1x512xf32>
    %45 = arith.addf %41, %44 : vector<1x512xf32>
    %c48_i32 = arith.constant 48 : i32
    %46 = tpu.dynamic_rotate %32 by %c48_i32 dim 1 : vector<1x512xf32>, i32 -> vector<1x512xf32>
    %c3 = arith.constant 3 : index
    %c0_24 = arith.constant 0 : index
    %47 = vector.load %arg4[%c3, %c0_24] : memref<49x512xf32, #tpu.memory_space<vmem>>, vector<1x512xf32>
    %48 = arith.mulf %46, %47 : vector<1x512xf32>
    %49 = arith.addf %45, %48 : vector<1x512xf32>
    %c47_i32 = arith.constant 47 : i32
    %50 = tpu.dynamic_rotate %32 by %c47_i32 dim 1 : vector<1x512xf32>, i32 -> vector<1x512xf32>
    %c4 = arith.constant 4 : index
    %c0_25 = arith.constant 0 : index
    %51 = vector.load %arg4[%c4, %c0_25] : memref<49x512xf32, #tpu.memory_space<vmem>>, vector<1x512xf32>
    %52 = arith.mulf %50, %51 : vector<1x512xf32>
    %53 = arith.addf %49, %52 : vector<1x512xf32>
    %c46_i32 = arith.constant 46 : i32
    %54 = tpu.dynamic_rotate %32 by %c46_i32 dim 1 : vector<1x512xf32>, i32 -> vector<1x512xf32>
    %c5 = arith.constant 5 : index
    %c0_26 = arith.constant 0 : index
    %55 = vector.load %arg4[%c5, %c0_26] : memref<49x512xf32, #tpu.memory_space<vmem>>, vector<1x512xf32>
    %56 = arith.mulf %54, %55 : vector<1x512xf32>
    %57 = arith.addf %53, %56 : vector<1x512xf32>
    %c45_i32 = arith.constant 45 : i32
    %58 = tpu.dynamic_rotate %32 by %c45_i32 dim 1 : vector<1x512xf32>, i32 -> vector<1x512xf32>
    %c6 = arith.constant 6 : index
    %c0_27 = arith.constant 0 : index
    %59 = vector.load %arg4[%c6, %c0_27] : memref<49x512xf32, #tpu.memory_space<vmem>>, vector<1x512xf32>
    %60 = arith.mulf %58, %59 : vector<1x512xf32>
    %61 = arith.addf %57, %60 : vector<1x512xf32>
    %c35_i32 = arith.constant 35 : i32
    %62 = tpu.dynamic_rotate %32 by %c35_i32 dim 1 : vector<1x512xf32>, i32 -> vector<1x512xf32>
    %c7 = arith.constant 7 : index
    %c0_28 = arith.constant 0 : index
    %63 = vector.load %arg4[%c7, %c0_28] : memref<49x512xf32, #tpu.memory_space<vmem>>, vector<1x512xf32>
    %64 = arith.mulf %62, %63 : vector<1x512xf32>
    %65 = arith.addf %61, %64 : vector<1x512xf32>
    %c34_i32 = arith.constant 34 : i32
    %66 = tpu.dynamic_rotate %32 by %c34_i32 dim 1 : vector<1x512xf32>, i32 -> vector<1x512xf32>
    %c8 = arith.constant 8 : index
    %c0_29 = arith.constant 0 : index
    %67 = vector.load %arg4[%c8, %c0_29] : memref<49x512xf32, #tpu.memory_space<vmem>>, vector<1x512xf32>
    %68 = arith.mulf %66, %67 : vector<1x512xf32>
    %69 = arith.addf %65, %68 : vector<1x512xf32>
    %c33_i32 = arith.constant 33 : i32
    %70 = tpu.dynamic_rotate %32 by %c33_i32 dim 1 : vector<1x512xf32>, i32 -> vector<1x512xf32>
    %c9 = arith.constant 9 : index
    %c0_30 = arith.constant 0 : index
    %71 = vector.load %arg4[%c9, %c0_30] : memref<49x512xf32, #tpu.memory_space<vmem>>, vector<1x512xf32>
    %72 = arith.mulf %70, %71 : vector<1x512xf32>
    %73 = arith.addf %69, %72 : vector<1x512xf32>
    %c32_i32 = arith.constant 32 : i32
    %74 = tpu.dynamic_rotate %32 by %c32_i32 dim 1 : vector<1x512xf32>, i32 -> vector<1x512xf32>
    %c10 = arith.constant 10 : index
    %c0_31 = arith.constant 0 : index
    %75 = vector.load %arg4[%c10, %c0_31] : memref<49x512xf32, #tpu.memory_space<vmem>>, vector<1x512xf32>
    %76 = arith.mulf %74, %75 : vector<1x512xf32>
    %77 = arith.addf %73, %76 : vector<1x512xf32>
    %c31_i32 = arith.constant 31 : i32
    %78 = tpu.dynamic_rotate %32 by %c31_i32 dim 1 : vector<1x512xf32>, i32 -> vector<1x512xf32>
    %c11 = arith.constant 11 : index
    %c0_32 = arith.constant 0 : index
    %79 = vector.load %arg4[%c11, %c0_32] : memref<49x512xf32, #tpu.memory_space<vmem>>, vector<1x512xf32>
    %80 = arith.mulf %78, %79 : vector<1x512xf32>
    %81 = arith.addf %77, %80 : vector<1x512xf32>
    %c30_i32 = arith.constant 30 : i32
    %82 = tpu.dynamic_rotate %32 by %c30_i32 dim 1 : vector<1x512xf32>, i32 -> vector<1x512xf32>
    %c12 = arith.constant 12 : index
    %c0_33 = arith.constant 0 : index
    %83 = vector.load %arg4[%c12, %c0_33] : memref<49x512xf32, #tpu.memory_space<vmem>>, vector<1x512xf32>
    %84 = arith.mulf %82, %83 : vector<1x512xf32>
    %85 = arith.addf %81, %84 : vector<1x512xf32>
    %c29_i32 = arith.constant 29 : i32
    %86 = tpu.dynamic_rotate %32 by %c29_i32 dim 1 : vector<1x512xf32>, i32 -> vector<1x512xf32>
    %c13 = arith.constant 13 : index
    %c0_34 = arith.constant 0 : index
    %87 = vector.load %arg4[%c13, %c0_34] : memref<49x512xf32, #tpu.memory_space<vmem>>, vector<1x512xf32>
    %88 = arith.mulf %86, %87 : vector<1x512xf32>
    %89 = arith.addf %85, %88 : vector<1x512xf32>
    %c19_i32 = arith.constant 19 : i32
    %90 = tpu.dynamic_rotate %32 by %c19_i32 dim 1 : vector<1x512xf32>, i32 -> vector<1x512xf32>
    %c14 = arith.constant 14 : index
    %c0_35 = arith.constant 0 : index
    %91 = vector.load %arg4[%c14, %c0_35] : memref<49x512xf32, #tpu.memory_space<vmem>>, vector<1x512xf32>
    %92 = arith.mulf %90, %91 : vector<1x512xf32>
    %93 = arith.addf %89, %92 : vector<1x512xf32>
    %c18_i32 = arith.constant 18 : i32
    %94 = tpu.dynamic_rotate %32 by %c18_i32 dim 1 : vector<1x512xf32>, i32 -> vector<1x512xf32>
    %c15 = arith.constant 15 : index
    %c0_36 = arith.constant 0 : index
    %95 = vector.load %arg4[%c15, %c0_36] : memref<49x512xf32, #tpu.memory_space<vmem>>, vector<1x512xf32>
    %96 = arith.mulf %94, %95 : vector<1x512xf32>
    %97 = arith.addf %93, %96 : vector<1x512xf32>
    %c17_i32 = arith.constant 17 : i32
    %98 = tpu.dynamic_rotate %32 by %c17_i32 dim 1 : vector<1x512xf32>, i32 -> vector<1x512xf32>
    %c16 = arith.constant 16 : index
    %c0_37 = arith.constant 0 : index
    %99 = vector.load %arg4[%c16, %c0_37] : memref<49x512xf32, #tpu.memory_space<vmem>>, vector<1x512xf32>
    %100 = arith.mulf %98, %99 : vector<1x512xf32>
    %101 = arith.addf %97, %100 : vector<1x512xf32>
    %c16_i32 = arith.constant 16 : i32
    %102 = tpu.dynamic_rotate %32 by %c16_i32 dim 1 : vector<1x512xf32>, i32 -> vector<1x512xf32>
    %c17 = arith.constant 17 : index
    %c0_38 = arith.constant 0 : index
    %103 = vector.load %arg4[%c17, %c0_38] : memref<49x512xf32, #tpu.memory_space<vmem>>, vector<1x512xf32>
    %104 = arith.mulf %102, %103 : vector<1x512xf32>
    %105 = arith.addf %101, %104 : vector<1x512xf32>
    %c15_i32 = arith.constant 15 : i32
    %106 = tpu.dynamic_rotate %32 by %c15_i32 dim 1 : vector<1x512xf32>, i32 -> vector<1x512xf32>
    %c18 = arith.constant 18 : index
    %c0_39 = arith.constant 0 : index
    %107 = vector.load %arg4[%c18, %c0_39] : memref<49x512xf32, #tpu.memory_space<vmem>>, vector<1x512xf32>
    %108 = arith.mulf %106, %107 : vector<1x512xf32>
    %109 = arith.addf %105, %108 : vector<1x512xf32>
    %c14_i32 = arith.constant 14 : i32
    %110 = tpu.dynamic_rotate %32 by %c14_i32 dim 1 : vector<1x512xf32>, i32 -> vector<1x512xf32>
    %c19 = arith.constant 19 : index
    %c0_40 = arith.constant 0 : index
    %111 = vector.load %arg4[%c19, %c0_40] : memref<49x512xf32, #tpu.memory_space<vmem>>, vector<1x512xf32>
    %112 = arith.mulf %110, %111 : vector<1x512xf32>
    %113 = arith.addf %109, %112 : vector<1x512xf32>
    %c13_i32 = arith.constant 13 : i32
    %114 = tpu.dynamic_rotate %32 by %c13_i32 dim 1 : vector<1x512xf32>, i32 -> vector<1x512xf32>
    %c20 = arith.constant 20 : index
    %c0_41 = arith.constant 0 : index
    %115 = vector.load %arg4[%c20, %c0_41] : memref<49x512xf32, #tpu.memory_space<vmem>>, vector<1x512xf32>
    %116 = arith.mulf %114, %115 : vector<1x512xf32>
    %117 = arith.addf %113, %116 : vector<1x512xf32>
    %c3_i32 = arith.constant 3 : i32
    %118 = tpu.dynamic_rotate %32 by %c3_i32 dim 1 : vector<1x512xf32>, i32 -> vector<1x512xf32>
    %c21 = arith.constant 21 : index
    %c0_42 = arith.constant 0 : index
    %119 = vector.load %arg4[%c21, %c0_42] : memref<49x512xf32, #tpu.memory_space<vmem>>, vector<1x512xf32>
    %120 = arith.mulf %118, %119 : vector<1x512xf32>
    %121 = arith.addf %117, %120 : vector<1x512xf32>
    %c2_i32 = arith.constant 2 : i32
    %122 = tpu.dynamic_rotate %32 by %c2_i32 dim 1 : vector<1x512xf32>, i32 -> vector<1x512xf32>
    %c22 = arith.constant 22 : index
    %c0_43 = arith.constant 0 : index
    %123 = vector.load %arg4[%c22, %c0_43] : memref<49x512xf32, #tpu.memory_space<vmem>>, vector<1x512xf32>
    %124 = arith.mulf %122, %123 : vector<1x512xf32>
    %125 = arith.addf %121, %124 : vector<1x512xf32>
    %c1_i32 = arith.constant 1 : i32
    %126 = tpu.dynamic_rotate %32 by %c1_i32 dim 1 : vector<1x512xf32>, i32 -> vector<1x512xf32>
    %c23 = arith.constant 23 : index
    %c0_44 = arith.constant 0 : index
    %127 = vector.load %arg4[%c23, %c0_44] : memref<49x512xf32, #tpu.memory_space<vmem>>, vector<1x512xf32>
    %128 = arith.mulf %126, %127 : vector<1x512xf32>
    %129 = arith.addf %125, %128 : vector<1x512xf32>
    %c24 = arith.constant 24 : index
    %c0_45 = arith.constant 0 : index
    %130 = vector.load %arg4[%c24, %c0_45] : memref<49x512xf32, #tpu.memory_space<vmem>>, vector<1x512xf32>
    %131 = arith.mulf %32, %130 : vector<1x512xf32>
    %132 = arith.addf %129, %131 : vector<1x512xf32>
    %c511_i32 = arith.constant 511 : i32
    %133 = tpu.dynamic_rotate %32 by %c511_i32 dim 1 : vector<1x512xf32>, i32 -> vector<1x512xf32>
    %c25 = arith.constant 25 : index
    %c0_46 = arith.constant 0 : index
    %134 = vector.load %arg4[%c25, %c0_46] : memref<49x512xf32, #tpu.memory_space<vmem>>, vector<1x512xf32>
    %135 = arith.mulf %133, %134 : vector<1x512xf32>
    %136 = arith.addf %132, %135 : vector<1x512xf32>
    %c510_i32 = arith.constant 510 : i32
    %137 = tpu.dynamic_rotate %32 by %c510_i32 dim 1 : vector<1x512xf32>, i32 -> vector<1x512xf32>
    %c26 = arith.constant 26 : index
    %c0_47 = arith.constant 0 : index
    %138 = vector.load %arg4[%c26, %c0_47] : memref<49x512xf32, #tpu.memory_space<vmem>>, vector<1x512xf32>
    %139 = arith.mulf %137, %138 : vector<1x512xf32>
    %140 = arith.addf %136, %139 : vector<1x512xf32>
    %c509_i32 = arith.constant 509 : i32
    %141 = tpu.dynamic_rotate %32 by %c509_i32 dim 1 : vector<1x512xf32>, i32 -> vector<1x512xf32>
    %c27 = arith.constant 27 : index
    %c0_48 = arith.constant 0 : index
    %142 = vector.load %arg4[%c27, %c0_48] : memref<49x512xf32, #tpu.memory_space<vmem>>, vector<1x512xf32>
    %143 = arith.mulf %141, %142 : vector<1x512xf32>
    %144 = arith.addf %140, %143 : vector<1x512xf32>
    %c499_i32 = arith.constant 499 : i32
    %145 = tpu.dynamic_rotate %32 by %c499_i32 dim 1 : vector<1x512xf32>, i32 -> vector<1x512xf32>
    %c28 = arith.constant 28 : index
    %c0_49 = arith.constant 0 : index
    %146 = vector.load %arg4[%c28, %c0_49] : memref<49x512xf32, #tpu.memory_space<vmem>>, vector<1x512xf32>
    %147 = arith.mulf %145, %146 : vector<1x512xf32>
    %148 = arith.addf %144, %147 : vector<1x512xf32>
    %c498_i32 = arith.constant 498 : i32
    %149 = tpu.dynamic_rotate %32 by %c498_i32 dim 1 : vector<1x512xf32>, i32 -> vector<1x512xf32>
    %c29 = arith.constant 29 : index
    %c0_50 = arith.constant 0 : index
    %150 = vector.load %arg4[%c29, %c0_50] : memref<49x512xf32, #tpu.memory_space<vmem>>, vector<1x512xf32>
    %151 = arith.mulf %149, %150 : vector<1x512xf32>
    %152 = arith.addf %148, %151 : vector<1x512xf32>
    %c497_i32 = arith.constant 497 : i32
    %153 = tpu.dynamic_rotate %32 by %c497_i32 dim 1 : vector<1x512xf32>, i32 -> vector<1x512xf32>
    %c30 = arith.constant 30 : index
    %c0_51 = arith.constant 0 : index
    %154 = vector.load %arg4[%c30, %c0_51] : memref<49x512xf32, #tpu.memory_space<vmem>>, vector<1x512xf32>
    %155 = arith.mulf %153, %154 : vector<1x512xf32>
    %156 = arith.addf %152, %155 : vector<1x512xf32>
    %c496_i32 = arith.constant 496 : i32
    %157 = tpu.dynamic_rotate %32 by %c496_i32 dim 1 : vector<1x512xf32>, i32 -> vector<1x512xf32>
    %c31 = arith.constant 31 : index
    %c0_52 = arith.constant 0 : index
    %158 = vector.load %arg4[%c31, %c0_52] : memref<49x512xf32, #tpu.memory_space<vmem>>, vector<1x512xf32>
    %159 = arith.mulf %157, %158 : vector<1x512xf32>
    %160 = arith.addf %156, %159 : vector<1x512xf32>
    %c495_i32 = arith.constant 495 : i32
    %161 = tpu.dynamic_rotate %32 by %c495_i32 dim 1 : vector<1x512xf32>, i32 -> vector<1x512xf32>
    %c32 = arith.constant 32 : index
    %c0_53 = arith.constant 0 : index
    %162 = vector.load %arg4[%c32, %c0_53] : memref<49x512xf32, #tpu.memory_space<vmem>>, vector<1x512xf32>
    %163 = arith.mulf %161, %162 : vector<1x512xf32>
    %164 = arith.addf %160, %163 : vector<1x512xf32>
    %c494_i32 = arith.constant 494 : i32
    %165 = tpu.dynamic_rotate %32 by %c494_i32 dim 1 : vector<1x512xf32>, i32 -> vector<1x512xf32>
    %c33 = arith.constant 33 : index
    %c0_54 = arith.constant 0 : index
    %166 = vector.load %arg4[%c33, %c0_54] : memref<49x512xf32, #tpu.memory_space<vmem>>, vector<1x512xf32>
    %167 = arith.mulf %165, %166 : vector<1x512xf32>
    %168 = arith.addf %164, %167 : vector<1x512xf32>
    %c493_i32 = arith.constant 493 : i32
    %169 = tpu.dynamic_rotate %32 by %c493_i32 dim 1 : vector<1x512xf32>, i32 -> vector<1x512xf32>
    %c34 = arith.constant 34 : index
    %c0_55 = arith.constant 0 : index
    %170 = vector.load %arg4[%c34, %c0_55] : memref<49x512xf32, #tpu.memory_space<vmem>>, vector<1x512xf32>
    %171 = arith.mulf %169, %170 : vector<1x512xf32>
    %172 = arith.addf %168, %171 : vector<1x512xf32>
    %c483_i32 = arith.constant 483 : i32
    %173 = tpu.dynamic_rotate %32 by %c483_i32 dim 1 : vector<1x512xf32>, i32 -> vector<1x512xf32>
    %c35 = arith.constant 35 : index
    %c0_56 = arith.constant 0 : index
    %174 = vector.load %arg4[%c35, %c0_56] : memref<49x512xf32, #tpu.memory_space<vmem>>, vector<1x512xf32>
    %175 = arith.mulf %173, %174 : vector<1x512xf32>
    %176 = arith.addf %172, %175 : vector<1x512xf32>
    %c482_i32 = arith.constant 482 : i32
    %177 = tpu.dynamic_rotate %32 by %c482_i32 dim 1 : vector<1x512xf32>, i32 -> vector<1x512xf32>
    %c36 = arith.constant 36 : index
    %c0_57 = arith.constant 0 : index
    %178 = vector.load %arg4[%c36, %c0_57] : memref<49x512xf32, #tpu.memory_space<vmem>>, vector<1x512xf32>
    %179 = arith.mulf %177, %178 : vector<1x512xf32>
    %180 = arith.addf %176, %179 : vector<1x512xf32>
    %c481_i32 = arith.constant 481 : i32
    %181 = tpu.dynamic_rotate %32 by %c481_i32 dim 1 : vector<1x512xf32>, i32 -> vector<1x512xf32>
    %c37 = arith.constant 37 : index
    %c0_58 = arith.constant 0 : index
    %182 = vector.load %arg4[%c37, %c0_58] : memref<49x512xf32, #tpu.memory_space<vmem>>, vector<1x512xf32>
    %183 = arith.mulf %181, %182 : vector<1x512xf32>
    %184 = arith.addf %180, %183 : vector<1x512xf32>
    %c480_i32 = arith.constant 480 : i32
    %185 = tpu.dynamic_rotate %32 by %c480_i32 dim 1 : vector<1x512xf32>, i32 -> vector<1x512xf32>
    %c38 = arith.constant 38 : index
    %c0_59 = arith.constant 0 : index
    %186 = vector.load %arg4[%c38, %c0_59] : memref<49x512xf32, #tpu.memory_space<vmem>>, vector<1x512xf32>
    %187 = arith.mulf %185, %186 : vector<1x512xf32>
    %188 = arith.addf %184, %187 : vector<1x512xf32>
    %c479_i32 = arith.constant 479 : i32
    %189 = tpu.dynamic_rotate %32 by %c479_i32 dim 1 : vector<1x512xf32>, i32 -> vector<1x512xf32>
    %c39 = arith.constant 39 : index
    %c0_60 = arith.constant 0 : index
    %190 = vector.load %arg4[%c39, %c0_60] : memref<49x512xf32, #tpu.memory_space<vmem>>, vector<1x512xf32>
    %191 = arith.mulf %189, %190 : vector<1x512xf32>
    %192 = arith.addf %188, %191 : vector<1x512xf32>
    %c478_i32 = arith.constant 478 : i32
    %193 = tpu.dynamic_rotate %32 by %c478_i32 dim 1 : vector<1x512xf32>, i32 -> vector<1x512xf32>
    %c40 = arith.constant 40 : index
    %c0_61 = arith.constant 0 : index
    %194 = vector.load %arg4[%c40, %c0_61] : memref<49x512xf32, #tpu.memory_space<vmem>>, vector<1x512xf32>
    %195 = arith.mulf %193, %194 : vector<1x512xf32>
    %196 = arith.addf %192, %195 : vector<1x512xf32>
    %c477_i32 = arith.constant 477 : i32
    %197 = tpu.dynamic_rotate %32 by %c477_i32 dim 1 : vector<1x512xf32>, i32 -> vector<1x512xf32>
    %c41 = arith.constant 41 : index
    %c0_62 = arith.constant 0 : index
    %198 = vector.load %arg4[%c41, %c0_62] : memref<49x512xf32, #tpu.memory_space<vmem>>, vector<1x512xf32>
    %199 = arith.mulf %197, %198 : vector<1x512xf32>
    %200 = arith.addf %196, %199 : vector<1x512xf32>
    %c467_i32 = arith.constant 467 : i32
    %201 = tpu.dynamic_rotate %32 by %c467_i32 dim 1 : vector<1x512xf32>, i32 -> vector<1x512xf32>
    %c42 = arith.constant 42 : index
    %c0_63 = arith.constant 0 : index
    %202 = vector.load %arg4[%c42, %c0_63] : memref<49x512xf32, #tpu.memory_space<vmem>>, vector<1x512xf32>
    %203 = arith.mulf %201, %202 : vector<1x512xf32>
    %204 = arith.addf %200, %203 : vector<1x512xf32>
    %c466_i32 = arith.constant 466 : i32
    %205 = tpu.dynamic_rotate %32 by %c466_i32 dim 1 : vector<1x512xf32>, i32 -> vector<1x512xf32>
    %c43 = arith.constant 43 : index
    %c0_64 = arith.constant 0 : index
    %206 = vector.load %arg4[%c43, %c0_64] : memref<49x512xf32, #tpu.memory_space<vmem>>, vector<1x512xf32>
    %207 = arith.mulf %205, %206 : vector<1x512xf32>
    %208 = arith.addf %204, %207 : vector<1x512xf32>
    %c465_i32 = arith.constant 465 : i32
    %209 = tpu.dynamic_rotate %32 by %c465_i32 dim 1 : vector<1x512xf32>, i32 -> vector<1x512xf32>
    %c44 = arith.constant 44 : index
    %c0_65 = arith.constant 0 : index
    %210 = vector.load %arg4[%c44, %c0_65] : memref<49x512xf32, #tpu.memory_space<vmem>>, vector<1x512xf32>
    %211 = arith.mulf %209, %210 : vector<1x512xf32>
    %212 = arith.addf %208, %211 : vector<1x512xf32>
    %c464_i32 = arith.constant 464 : i32
    %213 = tpu.dynamic_rotate %32 by %c464_i32 dim 1 : vector<1x512xf32>, i32 -> vector<1x512xf32>
    %c45 = arith.constant 45 : index
    %c0_66 = arith.constant 0 : index
    %214 = vector.load %arg4[%c45, %c0_66] : memref<49x512xf32, #tpu.memory_space<vmem>>, vector<1x512xf32>
    %215 = arith.mulf %213, %214 : vector<1x512xf32>
    %216 = arith.addf %212, %215 : vector<1x512xf32>
    %c463_i32 = arith.constant 463 : i32
    %217 = tpu.dynamic_rotate %32 by %c463_i32 dim 1 : vector<1x512xf32>, i32 -> vector<1x512xf32>
    %c46 = arith.constant 46 : index
    %c0_67 = arith.constant 0 : index
    %218 = vector.load %arg4[%c46, %c0_67] : memref<49x512xf32, #tpu.memory_space<vmem>>, vector<1x512xf32>
    %219 = arith.mulf %217, %218 : vector<1x512xf32>
    %220 = arith.addf %216, %219 : vector<1x512xf32>
    %c462_i32 = arith.constant 462 : i32
    %221 = tpu.dynamic_rotate %32 by %c462_i32 dim 1 : vector<1x512xf32>, i32 -> vector<1x512xf32>
    %c47 = arith.constant 47 : index
    %c0_68 = arith.constant 0 : index
    %222 = vector.load %arg4[%c47, %c0_68] : memref<49x512xf32, #tpu.memory_space<vmem>>, vector<1x512xf32>
    %223 = arith.mulf %221, %222 : vector<1x512xf32>
    %224 = arith.addf %220, %223 : vector<1x512xf32>
    %c461_i32 = arith.constant 461 : i32
    %225 = tpu.dynamic_rotate %32 by %c461_i32 dim 1 : vector<1x512xf32>, i32 -> vector<1x512xf32>
    %c48 = arith.constant 48 : index
    %c0_69 = arith.constant 0 : index
    %226 = vector.load %arg4[%c48, %c0_69] : memref<49x512xf32, #tpu.memory_space<vmem>>, vector<1x512xf32>
    %227 = arith.mulf %225, %226 : vector<1x512xf32>
    %228 = arith.addf %224, %227 : vector<1x512xf32>
    %229 = vector.extract_strided_slice %228 {offsets = [0, 0], sizes = [1, 256], strides = [1, 1]} : vector<1x512xf32> to vector<1x256xf32>
    %230 = vector.extract_strided_slice %228 {offsets = [0, 256], sizes = [1, 256], strides = [1, 1]} : vector<1x512xf32> to vector<1x256xf32>
    %231 = arith.addf %229, %230 : vector<1x256xf32>
    %cst_70 = arith.constant -3.000000e+01 : f32
    %cst_71 = arith.constant 3.000000e+01 : f32
    %232 = vector.broadcast %cst_70 : f32 to vector<1x256xf32>
    %233 = arith.maximumf %232, %231 : vector<1x256xf32>
    %234 = vector.broadcast %cst_71 : f32 to vector<1x256xf32>
    %235 = arith.minimumf %234, %233 : vector<1x256xf32>
    %cst_72 = arith.constant 0.000000e+00 : f32
    %236 = vector.broadcast %cst_72 : f32 to vector<1x256xf32>
    %237 = arith.subf %236, %235 : vector<1x256xf32>
    %238 = math.exp %237 : vector<1x256xf32>
    %cst_73 = arith.constant 1.000000e+00 : f32
    %239 = vector.broadcast %cst_73 : f32 to vector<1x256xf32>
    %240 = arith.addf %239, %238 : vector<1x256xf32>
    %241 = tpu.reciprocal %240 : vector<1x256xf32> -> vector<1x256xf32>
    %242 = vector.shape_cast %241 : vector<1x256xf32> to vector<1x1x256xf32>
    %243 = vector.broadcast %242 : vector<1x1x256xf32> to vector<1x16x256xf32>
    %244 = arith.mulf %27, %243 : vector<1x16x256xf32>
    %c0_74 = arith.constant 0 : index
    %c0_75 = arith.constant 0 : index
    %c0_76 = arith.constant 0 : index
    %245 = vector.load %arg6[%c0_74, %c0_75, %c0_76] : memref<1x16x256xf32, #tpu.memory_space<vmem>>, vector<1x16x256xf32>
    tpu.vector_store %arg6[%c0_74, %c0_75, %c0_76], %244 {strides = array<i32>} : memref<1x16x256xf32, #tpu.memory_space<vmem>>, vector<1x16x256xf32>,
    return
  }
  func.func @transform_0(%arg0: i32) -> (i32, i32, i32) {
    %c0_i32 = arith.constant 0 : i32
    %c0_i32_0 = arith.constant 0 : i32
    %c0_i32_1 = arith.constant 0 : i32
    return %arg0, %c0_i32, %c0_i32_0 : i32, i32, i32
  }
  func.func @transform_1(%arg0: i32) -> (i32, i32) {
    %c0_i32 = arith.constant 0 : i32
    %c0_i32_0 = arith.constant 0 : i32
    %c0_i32_1 = arith.constant 0 : i32
    return %c0_i32, %c0_i32_0 : i32, i32
  }
  func.func @transform_2(%arg0: i32) -> (i32, i32) {
    %c0_i32 = arith.constant 0 : i32
    %c0_i32_0 = arith.constant 0 : i32
    %c0_i32_1 = arith.constant 0 : i32
    return %c0_i32, %c0_i32_0 : i32, i32
  }
  func.func @transform_3(%arg0: i32) -> (i32, i32) {
    %c0_i32 = arith.constant 0 : i32
    %c0_i32_0 = arith.constant 0 : i32
    %c0_i32_1 = arith.constant 0 : i32
    return %c0_i32, %c0_i32_0 : i32, i32
  }
  func.func @transform_4(%arg0: i32) -> (i32, i32) {
    %c0_i32 = arith.constant 0 : i32
    %c0_i32_0 = arith.constant 0 : i32
    %c0_i32_1 = arith.constant 0 : i32
    return %c0_i32, %c0_i32_0 : i32, i32
  }
  func.func @transform_5(%arg0: i32) -> (i32, i32, i32) {
    %c0_i32 = arith.constant 0 : i32
    %c0_i32_0 = arith.constant 0 : i32
    %c0_i32_1 = arith.constant 0 : i32
    return %arg0, %c0_i32, %c0_i32_0 : i32, i32, i32
  }
}

</mosaic_0001>

<bundles_post_ra>
// kernel: tpu_custom_call.1
= control target key start
LH: loop header
LB: loop body
LE: loop exit
PB: predicated region body
PF: predicated region fallthrough
CT: control target
= control target key end

     0   :  { %10 = vsyncpa [#allocation3], 0  ;;  %s5795_s0 = inlined_call_operand.hbm [shape: f32[2,16,256], index: 0, kind: input, shape index: {}]   ;;  %s5796_s1 = inlined_call_operand.vmem [shape: f32[16,2], index: 1, kind: input, shape index: {}]   ;;  %s5797_s2 = inlined_call_operand.vmem [shape: f32[2,16], index: 2, kind: input, shape index: {}]   ;;  %s5798_s3 = inlined_call_operand.hbm [shape: f32[49,512], index: 3, kind: input, shape index: {}]   ;;  %s5799_s4 = inlined_call_operand.vmem [shape: f32[1,16], index: 4, kind: input, shape index: {}]   ;;  %s5800_s5 = inlined_call_operand.hbm [shape: f32[2,16,256], index: 5, kind: output, shape index: {}]  }
   0x1   :  { %12 = vsyncpa [#allocation3 + $0x1], 0 }
   0x2   :  { %13 = vsyncpa [#allocation6], 0 }
   0x3   :  { %14 = vsyncpa [#allocation4], 0 }
   0x4   :  { %16 = vsyncpa [#allocation4 + $0x1], 0  ;;  %s3241_s18 = smov 0   ;;  %s3243_s19 = smov 0  }
   0x5   :  { %s3245_s20 = smov 0   ;;  %s3247_s21 = smov 0  }
   0x6 LB: > { %s3262_s22 = sadd.s32 4294967295, %s3150_s21   ;;  %s2848_s23 = sadd.s32 4294967294, %s3150_s21   ;;  %s3150_s21 = sphi %s3247_s21, %s6444_s21   ;;  %s3146_s20 = sphi %s3245_s20, %s6443_s20   ;;  %s3142_s19 = sphi %s3243_s19, %s6442_s19   ;;  %s3138_s18 = sphi %s3241_s18, %s6441_s18  }
   0x7   : > { %p42_p0 = scmp.ne.s32.totalorder %s3142_s19, %s3138_s18  ;;  %p5801_p1 = scmp.eq.s32.totalorder %s3262_s22, 0 }
   0x8   : > { %p156_p3 = scmp.eq.s32.totalorder %s2848_s23, 1  ;;  %p2849_p5 = scmp.ge.s32.totalorder %s3150_s21, 1 }
   0x9   : > { %p3271_p4 = por %p5801_p1, %p42_p0  ;;  %p163_p7 = scmp.lt.s32.totalorder %s3150_s21, 3 }
   0xa   : > { %p3276_p6 = por %p156_p3, %p42_p0  ;;  %s3152_s27 = smov [#allocation5]  }
   0xb   : > { %s5995_s24 = scalar_select %p3271_p4, 1, 0 }
   0xc   : > { %s5996_s25 = scalar_select %p3276_p6, 1, 0 }
   0xd   : > { %p3281_p8 = pnand %p2849_p5, %p163_p7  ;;  %s181_s28 = sshll.u32 %s3152_s27, 4  ;;  %s3285_s28 = int_to_ptr.vmem [resolvable:$true] %s181_s28 }
   0xe   : > { %s3297_s30 = sadd.s32 1, %s3150_s21   ;;  %s29_s6 = sadd.s32 1, %s3146_s20 }
   0xf   : > { %s5997_s26 = scalar_select %p3281_p8, 1, 0 }
  0x10   : > { %p2905_p9 = pneg %p3281_p8  ;;  %s26_s7 = ssub.s32 %s3150_s21, %s3297_s30 }
  0x11   : > { %s3022_s10 = scalar_lea.hbm %s5798_s3, 3584 }
  0x12   : > { %p3292_p11 = pnand %p2905_p9, %p5801_p1  ;;  %p3023_p12 = scmp.ne.s32.totalorder %s5798_s3, %s3022_s10 }
  0x13   : > { %p3029_p5 = scmp.lt.u32.totalorder %s3022_s10, %s5798_s3 }
  0x14   : > { %p3024_p13 = pneg %p3292_p11 }
  0x16   : > { %p3025_p0 = pnand %p3024_p13, %p3023_p12 }
  0x18   : > { %p3026_p3 = pneg %p3025_p0 }
  0x1a   : > { %p3031_p7 = pnand %p3029_p5, %p3026_p3 }
  0x1c   : > { %3034 = shalt.err (!%p3031_p7)
}
  0x1d   : > { %s3035_s15 = scalar_lea.vmem %s3285_s28, 3584  ;;  %p3043_p2 = scmp.lt.s32.totalorder %s3285_s28, %s3285_s28 }
  0x1e   : > { %p3036_p9 = scmp.ne.s32.totalorder %s3285_s28, %s3035_s15  ;;  %p3044_p6 = scmp.lt.s32.totalorder %s3035_s15, %s3035_s15 }
  0x20   : > { %p3038_p10 = pnand %p3036_p9, %p3024_p13  ;;  %p3045_p4 = por %p3044_p6, %p3043_p2 }
  0x22   : > { %p3039_p1 = pneg %p3038_p10 }
  0x24   : > { %p3046_p8 = pnand %p3045_p4, %p3039_p1 }
  0x26   : > { %3049 = shalt.err (!%p3046_p8)
}
  0x27   : > { %s3153_s16 = smov 512   ;;  %s3154_s17 = smov 32  }
  0x28   : > { %2908 = dma.hbm_to_vmem [thread:$0]  (!%p3292_p11), %s5798_s3, 3584, %s3285_s28, [#allocation6], %s3153_s16, %s3153_s16, %s3154_s17  }
  0x29   : > { %p27_p2 = scmp.eq.s32.totalorder %s26_s7, 0  ;;  %p36_p1 = scmp.ne.s32.totalorder %s3146_s20, %s3142_s19 }
  0x2a   : > { %p37_p4 = scmp.eq.s32.totalorder %s3150_s21, 0  ;;  %p2918_p6 = scmp.lt.s32.totalorder %s3150_s21, 2 }
  0x2b   : > { %s3328_s8 = scalar_select %p27_p2, %s3146_s20, %s29_s6  }
  0x2c   : > { %p38_p8 = por %p37_p4, %p36_p1  ;;  %p5999_p10 = scmp.eq.s32.totalorder %s3262_s22, 1 }
  0x2d   : > { %s198_s10 = sand.u32 1, %s3146_s20   ;;  %s2871_s11 = sshll.u32 %s3150_s21, 9 }
  0x2e   : > { %p3332_p12 = por %p5999_p10, %p36_p1  ;;  %s2852_s12 = sshll.u32 %s198_s10, 5 }
  0x2f   : > { %s3341_s14 = scalar_lea.hbm %s5795_s0, %s2871_s11  ;;  %s202_s28 = scalar_lea.vmem [#allocation2], %s2852_s12 }
  0x30   : > { %s209_s6 = sshll.u32 %s202_s28, 4  ;;  %p3343_p11 = pnand %p2918_p6, %p38_p8  ;;  %s3347_s6 = int_to_ptr.vmem [resolvable:$true] %s209_s6 }
  0x31   : > { %s3349_s15 = scalar_lea.sflag [#allocation3], %s198_s10  ;;  %s3050_s16 = scalar_lea.hbm %s3341_s14, 512 }
  0x32   : > { %p3051_p13 = scmp.ne.s32.totalorder %s3341_s14, %s3050_s16  ;;  %p3052_p0 = pneg %p3343_p11 }
  0x33   : > { %s3055_s27 = scalar_lea.hbm %s5795_s0, 1024  ;;  %p3056_p7 = scmp.lt.u32.totalorder %s3341_s14, %s5795_s0 }
  0x34   : > { %p3053_p3 = pnand %p3052_p0, %p3051_p13  ;;  %p3057_p9 = scmp.lt.u32.totalorder %s3055_s27, %s3050_s16 }
  0x35   : > { %p3059_p1 = scmp.lt.u32.totalorder %s3050_s16, %s3341_s14 }
  0x36   : > { %p3054_p5 = pneg %p3053_p3  ;;  %p3058_p2 = por %p3057_p9, %p3056_p7 }
  0x38   : > { %p3060_p4 = por %p3059_p1, %p3058_p2 }
  0x3a   : > { %p3061_p6 = pnand %p3060_p4, %p3054_p5 }
  0x3c   : > { %3064 = shalt.err (!%p3061_p6)
}
  0x3d   : > { %s3065_s10 = scalar_lea.vmem %s3347_s6, 512  ;;  %s3155_s29 = smov [#allocation2]  }
  0x3e   : > { %p3066_p8 = scmp.ne.s32.totalorder %s3347_s6, %s3065_s10  ;;  %s3070_s13 = sshll.u32 %s3155_s29, 4  ;;  %s3071_s13 = int_to_ptr.vmem [resolvable:$false] %s3070_s13 }
  0x3f   : > { %s3072_s28 = scalar_lea.vmem %s3071_s13, 1024  ;;  %p3073_p3 = scmp.lt.s32.totalorder %s3347_s6, %s3071_s13 }
  0x40   : > { %p3068_p10 = pnand %p3066_p8, %p3052_p0  ;;  %p3074_p7 = scmp.lt.s32.totalorder %s3072_s28, %s3065_s10 }
  0x42   : > { %p3069_p13 = pneg %p3068_p10  ;;  %p3075_p9 = por %p3074_p7, %p3073_p3 }
  0x44   : > { %p3076_p2 = pnand %p3075_p9, %p3069_p13 }
  0x46   : > { %3079 = shalt.err (!%p3076_p2)
}
  0x47   : > { %s3156_s16 = smov 256   ;;  %s3157_s17 = smov 16  }
  0x48   : > { %2912 = dma.hbm_to_vmem [thread:$0]  (!%p3343_p11), %s3341_s14, 512, %s3347_s6, %s3349_s15, %s3156_s16, %s3156_s16, %s3157_s17  }
  0x49   : > { %p6002_p0 = scmp.ne.s32.totalorder %s5997_s26, 0 }
  0x4b   : > { %221 = sbr.rel (%p6002_p0) target bundleno = 1419 (0x58b), region = 40 }
  0x52   : > { %s3380_s23 = sand.u32 1, %s3142_s19   ;;  %p6003_p5 = scmp.ne.s32.totalorder %s5995_s24, 0 }
  0x53   : > { %s5804_s27 = sshll.u32 %s3380_s23, 5  ;;  %s224_s11 = scalar_lea.sflag [#allocation3], %s3380_s23 }
  0x54   : > { %s227_s12 = scalar_lea.vmem [#allocation2], %s5804_s27 }
  0x55   : > { %3125 = dma.done.wait (%p6003_p5), %s224_s11, 512  }
  0x56   : > { %3127 = vsyncadd (%p6003_p5), %s224_s11, 4294966784  ;;  %p6004_p11 = scmp.eq.s32.totalorder %s3262_s22, 0 }
  0x58   : > { %3129 = dma.done.wait (%p6004_p11), [#allocation6], 3584   ;;  %p6005_p1 = pmov %p6004_p11 }
  0x59   : > { %v3394_v0 = vld [vmem:[%s227_s12] sm:$0xff]  ;;  %v3396_v1 = vld [vmem:[%s227_s12 + $0x8] sm:$0xff]  ;;  %v3398_v2 = vld [vmem:[%s227_s12 + $0x10] sm:$0xff]  ;;  %v3158_v11 = vmov 0.0|0.0   ;;  %vm3159_vm0 = vmmov 0   ;;  %v3160_v12 = vmov 0.0   ;;  %v278_v13 = vlaneseq }
  0x5a   : > { %3131 = vsyncadd (%p6005_p1), [#allocation6], 4294963712  ;;  %v270_v3 = vmax.f32 %v3394_v0, %v3396_v1  ;;  %v262_v4 = vadd.f32 %v3396_v1, %v3394_v0  ;;  %v3404_v5 = vld [vmem:[%s227_s12 + $0x18] sm:$0xff]  ;;  %v306_v8 = vld [vmem:[%s5796_s1] sm:$0xff]  ;;  %2890 = vmatprep.subr.bf16.mxu0 %v3158_v11  ;;  %2882 = vmatprep.mubr.msk.f32.mxu0 %vm3159_vm0, %v3160_v12  ;;  %vm289_vm1 = vcmask 130112   ;;  %vm304_vm2 = vcmask 1040384  }
  0x5b   : > { %v273_v6 = vmax.f32 %v3398_v2, %v3404_v5  ;;  %v265_v7 = vadd.f32 %v3404_v5, %v3398_v2  ;;  %v307_v9 = vld [vmem:[%s5796_s1 + $0x8] sm:$0xff]  ;;  %2885 = vmatprep.subr.mxu1 %v3160_v12  ;;  %2887 = vmatprep.mubr.msk.f32.mxu1 %vm3159_vm0, %v3160_v12  ;;  %v3416_v14 = vand.u32 127, %v278_v13  ;;  %v3419_v16 = vshrl.u32 %v278_v13, 7  ;;  %v383_v32 = vld [vmem:[%s5797_s2] sm:$0x3]  ;;  %s3161_s13 = smov 51  }
  0x5c   : > { %271 = vmax.xlane.f32.xlu1 %v270_v3  ;;  %263 = vadd.xlane.f32.xlu0 %v262_v4  ;;  %v2891_v10 = vpack.c.bf16 %v307_v9, %v306_v8  ;;  %vm308_vm3 = vcmask 130048   ;;  %vm388_vm4 = vcmask 1041408   ;;  %vm384_vm5 = vcmask 15360   ;;  %v488_v60 = vld [vmem:[%s5799_s4] sm:$0x1]  ;;  %s3162_s28 = smov 50  }
  0x5d   : > { %v284_v15 = vadd.s32 4294967288, %v3416_v14  ;;  %v282_v20 = vsub.s32 %v3416_v14, %v3419_v16  ;;  %2886 = vmatpush3.msk.msra.mxu1 %vm388_vm4, %v383_v32  ;;  %v3429_v45 = vsub.s32 0, %v3419_v16  ;;  %s3163_s16 = smov 49   ;;  %s3164_s17 = smov 48   ;;  %vm585_vm6 = vcmp.lt.s32.totalorder %v3416_v14, 51 }
  0x5e   : > { %2892 = vmatpush3.bf16.msra.mxu0 %v2891_v10  ;;  %s3165_s11 = smov 47   ;;  %s3166_s12 = smov 46   ;;  %vm628_vm7 = vcmp.lt.s32.totalorder %v3416_v14, 50  ;;  %vm672_vm8 = vcmp.lt.s32.totalorder %v3416_v14, 49  ;;  %vm716_vm9 = vcmp.lt.s32.totalorder %v3416_v14, 48  ;;  %vm760_vm10 = vcmp.lt.s32.totalorder %v3416_v14, 47 }
  0x5f   : > { %v287_v19 = vsub.s32 %v284_v15, %v3419_v16  ;;  %s3167_s24 = smov 45   ;;  %s3168_s26 = smov 35   ;;  %vm804_vm11 = vcmp.lt.s32.totalorder %v3416_v14, 46  ;;  %vm848_vm12 = vcmp.lt.s32.totalorder %v3416_v14, 45  ;;  %vm892_vm13 = vcmp.lt.s32.totalorder %v3416_v14, 35 }
  0x60   : > { %274 = vmax.xlane.f32.xlu1 %v273_v6  ;;  %266 = vadd.xlane.f32.xlu0 %v265_v7  ;;  %s3169_s14 = smov 34   ;;  %s3170_s6 = smov 33   ;;  %vm936_vm14 = vcmp.lt.s32.totalorder %v3416_v14, 34  ;;  %vm980_vm15 = vcmp.lt.s32.totalorder %v3416_v14, 33  ;;  %vm1024_vm0 = vcmp.lt.s32.totalorder %v3416_v14, 32  ;;  %vm1200_vm4 = vcmp.lt.s32.totalorder %v3416_v14, 19 }
  0x61   : > { %s3171_s7 = smov 32   ;;  %s5805_s15 = smov 31  }
  0x62   : > { %s5807_s10 = smov 30   ;;  %s5809_s29 = smov 29  }
  0x63   : > { %s5811_s27 = smov 19  }
  0xe9   : > { %v272_v17 = vpop.xlane.xlu1 %271  ;;  %v264_v18 = vpop.xlane.xlu0 %263 }
  0xea   : > { %v268_v21 = vmul.f32 0.00390625, %v264_v18  ;;  %v297_v26 = vrot.slane %v272_v17, %v282_v20 }
  0xec   : > { %v283_v27 = vrot.slane %v268_v21, %v282_v20 }
  0xed   : > { %v275_v22 = vpop.xlane.xlu1 %274  ;;  %v267_v23 = vpop.xlane.xlu0 %266 }
  0xee   : > { %v301_v24 = vrot.slane %v275_v22, %v287_v19  ;;  %v269_v25 = vmul.f32 0.00390625, %v267_v23 }
  0xf0   : > { %v288_v28 = vrot.slane %v269_v25, %v287_v19  ;;  %v302_v30 = vsel %vm289_vm1, %v301_v24, %v297_v26 }
  0xf2   : > { %v290_v29 = vsel %vm289_vm1, %v288_v28, %v283_v27  ;;  %vm1068_vm1 = vcmp.lt.s32.totalorder %v3416_v14, 31 }
  0xf3   : > { %v305_v31 = vsel %vm304_vm2, %v290_v29, %v302_v30  ;;  %vm1112_vm2 = vcmp.lt.s32.totalorder %v3416_v14, 30 }
  0xf4   : > { %2883 = vmatmul.mubr.msk.f32.vlgmr.msra.gmra.mrb[0].mxu0 %vm308_vm3, %v305_v31 }
 0x1c7   : > { %v378_v33 = vpop.f32.mrb[0].mxu0 }
 0x1c8   : > { %v382_v34 = vmax.f32 %v378_v33, 0.0  ;;  %v2884_v35 = vpop.f32.mrb[1].mxu0 }
 0x1ca   : > { %2888 = vmatmul.mubr.msk.f32.vlgmr.msra.gmra.mrb[0].mxu1 %vm384_vm5, %v382_v34  ;;  %vm1244_vm5 = vcmp.lt.s32.totalorder %v3416_v14, 18 }
 0x1cb   : > { %556 = vmatprep.mubr.f32.mxu1 %v3160_v12 }
 0x29d   : > { %v458_v36 = vpop.f32.mrb[0].mxu1 }
 0x29e   : > { %v463_v37 = vrot.slane %v458_v36, 1  ;;  %v2889_v38 = vpop.f32.mrb[1].mxu1 }
 0x2a0   : > { %v465_v39 = vadd.f32 %v463_v37, %v458_v36 }
 0x2a2   : > { %v2862_v40 = vclamps-f32 %v465_v39, 30.0 }
 0x2a4   : > { %v468_v41 = vsub.f32 0.0, %v2862_v40 }
 0x2a6   : > { %v469_v42 = vmul.f32 1.442695, %v468_v41 }
 0x2a8   : > { %3010 = vpow2.f32 %v469_v42 }
 0x2b2   : > { %v3011_v43 = vpop.eup %3010 }
 0x2b3   : > { %v471_v44 = vadd.f32 1.0, %v3011_v43 }
 0x2b5   : > { %3012 = vrcp.f32 %v471_v44 }
 0x2bf   : > { %v3013_v46 = vpop.eup %3012 }
 0x2c0   : > { %v476_v47 = vrot.slane %v3013_v46, %v3429_v45 }
 0x2c2   : > { %482 = vbcast.lane.b32.xlu1 %v476_v47, 264  ;;  %478 = vbcast.lane.b32.xlu0 %v476_v47, 256 }
 0x334   : > { %v483_v48 = vpop.permute.xlu1 %482  ;;  %v479_v49 = vpop.permute.xlu0 %478 }
 0x335   : > { %v3433_v50 = vmul.f32 %v483_v48, %v3398_v2  ;;  %v3436_v51 = vmul.f32 %v483_v48, %v3404_v5  ;;  %v3439_v52 = vmul.f32 %v479_v49, %v3394_v0  ;;  %v3442_v53 = vmul.f32 %v479_v49, %v3396_v1 }
 0x337   : > { %6006 = vst [vmem:[#allocation11_spill] sm:$0xff] %v3433_v50  ;;  %6007 = vst [vmem:[#allocation12_spill] sm:$0xff] %v3436_v51  ;;  %v563_v54 = vmax.f32 %v3439_v52, %v3433_v50  ;;  %v570_v55 = vmax.f32 %v3442_v53, %v3436_v51  ;;  %v2893_v56 = vpack.c.bf16 %v3436_v51, %v3442_v53 }
 0x338   : > { %6008 = vst [vmem:[#allocation13_spill] sm:$0xff] %v3439_v52  ;;  %6009 = vst [vmem:[#allocation14_spill] sm:$0xff] %v3442_v53  ;;  %v2895_v57 = vpack.c.bf16 %v3433_v50, %v3439_v52 }
 0x339   : > { %v564_v58 = vrot.slane %v563_v54, 4  ;;  %v571_v59 = vrot.slane %v570_v55, 4  ;;  %2894 = vmatprep.subr.bf16.mxu1 %v2893_v56 }
 0x33a   : > { %2896 = vmatpush1.bf16.msra.mxu1 %v2895_v57 }
 0x33b   : > { %v565_v61 = vmax.f32 %v563_v54, %v564_v58  ;;  %v572_v62 = vmax.f32 %v570_v55, %v571_v59 }
 0x33d   : > { %v566_v63 = vrot.slane %v565_v61, 2  ;;  %v573_v0 = vrot.slane %v572_v62, 2  ;;  %2863 = vmatmul.mubr.msk.f32.vlgmr.msra.gmra.mrb[2].mxu1 %vm308_vm3, %v488_v60  ;;  %vm1156_vm3 = vcmp.lt.s32.totalorder %v3416_v14, 29 }
 0x33f   : > { %v567_v1 = vmax.f32 %v565_v61, %v566_v63  ;;  %v574_v2 = vmax.f32 %v572_v62, %v573_v0 }
 0x341   : > { %v568_v3 = vrot.slane %v567_v1, 1  ;;  %v575_v4 = vrot.slane %v574_v2, 1 }
 0x343   : > { %v3456_v5 = vmax.f32 %v567_v1, %v568_v3  ;;  %v3458_v6 = vmax.f32 %v574_v2, %v575_v4 }
 0x345   : > { %6010 = vst [vmem:[#allocation15_spill] sm:$0xff] %v3456_v5  ;;  %6011 = vst [vmem:[#allocation16_spill] sm:$0xff] %v3458_v6  ;;  %583 = vrot.lane.b32.xlu1 %v3458_v6, %s3161_s13  ;;  %581 = vrot.lane.b32.xlu0 %v3456_v5, %s3161_s13 }
 0x349   : > { %626 = vrot.lane.b32.xlu1 %v3458_v6, %s3162_s28  ;;  %624 = vrot.lane.b32.xlu0 %v3456_v5, %s3162_s28 }
 0x34d   : > { %670 = vrot.lane.b32.xlu1 %v3458_v6, %s3163_s16  ;;  %668 = vrot.lane.b32.xlu0 %v3456_v5, %s3163_s16 }
 0x351   : > { %714 = vrot.lane.b32.xlu1 %v3458_v6, %s3164_s17  ;;  %712 = vrot.lane.b32.xlu0 %v3456_v5, %s3164_s17 }
 0x355   : > { %758 = vrot.lane.b32.xlu1 %v3458_v6, %s3165_s11  ;;  %756 = vrot.lane.b32.xlu0 %v3456_v5, %s3165_s11 }
 0x359   : > { %802 = vrot.lane.b32.xlu1 %v3458_v6, %s3166_s12  ;;  %800 = vrot.lane.b32.xlu0 %v3456_v5, %s3166_s12 }
 0x35d   : > { %846 = vrot.lane.b32.xlu1 %v3458_v6, %s3167_s24  ;;  %844 = vrot.lane.b32.xlu0 %v3456_v5, %s3167_s24 }
 0x361   : > { %890 = vrot.lane.b32.xlu1 %v3458_v6, %s3168_s26  ;;  %888 = vrot.lane.b32.xlu0 %v3456_v5, %s3168_s26 }
 0x365   : > { %934 = vrot.lane.b32.xlu1 %v3458_v6, %s3169_s14  ;;  %932 = vrot.lane.b32.xlu0 %v3456_v5, %s3169_s14 }
 0x369   : > { %978 = vrot.lane.b32.xlu1 %v3458_v6, %s3170_s6  ;;  %976 = vrot.lane.b32.xlu0 %v3456_v5, %s3170_s6 }
 0x36d   : > { %1022 = vrot.lane.b32.xlu1 %v3458_v6, %s3171_s7  ;;  %1020 = vrot.lane.b32.xlu0 %v3456_v5, %s3171_s7 }
 0x371   : > { %1066 = vrot.lane.b32.xlu1 %v3458_v6, %s5805_s15  ;;  %1064 = vrot.lane.b32.xlu0 %v3456_v5, %s5805_s15  ;;  %s5813_s15 = smov 18  }
 0x375   : > { %1110 = vrot.lane.b32.xlu1 %v3458_v6, %s5807_s10  ;;  %1108 = vrot.lane.b32.xlu0 %v3456_v5, %s5807_s10  ;;  %s5815_s10 = smov 17  }
 0x379   : > { %1154 = vrot.lane.b32.xlu1 %v3458_v6, %s5809_s29  ;;  %1152 = vrot.lane.b32.xlu0 %v3456_v5, %s5809_s29  ;;  %s5817_s29 = smov 16  }
 0x37d   : > { %1198 = vrot.lane.b32.xlu1 %v3458_v6, %s5811_s27  ;;  %1196 = vrot.lane.b32.xlu0 %v3456_v5, %s5811_s27  ;;  %s5819_s27 = smov 15  }
 0x381   : > { %1242 = vrot.lane.b32.xlu1 %v3458_v6, %s5813_s15  ;;  %1240 = vrot.lane.b32.xlu0 %v3456_v5, %s5813_s15  ;;  %s5821_s15 = smov 14  }
 0x385   : > { %1286 = vrot.lane.b32.xlu1 %v3458_v6, %s5815_s10  ;;  %1284 = vrot.lane.b32.xlu0 %v3456_v5, %s5815_s10  ;;  %s5823_s10 = smov 13  }
 0x389   : > { %1330 = vrot.lane.b32.xlu1 %v3458_v6, %s5817_s29  ;;  %1328 = vrot.lane.b32.xlu0 %v3456_v5, %s5817_s29  ;;  %s5825_s29 = smov 3  }
 0x38d   : > { %1374 = vrot.lane.b32.xlu1 %v3458_v6, %s5819_s27  ;;  %1372 = vrot.lane.b32.xlu0 %v3456_v5, %s5819_s27  ;;  %s5827_s27 = smov 2  }
 0x391   : > { %1418 = vrot.lane.b32.xlu1 %v3458_v6, %s5821_s15  ;;  %1416 = vrot.lane.b32.xlu0 %v3456_v5, %s5821_s15  ;;  %s5829_s15 = smov 1  }
 0x395   : > { %1462 = vrot.lane.b32.xlu1 %v3458_v6, %s5823_s10  ;;  %1460 = vrot.lane.b32.xlu0 %v3456_v5, %s5823_s10  ;;  %s5831_s10 = smov 127  }
 0x399   : > { %1506 = vrot.lane.b32.xlu1 %v3458_v6, %s5825_s29  ;;  %1504 = vrot.lane.b32.xlu0 %v3456_v5, %s5825_s29  ;;  %s5833_s29 = smov 126  }
 0x39d   : > { %1550 = vrot.lane.b32.xlu1 %v3458_v6, %s5827_s27  ;;  %1548 = vrot.lane.b32.xlu0 %v3456_v5, %s5827_s27  ;;  %s3187_s27 = smov 125  }
 0x3a1   : > { %1594 = vrot.lane.b32.xlu1 %v3458_v6, %s5829_s15  ;;  %1592 = vrot.lane.b32.xlu0 %v3456_v5, %s5829_s15  ;;  %s5835_s15 = smov 115  }
 0x3a5   : > { %1669 = vrot.lane.b32.xlu1 %v3458_v6, %s5831_s10  ;;  %1667 = vrot.lane.b32.xlu0 %v3456_v5, %s5831_s10  ;;  %s5837_s10 = smov 114  }
 0x3a9   : > { %1713 = vrot.lane.b32.xlu1 %v3458_v6, %s5833_s29  ;;  %1711 = vrot.lane.b32.xlu0 %v3456_v5, %s5833_s29  ;;  %s5839_s29 = smov 113  }
 0x3ad   : > { %1757 = vrot.lane.b32.xlu1 %v3458_v6, %s3187_s27  ;;  %1755 = vrot.lane.b32.xlu0 %v3456_v5, %s3187_s27 }
 0x3b1   : > { %1801 = vrot.lane.b32.xlu1 %v3458_v6, %s5835_s15  ;;  %1799 = vrot.lane.b32.xlu0 %v3456_v5, %s5835_s15  ;;  %s5841_s15 = smov 112  }
 0x3b5   : > { %1845 = vrot.lane.b32.xlu1 %v3458_v6, %s5837_s10  ;;  %1843 = vrot.lane.b32.xlu0 %v3456_v5, %s5837_s10  ;;  %s5843_s10 = smov 111  }
 0x3b7   : > { %v3576_v7 = vpop.permute.xlu1 %583  ;;  %v3578_v8 = vpop.permute.xlu0 %581 }
 0x3b9   : > { %1889 = vrot.lane.b32.xlu1 %v3458_v6, %s5839_s29  ;;  %1887 = vrot.lane.b32.xlu0 %v3456_v5, %s5839_s29  ;;  %s5845_s29 = smov 110  }
 0x3bb   : > { %v3584_v9 = vpop.permute.xlu1 %626  ;;  %v3586_v10 = vpop.permute.xlu0 %624 }
 0x3bd   : > { %1933 = vrot.lane.b32.xlu1 %v3458_v6, %s5841_s15  ;;  %1931 = vrot.lane.b32.xlu0 %v3456_v5, %s5841_s15  ;;  %s5847_s15 = smov 109  }
 0x3bf   : > { %v3592_v11 = vpop.permute.xlu1 %670  ;;  %v3594_v12 = vpop.permute.xlu0 %668 }
 0x3c1   : > { %1977 = vrot.lane.b32.xlu1 %v3458_v6, %s5843_s10  ;;  %1975 = vrot.lane.b32.xlu0 %v3456_v5, %s5843_s10  ;;  %s5849_s10 = smov 99  }
 0x3c3   : > { %v3600_v13 = vpop.permute.xlu1 %714  ;;  %v3602_v15 = vpop.permute.xlu0 %712 }
 0x3c5   : > { %2021 = vrot.lane.b32.xlu1 %v3458_v6, %s5845_s29  ;;  %2019 = vrot.lane.b32.xlu0 %v3456_v5, %s5845_s29  ;;  %s5851_s29 = smov 98  }
 0x3c7   : > { %v3608_v17 = vpop.permute.xlu1 %758  ;;  %v3610_v18 = vpop.permute.xlu0 %756 }
 0x3c9   : > { %2065 = vrot.lane.b32.xlu1 %v3458_v6, %s5847_s15  ;;  %2063 = vrot.lane.b32.xlu0 %v3456_v5, %s5847_s15  ;;  %s5853_s15 = smov 97  }
 0x3cb   : > { %v3616_v19 = vpop.permute.xlu1 %802  ;;  %v3618_v20 = vpop.permute.xlu0 %800 }
 0x3cd   : > { %2109 = vrot.lane.b32.xlu1 %v3458_v6, %s5849_s10  ;;  %2107 = vrot.lane.b32.xlu0 %v3456_v5, %s5849_s10  ;;  %s5855_s10 = smov 96  }
 0x3cf   : > { %v3624_v21 = vpop.permute.xlu1 %846  ;;  %v3626_v22 = vpop.permute.xlu0 %844 }
 0x3d1   : > { %2153 = vrot.lane.b32.xlu1 %v3458_v6, %s5851_s29  ;;  %2151 = vrot.lane.b32.xlu0 %v3456_v5, %s5851_s29  ;;  %s5857_s29 = smov 95  }
 0x3d3   : > { %v3632_v23 = vpop.permute.xlu1 %890  ;;  %v3634_v24 = vpop.permute.xlu0 %888 }
 0x3d5   : > { %2197 = vrot.lane.b32.xlu1 %v3458_v6, %s5853_s15  ;;  %2195 = vrot.lane.b32.xlu0 %v3456_v5, %s5853_s15  ;;  %s5859_s15 = smov 94  }
 0x3d7   : > { %v3640_v25 = vpop.permute.xlu1 %934  ;;  %v3642_v26 = vpop.permute.xlu0 %932 }
 0x3d9   : > { %2241 = vrot.lane.b32.xlu1 %v3458_v6, %s5855_s10  ;;  %2239 = vrot.lane.b32.xlu0 %v3456_v5, %s5855_s10  ;;  %s5861_s10 = smov 93  }
 0x3db   : > { %v3648_v27 = vpop.permute.xlu1 %978  ;;  %v3650_v28 = vpop.permute.xlu0 %976 }
 0x3dc   : > { %6012 = vst [vmem:[#allocation17_spill] sm:$0xff] %v3650_v28 }
 0x3dd   : > { %2285 = vrot.lane.b32.xlu1 %v3458_v6, %s5857_s29  ;;  %2283 = vrot.lane.b32.xlu0 %v3456_v5, %s5857_s29  ;;  %s5863_s29 = smov 83  }
 0x3df   : > { %v3656_v29 = vpop.permute.xlu1 %1022  ;;  %v3658_v30 = vpop.permute.xlu0 %1020 }
 0x3e0   : > { %6013 = vst [vmem:[#allocation18_spill] sm:$0xff] %v3658_v30 }
 0x3e1   : > { %2329 = vrot.lane.b32.xlu1 %v3458_v6, %s5859_s15  ;;  %2327 = vrot.lane.b32.xlu0 %v3456_v5, %s5859_s15  ;;  %s5865_s15 = smov 82  }
 0x3e3   : > { %v3664_v31 = vpop.permute.xlu1 %1066  ;;  %v3666_v32 = vpop.permute.xlu0 %1064 }
 0x3e4   : > { %6014 = vst [vmem:[#allocation19_spill] sm:$0xff] %v3664_v31  ;;  %6015 = vst [vmem:[#allocation20_spill] sm:$0xff] %v3666_v32 }
 0x3e5   : > { %2373 = vrot.lane.b32.xlu1 %v3458_v6, %s5861_s10  ;;  %2371 = vrot.lane.b32.xlu0 %v3456_v5, %s5861_s10  ;;  %s5867_s10 = smov 81  }
 0x3e7   : > { %v3672_v33 = vpop.permute.xlu1 %1110  ;;  %v3674_v34 = vpop.permute.xlu0 %1108 }
 0x3e8   : > { %6016 = vst [vmem:[#allocation21_spill] sm:$0xff] %v3672_v33  ;;  %6017 = vst [vmem:[#allocation22_spill] sm:$0xff] %v3674_v34 }
 0x3e9   : > { %2417 = vrot.lane.b32.xlu1 %v3458_v6, %s5863_s29  ;;  %2415 = vrot.lane.b32.xlu0 %v3456_v5, %s5863_s29  ;;  %s3205_s29 = smov 80  }
 0x3eb   : > { %v3680_v35 = vpop.permute.xlu1 %1154  ;;  %v3682_v36 = vpop.permute.xlu0 %1152 }
 0x3ec   : > { %6018 = vst [vmem:[#allocation23_spill] sm:$0xff] %v3680_v35  ;;  %6019 = vst [vmem:[#allocation24_spill] sm:$0xff] %v3682_v36 }
 0x3ed   : > { %2461 = vrot.lane.b32.xlu1 %v3458_v6, %s5865_s15  ;;  %2459 = vrot.lane.b32.xlu0 %v3456_v5, %s5865_s15  ;;  %s3206_s15 = smov 79  }
 0x3ef   : > { %v3688_v37 = vpop.permute.xlu1 %1198  ;;  %v3690_v38 = vpop.permute.xlu0 %1196 }
 0x3f0   : > { %6020 = vst [vmem:[#allocation25_spill] sm:$0xff] %v3688_v37  ;;  %6021 = vst [vmem:[#allocation26_spill] sm:$0xff] %v3690_v38 }
 0x3f1   : > { %2505 = vrot.lane.b32.xlu1 %v3458_v6, %s5867_s10  ;;  %2503 = vrot.lane.b32.xlu0 %v3456_v5, %s5867_s10  ;;  %s3207_s10 = smov 78  }
 0x3f3   : > { %v3696_v39 = vpop.permute.xlu1 %1242  ;;  %v3698_v40 = vpop.permute.xlu0 %1240 }
 0x3f4   : > { %6022 = vst [vmem:[#allocation27_spill] sm:$0xff] %v3696_v39  ;;  %6023 = vst [vmem:[#allocation28_spill] sm:$0xff] %v3698_v40 }
 0x3f5   : > { %2549 = vrot.lane.b32.xlu1 %v3458_v6, %s3205_s29  ;;  %2547 = vrot.lane.b32.xlu0 %v3456_v5, %s3205_s29 }
 0x3f7   : > { %v3704_v41 = vpop.permute.xlu1 %1286  ;;  %v3706_v42 = vpop.permute.xlu0 %1284 }
 0x3f8   : > { %6024 = vst [vmem:[#allocation29_spill] sm:$0xff] %v3704_v41  ;;  %6025 = vst [vmem:[#allocation30_spill] sm:$0xff] %v3706_v42  ;;  %v4015_v42 = vld [vmem:[#allocation5 + $0x22] ss:$8 sm:$0xf] }
 0x3f9   : > { %2593 = vrot.lane.b32.xlu1 %v3458_v6, %s3206_s15  ;;  %2591 = vrot.lane.b32.xlu0 %v3456_v5, %s3206_s15 }
 0x3fb   : > { %v3712_v43 = vpop.permute.xlu1 %1330  ;;  %v3714_v44 = vpop.permute.xlu0 %1328 }
 0x3fc   : > { %6026 = vst [vmem:[#allocation31_spill] sm:$0xff] %v3712_v43  ;;  %6027 = vst [vmem:[#allocation32_spill] sm:$0xff] %v3714_v44 }
 0x3fd   : > { %2637 = vrot.lane.b32.xlu1 %v3458_v6, %s3207_s10  ;;  %2635 = vrot.lane.b32.xlu0 %v3456_v5, %s3207_s10 }
 0x3ff   : > { %v3720_v46 = vpop.permute.xlu1 %1374  ;;  %v3722_v47 = vpop.permute.xlu0 %1372 }
 0x400   : > { %6028 = vst [vmem:[#allocation33_spill] sm:$0xff] %v3720_v46  ;;  %6029 = vst [vmem:[#allocation34_spill] sm:$0xff] %v3722_v47  ;;  %v4001_v47 = vld [vmem:[#allocation5 + $0x20] ss:$8 sm:$0xf] }
 0x401   : > { %v4003_v46 = vld [vmem:[#allocation5 + $0x21] ss:$8 sm:$0xf] }
 0x403   : > { %v3724_v48 = vpop.permute.xlu1 %1418  ;;  %v3726_v49 = vpop.permute.xlu0 %1416 }
 0x404   : > { %6030 = vst [vmem:[#allocation35_spill] sm:$0xff] %v3724_v48  ;;  %6031 = vst [vmem:[#allocation36_spill] sm:$0xff] %v3726_v49  ;;  %v3993_v49 = vld [vmem:[#allocation5 + $0x6] ss:$8 sm:$0xf] }
 0x407   : > { %v3728_v54 = vpop.permute.xlu1 %1462  ;;  %v3730_v55 = vpop.permute.xlu0 %1460 }
 0x408   : > { %6032 = vst [vmem:[#allocation37_spill] sm:$0xff] %v3728_v54  ;;  %6033 = vst [vmem:[#allocation38_spill] sm:$0xff] %v3730_v55 }
 0x40b   : > { %v3732_v56 = vpop.permute.xlu1 %1506  ;;  %v3734_v57 = vpop.permute.xlu0 %1504 }
 0x40c   : > { %6034 = vst [vmem:[#allocation39_spill] sm:$0xff] %v3732_v56  ;;  %6035 = vst [vmem:[#allocation40_spill] sm:$0xff] %v3734_v57  ;;  %v3977_v57 = vld [vmem:[#allocation5 + $0x4] ss:$8 sm:$0xf] }
 0x40d   : > { %v3995_v56 = vld [vmem:[#allocation5 + $0x7] ss:$8 sm:$0xf] }
 0x40f   : > { %v3736_v58 = vpop.permute.xlu1 %1550  ;;  %v3738_v59 = vpop.permute.xlu0 %1548 }
 0x410   : > { %6036 = vst [vmem:[#allocation41_spill] sm:$0xff] %v3736_v58  ;;  %6037 = vst [vmem:[#allocation42_spill] sm:$0xff] %v3738_v59  ;;  %v3740_v60 = vpop.f32.mrb[2].mxu1  ;;  %v3975_v59 = vld [vmem:[#allocation5 + $0x3] ss:$8 sm:$0xf] }
 0x411   : > { %620 = vrot.lane.b32.xlu0 %v3740_v60, %s3162_s28  ;;  %577 = vrot.lane.b32.xlu1 %v3740_v60, %s3161_s13  ;;  %v3746_v61 = vpop.f32.mrb[3].mxu1 }
 0x413   : > { %v3748_v62 = vpop.permute.xlu1 %1594  ;;  %v3750_v63 = vpop.permute.xlu0 %1592 }
 0x414   : > { %6038 = vst [vmem:[#allocation43_spill] sm:$0xff] %v3748_v62  ;;  %6039 = vst [vmem:[#allocation44_spill] sm:$0xff] %v3750_v63  ;;  %v3979_v62 = vld [vmem:[#allocation5 + $0x5] ss:$8 sm:$0xf] }
 0x415   : > { %664 = vrot.lane.b32.xlu0 %v3740_v60, %s3163_s16  ;;  %579 = vrot.lane.b32.xlu1 %v3746_v61, %s3161_s13  ;;  %s6058_s13 = smov 31  }
 0x417   : > { %v3756_v0 = vpop.permute.xlu1 %1669  ;;  %v3758_v1 = vpop.permute.xlu0 %1667 }
 0x418   : > { %6040 = vst [vmem:[#allocation45_spill] sm:$0xff] %v3756_v0  ;;  %6041 = vst [vmem:[#allocation46_spill] sm:$0xff] %v3758_v1 }
 0x419   : > { %708 = vrot.lane.b32.xlu0 %v3740_v60, %s3164_s17  ;;  %622 = vrot.lane.b32.xlu1 %v3746_v61, %s3162_s28  ;;  %s6061_s28 = smov 30  }
 0x41b   : > { %v3764_v2 = vpop.permute.xlu1 %1713  ;;  %v3766_v3 = vpop.permute.xlu0 %1711 }
 0x41c   : > { %6042 = vst [vmem:[#allocation47_spill] sm:$0xff] %v3764_v2  ;;  %6043 = vst [vmem:[#allocation48_spill] sm:$0xff] %v3766_v3  ;;  %v3963_v3 = vld [vmem:[#allocation5 + $0x1] ss:$8 sm:$0xf] }
 0x41d   : > { %752 = vrot.lane.b32.xlu0 %v3740_v60, %s3165_s11  ;;  %666 = vrot.lane.b32.xlu1 %v3746_v61, %s3163_s16  ;;  %s6064_s16 = smov 29  }
 0x41f   : > { %v3772_v4 = vpop.permute.xlu1 %1757  ;;  %v3774_v51 = vpop.permute.xlu0 %1755 }
 0x420   : > { %6044 = vst [vmem:[#allocation49_spill] sm:$0xff] %v3772_v4  ;;  %6045 = vst [vmem:[#allocation50_spill] sm:$0xff] %v3774_v51 }
 0x421   : > { %796 = vrot.lane.b32.xlu0 %v3740_v60, %s3166_s12  ;;  %710 = vrot.lane.b32.xlu1 %v3746_v61, %s3164_s17  ;;  %s6067_s17 = smov 19  }
 0x423   : > { %v3780_v53 = vpop.permute.xlu1 %1801  ;;  %v3782_v50 = vpop.permute.xlu0 %1799 }
 0x424   : > { %6046 = vst [vmem:[#allocation51_spill] sm:$0xff] %v3780_v53  ;;  %6047 = vst [vmem:[#allocation52_spill] sm:$0xff] %v3782_v50 }
 0x425   : > { %840 = vrot.lane.b32.xlu0 %v3740_v60, %s3167_s24  ;;  %754 = vrot.lane.b32.xlu1 %v3746_v61, %s3165_s11  ;;  %s6070_s11 = smov 18  }
 0x427   : > { %v3788_v52 = vpop.permute.xlu1 %1845  ;;  %v3790_v4 = vpop.permute.xlu0 %1843 }
 0x428   : > { %6048 = vst [vmem:[#allocation53_spill] sm:$0xff] %v3788_v52  ;;  %6049 = vst [vmem:[#allocation54_spill] sm:$0xff] %v3790_v4 }
 0x429   : > { %884 = vrot.lane.b32.xlu0 %v3740_v60, %s3168_s26  ;;  %798 = vrot.lane.b32.xlu1 %v3746_v61, %s3166_s12  ;;  %s6073_s12 = smov 17  }
 0x42b   : > { %v3796_v51 = vpop.permute.xlu1 %1889  ;;  %v3798_v53 = vpop.permute.xlu0 %1887 }
 0x42c   : > { %6050 = vst [vmem:[#allocation55_spill] sm:$0xff] %v3796_v51  ;;  %6051 = vst [vmem:[#allocation56_spill] sm:$0xff] %v3798_v53 }
 0x42d   : > { %928 = vrot.lane.b32.xlu0 %v3740_v60, %s3169_s14  ;;  %842 = vrot.lane.b32.xlu1 %v3746_v61, %s3167_s24  ;;  %s6076_s24 = smov 16  }
 0x42f   : > { %v3804_v50 = vpop.permute.xlu1 %1933  ;;  %v3806_v52 = vpop.permute.xlu0 %1931 }
 0x430   : > { %6052 = vst [vmem:[#allocation57_spill] sm:$0xff] %v3804_v50  ;;  %6053 = vst [vmem:[#allocation58_spill] sm:$0xff] %v3806_v52 }
 0x431   : > { %972 = vrot.lane.b32.xlu0 %v3740_v60, %s3170_s6  ;;  %886 = vrot.lane.b32.xlu1 %v3746_v61, %s3168_s26  ;;  %s6079_s26 = smov 15  }
 0x433   : > { %v3812_v4 = vpop.permute.xlu1 %1977  ;;  %v3814_v51 = vpop.permute.xlu0 %1975 }
 0x434   : > { %6054 = vst [vmem:[#allocation59_spill] sm:$0xff] %v3812_v4  ;;  %6055 = vst [vmem:[#allocation60_spill] sm:$0xff] %v3814_v51 }
 0x435   : > { %1016 = vrot.lane.b32.xlu0 %v3740_v60, %s3171_s7  ;;  %930 = vrot.lane.b32.xlu1 %v3746_v61, %s3169_s14  ;;  %s6080_s14 = smov 14  }
 0x437   : > { %v3820_v53 = vpop.permute.xlu1 %2021  ;;  %v3822_v50 = vpop.permute.xlu0 %2019 }
 0x438   : > { %6056 = vst [vmem:[#allocation61_spill] sm:$0xff] %v3820_v53  ;;  %6057 = vst [vmem:[#allocation62_spill] sm:$0xff] %v3822_v50 }
 0x439   : > { %1060 = vrot.lane.b32.xlu0 %v3740_v60, %s6058_s13  ;;  %974 = vrot.lane.b32.xlu1 %v3746_v61, %s3170_s6  ;;  %s6083_s6 = smov 13  }
 0x43b   : > { %v3828_v52 = vpop.permute.xlu1 %2065  ;;  %v3830_v4 = vpop.permute.xlu0 %2063 }
 0x43c   : > { %6059 = vst [vmem:[#allocation63_spill] sm:$0xff] %v3828_v52  ;;  %6060 = vst [vmem:[#allocation64_spill] sm:$0xff] %v3830_v4 }
 0x43d   : > { %1104 = vrot.lane.b32.xlu0 %v3740_v60, %s6061_s28  ;;  %1018 = vrot.lane.b32.xlu1 %v3746_v61, %s3171_s7  ;;  %s6086_s7 = smov 3  }
 0x43f   : > { %v3836_v51 = vpop.permute.xlu1 %2109  ;;  %v3838_v53 = vpop.permute.xlu0 %2107 }
 0x440   : > { %6062 = vst [vmem:[#allocation65_spill] sm:$0xff] %v3836_v51  ;;  %6063 = vst [vmem:[#allocation66_spill] sm:$0xff] %v3838_v53 }
 0x441   : > { %1148 = vrot.lane.b32.xlu0 %v3740_v60, %s6064_s16  ;;  %1062 = vrot.lane.b32.xlu1 %v3746_v61, %s6058_s13  ;;  %s6087_s13 = smov 2  }
 0x443   : > { %v3844_v50 = vpop.permute.xlu1 %2153  ;;  %v3846_v52 = vpop.permute.xlu0 %2151 }
 0x444   : > { %6065 = vst [vmem:[#allocation67_spill] sm:$0xff] %v3844_v50  ;;  %6066 = vst [vmem:[#allocation68_spill] sm:$0xff] %v3846_v52 }
 0x445   : > { %1192 = vrot.lane.b32.xlu0 %v3740_v60, %s6067_s17  ;;  %1106 = vrot.lane.b32.xlu1 %v3746_v61, %s6061_s28  ;;  %s6090_s28 = smov 1  }
 0x447   : > { %v3852_v4 = vpop.permute.xlu1 %2197  ;;  %v3854_v51 = vpop.permute.xlu0 %2195 }
 0x448   : > { %6068 = vst [vmem:[#allocation69_spill] sm:$0xff] %v3852_v4  ;;  %6069 = vst [vmem:[#allocation70_spill] sm:$0xff] %v3854_v51 }
 0x449   : > { %1236 = vrot.lane.b32.xlu0 %v3740_v60, %s6070_s11  ;;  %1150 = vrot.lane.b32.xlu1 %v3746_v61, %s6064_s16  ;;  %s6093_s16 = smov 127  }
 0x44b   : > { %v3860_v53 = vpop.permute.xlu1 %2241  ;;  %v3862_v50 = vpop.permute.xlu0 %2239 }
 0x44c   : > { %6071 = vst [vmem:[#allocation71_spill] sm:$0xff] %v3860_v53  ;;  %6072 = vst [vmem:[#allocation72_spill] sm:$0xff] %v3862_v50  ;;  %v3950_v50 = vld [vmem:[#allocation5 + $0x60] ss:$8 sm:$0xf] }
 0x44d   : > { %1280 = vrot.lane.b32.xlu0 %v3740_v60, %s6073_s12  ;;  %1194 = vrot.lane.b32.xlu1 %v3746_v61, %s6067_s17  ;;  %s6094_s17 = smov 126   ;;  %6101 = vst [vmem:[#allocation90_spill] sm:$0xff] %v3950_v50 }
 0x44f   : > { %v3868_v52 = vpop.permute.xlu1 %2285  ;;  %v3870_v4 = vpop.permute.xlu0 %2283 }
 0x450   : > { %6074 = vst [vmem:[#allocation73_spill] sm:$0xff] %v3868_v52  ;;  %6075 = vst [vmem:[#allocation74_spill] sm:$0xff] %v3870_v4 }
 0x451   : > { %1324 = vrot.lane.b32.xlu0 %v3740_v60, %s6076_s24  ;;  %1238 = vrot.lane.b32.xlu1 %v3746_v61, %s6070_s11  ;;  %s6099_s11 = smov 115  }
 0x453   : > { %v3876_v51 = vpop.permute.xlu1 %2329  ;;  %v3878_v53 = vpop.permute.xlu0 %2327 }
 0x454   : > { %6077 = vst [vmem:[#allocation75_spill] sm:$0xff] %v3876_v51  ;;  %6078 = vst [vmem:[#allocation76_spill] sm:$0xff] %v3878_v53 }
 0x455   : > { %1368 = vrot.lane.b32.xlu0 %v3740_v60, %s6079_s26  ;;  %1282 = vrot.lane.b32.xlu1 %v3746_v61, %s6073_s12  ;;  %s6102_s12 = smov 114  }
 0x457   : > { %v3888_v4 = vpop.permute.xlu1 %2373  ;;  %v3890_v52 = vpop.permute.xlu0 %2371 }
 0x458   : > { %6081 = vst [vmem:[#allocation77_spill] sm:$0xff] %v3888_v4  ;;  %6082 = vst [vmem:[#allocation78_spill] sm:$0xff] %v3890_v52 }
 0x459   : > { %1412 = vrot.lane.b32.xlu0 %v3740_v60, %s6080_s14  ;;  %1326 = vrot.lane.b32.xlu1 %v3746_v61, %s6076_s24 }
 0x45b   : > { %v3896_v53 = vpop.permute.xlu1 %2417  ;;  %v3898_v51 = vpop.permute.xlu0 %2415 }
 0x45c   : > { %6084 = vst [vmem:[#allocation79_spill] sm:$0xff] %v3896_v53  ;;  %6085 = vst [vmem:[#allocation80_spill] sm:$0xff] %v3898_v51 }
 0x45d   : > { %1456 = vrot.lane.b32.xlu0 %v3740_v60, %s6083_s6  ;;  %1370 = vrot.lane.b32.xlu1 %v3746_v61, %s6079_s26  ;;  %s6108_s26 = smov 112  }
 0x45f   : > { %v3908_v52 = vpop.permute.xlu1 %2461  ;;  %v3910_v4 = vpop.permute.xlu0 %2459 }
 0x460   : > { %6088 = vst [vmem:[#allocation81_spill] sm:$0xff] %v3908_v52  ;;  %6089 = vst [vmem:[#allocation82_spill] sm:$0xff] %v3910_v4 }
 0x461   : > { %1500 = vrot.lane.b32.xlu0 %v3740_v60, %s6086_s7  ;;  %1414 = vrot.lane.b32.xlu1 %v3746_v61, %s6080_s14  ;;  %s6111_s14 = smov 111  }
 0x463   : > { %v3916_v51 = vpop.permute.xlu1 %2505  ;;  %v3918_v53 = vpop.permute.xlu0 %2503 }
 0x464   : > { %6091 = vst [vmem:[#allocation83_spill] sm:$0xff] %v3916_v51  ;;  %6092 = vst [vmem:[#allocation84_spill] sm:$0xff] %v3918_v53 }
 0x465   : > { %1544 = vrot.lane.b32.xlu0 %v3740_v60, %s6087_s13  ;;  %1458 = vrot.lane.b32.xlu1 %v3746_v61, %s6083_s6  ;;  %s6112_s6 = smov 110  }
 0x467   : > { %v3928_v4 = vpop.permute.xlu1 %2549  ;;  %v3930_v52 = vpop.permute.xlu0 %2547 }
 0x468   : > { %6095 = vst [vmem:[#allocation85_spill] sm:$0xff] %v3928_v4  ;;  %6096 = vst [vmem:[#allocation86_spill] sm:$0xff] %v3930_v52  ;;  %v3945_v4 = vsub.s32 2, %v3419_v16  ;;  %v3948_v52 = vsub.s32 3, %v3419_v16 }
 0x469   : > { %1588 = vrot.lane.b32.xlu0 %v3740_v60, %s6090_s28  ;;  %1502 = vrot.lane.b32.xlu1 %v3746_v61, %s6086_s7  ;;  %s6113_s7 = smov 109  }
 0x46a   : > { %6100 = vst [vmem:[#allocation89_spill] sm:$0xff] %v3945_v4  ;;  %v1650_v0 = vrot.slane %v3950_v50, %v3948_v52  ;;  %v1646_v63 = vrot.slane %v3950_v50, %v3945_v4  ;;  %v647_v36 = vrot.slane %v3963_v3, %v3945_v4 }
 0x46b   : > { %v3936_v53 = vpop.permute.xlu1 %2593  ;;  %v3938_v51 = vpop.permute.xlu0 %2591 }
 0x46c   : > { %6097 = vst [vmem:[#allocation87_spill] sm:$0xff] %v3936_v53  ;;  %6098 = vst [vmem:[#allocation88_spill] sm:$0xff] %v3938_v51  ;;  %v3957_v51 = vsub.s32 1, %v3419_v16  ;;  %v3959_v53 = vld [vmem:[#allocation5] ss:$8 sm:$0xf]  ;;  %v4006_v55 = vmul.f32 %v1650_v0, %v3458_v6  ;;  %v4009_v58 = vmul.f32 %v1646_v63, %v3456_v5 }
 0x46d   : > { %1663 = vrot.lane.b32.xlu0 %v3740_v60, %s6093_s16  ;;  %1546 = vrot.lane.b32.xlu1 %v3746_v61, %s6087_s13  ;;  %v3973_v16 = vld [vmem:[#allocation5 + $0x2] ss:$8 sm:$0xf]  ;;  %v4044_v5 = vld [vmem:[#allocation5 + $0x25] ss:$8 sm:$0xf] }
 0x46e   : > { %6106 = vst [vmem:[#allocation93_spill] sm:$0xff] %v4006_v55  ;;  %6107 = vst [vmem:[#allocation94_spill] sm:$0xff] %v4009_v58  ;;  %v683_v54 = vrot.slane %v3973_v16, %v3429_v45  ;;  %v599_v50 = vrot.slane %v3959_v53, %v3957_v51  ;;  %v603_v58 = vrot.slane %v3959_v53, %v3945_v4  ;;  %s6114_s13 = smov 99  }
 0x46f   : > { %v3965_v2 = vpop.permute.xlu1 %2637  ;;  %v3967_v1 = vpop.permute.xlu0 %2635  ;;  %6110 = vst [vmem:[#allocation96_spill] sm:$0xff] %v4044_v5  ;;  %v643_v41 = vrot.slane %v3963_v3, %v3957_v51  ;;  %v691_v32 = vrot.slane %v3973_v16, %v3945_v4 }
 0x470   : > { %6103 = vst [vmem:[#allocation91_spill] sm:$0xff] %v3965_v2  ;;  %6104 = vst [vmem:[#allocation92_spill] sm:$0xff] %v3967_v1  ;;  %v639_v1 = vrot.slane %v3963_v3, %v3429_v45  ;;  %v595_v2 = vrot.slane %v3959_v53, %v3429_v45 }
 0x471   : > { %1707 = vrot.lane.b32.xlu0 %v3740_v60, %s6094_s17  ;;  %1590 = vrot.lane.b32.xlu1 %v3746_v61, %s6090_s28  ;;  %s6117_s28 = smov 98  }
 0x475   : > { %1751 = vrot.lane.b32.xlu0 %v3740_v60, %s3187_s27  ;;  %1665 = vrot.lane.b32.xlu1 %v3746_v61, %s6093_s16  ;;  %s6119_s16 = smov 97  }
 0x479   : > { %1795 = vrot.lane.b32.xlu0 %v3740_v60, %s6099_s11  ;;  %1709 = vrot.lane.b32.xlu1 %v3746_v61, %s6094_s17  ;;  %s6121_s17 = smov 96  }
 0x47d   : > { %1839 = vrot.lane.b32.xlu0 %v3740_v60, %s6102_s12  ;;  %1753 = vrot.lane.b32.xlu1 %v3746_v61, %s3187_s27  ;;  %s6105_s27 = smov 113  }
 0x481   : > { %1883 = vrot.lane.b32.xlu0 %v3740_v60, %s6105_s27  ;;  %1797 = vrot.lane.b32.xlu1 %v3746_v61, %s6099_s11  ;;  %s6123_s11 = smov 95  }
 0x483   : > { %v621_v44 = vpop.permute.xlu0 %620  ;;  %v578_v43 = vpop.permute.xlu1 %577 }
 0x484   : > { %v632_v48 = vsel %vm628_vm7, %v3584_v9, %v621_v44  ;;  %v589_v0 = vsel %vm585_vm6, %v3576_v7, %v578_v43 }
 0x485   : > { %v656_v63 = vmul.f32 %v639_v1, %v632_v48  ;;  %v612_v55 = vmul.f32 %v595_v2, %v589_v0  ;;  %1927 = vrot.lane.b32.xlu0 %v3740_v60, %s6108_s26  ;;  %1841 = vrot.lane.b32.xlu1 %v3746_v61, %s6102_s12  ;;  %v4038_v1 = vld [vmem:[#allocation5 + $0x23] ss:$8 sm:$0xf]  ;;  %v4042_v0 = vld [vmem:[#allocation5 + $0x24] ss:$8 sm:$0xf]  ;;  %v727_v48 = vrot.slane %v3975_v59, %v3429_v45 }
 0x486   : > { %6109 = vst [vmem:[#allocation95_spill] sm:$0xff] %v4042_v0  ;;  %v731_v0 = vrot.slane %v3975_v59, %v3957_v51  ;;  %s6125_s12 = smov 94  }
 0x487   : > { %v665_v40 = vpop.permute.xlu0 %664  ;;  %v580_v6 = vpop.permute.xlu1 %579  ;;  %v660_v39 = vadd.f32 %v656_v63, %v612_v55  ;;  %v4081_v63 = vld [vmem:[#allocation5 + $0x40] ss:$8 sm:$0xf] }
 0x488   : > { %v676_v38 = vsel %vm672_vm8, %v3592_v11, %v665_v40  ;;  %v588_v2 = vsel %vm585_vm6, %v578_v43, %v580_v6  ;;  %v587_v37 = vsel %vm585_vm6, %v580_v6, %v3578_v8  ;;  %v771_v6 = vrot.slane %v3977_v57, %v3429_v45 }
 0x489   : > { %v700_v34 = vmul.f32 %v683_v54, %v676_v38  ;;  %1971 = vrot.lane.b32.xlu0 %v3740_v60, %s6111_s14  ;;  %1885 = vrot.lane.b32.xlu1 %v3746_v61, %s6105_s27  ;;  %v4075_v38 = vld [vmem:[#allocation5 + $0x26] ss:$8 sm:$0xf]  ;;  %v4079_v54 = vld [vmem:[#allocation5 + $0x27] ss:$8 sm:$0xf]  ;;  %v613_v30 = vmul.f32 %v599_v50, %v588_v2  ;;  %v687_v43 = vrot.slane %v3973_v16, %v3957_v51 }
 0x48a   : > { %v614_v55 = vmul.f32 %v603_v58, %v587_v37  ;;  %s6130_s27 = smov 93  }
 0x48b   : > { %v704_v35 = vadd.f32 %v700_v34, %v660_v39  ;;  %v709_v33 = vpop.permute.xlu0 %708  ;;  %v623_v28 = vpop.permute.xlu1 %622 }
 0x48c   : > { %v720_v5 = vsel %vm716_vm9, %v3600_v13, %v709_v33  ;;  %v630_v31 = vsel %vm628_vm7, %v623_v28, %v3586_v10  ;;  %v631_v50 = vsel %vm628_vm7, %v621_v44, %v623_v28 }
 0x48d   : > { %v744_v34 = vmul.f32 %v727_v48, %v720_v5  ;;  %v657_v39 = vmul.f32 %v643_v41, %v631_v50  ;;  %v658_v2 = vmul.f32 %v647_v36, %v630_v31  ;;  %2015 = vrot.lane.b32.xlu0 %v3740_v60, %s6112_s6  ;;  %1929 = vrot.lane.b32.xlu1 %v3746_v61, %s6108_s26  ;;  %v4108_v41 = vld [vmem:[#allocation5 + $0x41] ss:$8 sm:$0xf]  ;;  %s6135_s26 = smov 83  }
 0x48e   : > { %v815_v5 = vrot.slane %v3979_v62, %v3429_v45 }
 0x48f   : > { %v748_v31 = vadd.f32 %v744_v34, %v704_v35  ;;  %v661_v36 = vadd.f32 %v657_v39, %v613_v30  ;;  %v662_v44 = vadd.f32 %v658_v2, %v614_v55  ;;  %v753_v48 = vpop.permute.xlu0 %752  ;;  %v667_v50 = vpop.permute.xlu1 %666  ;;  %v735_v30 = vrot.slane %v3975_v59, %v3945_v4 }
 0x490   : > { %v764_v58 = vsel %vm760_vm10, %v3608_v17, %v753_v48  ;;  %v674_v28 = vsel %vm672_vm8, %v667_v50, %v3594_v12  ;;  %v675_v37 = vsel %vm672_vm8, %v665_v40, %v667_v50  ;;  %v586_v39 = vsel %vm585_vm6, %v3578_v8, %v3576_v7 }
 0x491   : > { %v788_v35 = vmul.f32 %v771_v6, %v764_v58  ;;  %v701_v55 = vmul.f32 %v687_v43, %v675_v37  ;;  %v702_v34 = vmul.f32 %v691_v32, %v674_v28  ;;  %2059 = vrot.lane.b32.xlu0 %v3740_v60, %s6113_s7  ;;  %1973 = vrot.lane.b32.xlu1 %v3746_v61, %s6111_s14  ;;  %s6139_s14 = smov 82   ;;  %vm1288_vm6 = vcmp.lt.s32.totalorder %v3416_v14, 17 }
 0x492   : > { %v629_v40 = vsel %vm628_vm7, %v3586_v10, %v3584_v9  ;;  %v1355_v43 = vrot.slane %v4108_v41, %v3948_v52  ;;  %v859_v32 = vrot.slane %v3993_v49, %v3429_v45  ;;  %v775_v50 = vrot.slane %v3977_v57, %v3957_v51 }
 0x493   : > { %v792_v6 = vadd.f32 %v788_v35, %v748_v31  ;;  %v705_v2 = vadd.f32 %v701_v55, %v661_v36  ;;  %v706_v37 = vadd.f32 %v702_v34, %v662_v44  ;;  %v797_v58 = vpop.permute.xlu0 %796  ;;  %v711_v28 = vpop.permute.xlu1 %710  ;;  %v779_v10 = vrot.slane %v3977_v57, %v3945_v4 }
 0x494   : > { %v808_v7 = vsel %vm804_vm11, %v3616_v19, %v797_v58  ;;  %v718_v8 = vsel %vm716_vm9, %v711_v28, %v3602_v15  ;;  %v719_v9 = vsel %vm716_vm9, %v709_v33, %v711_v28  ;;  %v6115_v35 = vrot.slane %v3959_v53, %v3948_v52 }
 0x495   : > { %v832_v31 = vmul.f32 %v815_v5, %v808_v7  ;;  %v745_v36 = vmul.f32 %v731_v0, %v719_v9  ;;  %v746_v44 = vmul.f32 %v735_v30, %v718_v8  ;;  %2103 = vrot.lane.b32.xlu0 %v3740_v60, %s6114_s13  ;;  %2017 = vrot.lane.b32.xlu1 %v3746_v61, %s6112_s6  ;;  %s6143_s6 = smov 81   ;;  %vm1332_vm7 = vcmp.lt.s32.totalorder %v3416_v14, 16 }
 0x496   : > { %v615_v55 = vmul.f32 %v6115_v35, %v586_v39  ;;  %v6116_v33 = vrot.slane %v3963_v3, %v3948_v52  ;;  %v673_v0 = vsel %vm672_vm8, %v3594_v12, %v3592_v11  ;;  %v903_v5 = vrot.slane %v3995_v56, %v3429_v45 }
 0x497   : > { %v836_v30 = vadd.f32 %v832_v31, %v792_v6  ;;  %v749_v28 = vadd.f32 %v745_v36, %v705_v2  ;;  %v750_v7 = vadd.f32 %v746_v44, %v706_v37  ;;  %v841_v8 = vpop.permute.xlu0 %840  ;;  %v755_v9 = vpop.permute.xlu1 %754  ;;  %v819_v53 = vrot.slane %v3979_v62, %v3957_v51 }
 0x498   : > { %v659_v34 = vmul.f32 %v6116_v33, %v629_v40  ;;  %v852_v3 = vsel %vm848_vm12, %v3624_v21, %v841_v8  ;;  %v762_v39 = vsel %vm760_vm10, %v755_v9, %v3610_v18  ;;  %v763_v11 = vsel %vm760_vm10, %v753_v48, %v755_v9 }
 0x499   : > { %v823_v12 = vrot.slane %v3979_v62, %v3945_v4  ;;  %v876_v40 = vmul.f32 %v859_v32, %v852_v3  ;;  %v789_v6 = vmul.f32 %v775_v50, %v763_v11  ;;  %v790_v2 = vmul.f32 %v779_v10, %v762_v39  ;;  %2147 = vrot.lane.b32.xlu0 %v3740_v60, %s6117_s28 }
 0x49a   : > { %2061 = vrot.lane.b32.xlu1 %v3746_v61, %s6113_s7  ;;  %v663_v37 = vadd.f32 %v659_v34, %v615_v55  ;;  %v6118_v31 = vrot.slane %v3973_v16, %v3948_v52  ;;  %v717_v48 = vsel %vm716_vm9, %v3602_v15, %v3600_v13  ;;  %v947_v32 = vrot.slane %v4001_v47, %v3429_v45 }
 0x49b   : > { %v880_v50 = vadd.f32 %v876_v40, %v836_v30  ;;  %v793_v10 = vadd.f32 %v789_v6, %v749_v28  ;;  %v794_v44 = vadd.f32 %v790_v2, %v750_v7  ;;  %v885_v35 = vpop.permute.xlu0 %884  ;;  %v799_v33 = vpop.permute.xlu1 %798  ;;  %v863_v55 = vrot.slane %v3993_v49, %v3957_v51 }
 0x49c   : > { %v703_v36 = vmul.f32 %v6118_v31, %v673_v0  ;;  %v896_v16 = vsel %vm892_vm13, %v3632_v23, %v885_v35  ;;  %v806_v34 = vsel %vm804_vm11, %v799_v33, %v3618_v20  ;;  %v807_v13 = vsel %vm804_vm11, %v797_v58, %v799_v33 }
 0x49d   : > { %v867_v15 = vrot.slane %v3993_v49, %v3945_v4  ;;  %v920_v0 = vmul.f32 %v903_v5, %v896_v16  ;;  %v833_v30 = vmul.f32 %v819_v53, %v807_v13  ;;  %v834_v28 = vmul.f32 %v823_v12, %v806_v34  ;;  %2191 = vrot.lane.b32.xlu0 %v3740_v60, %s6119_s16 }
 0x49e   : > { %2105 = vrot.lane.b32.xlu1 %v3746_v61, %s6114_s13  ;;  %v707_v7 = vadd.f32 %v703_v36, %v663_v37  ;;  %v6120_v9 = vrot.slane %v3975_v59, %v3948_v52  ;;  %v761_v58 = vsel %vm760_vm10, %v3610_v18, %v3608_v17  ;;  %v991_v5 = vrot.slane %v4003_v46, %v3429_v45 }
 0x49f   : > { %v924_v53 = vadd.f32 %v920_v0, %v880_v50  ;;  %v837_v39 = vadd.f32 %v833_v30, %v793_v10  ;;  %v838_v11 = vadd.f32 %v834_v28, %v794_v44  ;;  %v929_v12 = vpop.permute.xlu0 %928  ;;  %v843_v40 = vpop.permute.xlu1 %842  ;;  %v907_v6 = vrot.slane %v3995_v56, %v3957_v51 }
 0x4a0   : > { %v747_v3 = vmul.f32 %v6120_v9, %v717_v48  ;;  %v940_v59 = vsel %vm936_vm14, %v3640_v25, %v929_v12  ;;  %v850_v2 = vsel %vm848_vm12, %v843_v40, %v3626_v22  ;;  %v851_v17 = vsel %vm848_vm12, %v841_v8, %v843_v40 }
 0x4a1   : > { %v911_v18 = vrot.slane %v3995_v56, %v3945_v4  ;;  %v964_v37 = vmul.f32 %v947_v32, %v940_v59  ;;  %v877_v31 = vmul.f32 %v863_v55, %v851_v17  ;;  %v878_v36 = vmul.f32 %v867_v15, %v850_v2  ;;  %2235 = vrot.lane.b32.xlu0 %v3740_v60, %s6121_s17 }
 0x4a2   : > { %2149 = vrot.lane.b32.xlu1 %v3746_v61, %s6117_s28  ;;  %v751_v48 = vadd.f32 %v747_v3, %v707_v7  ;;  %v6122_v50 = vrot.slane %v3977_v57, %v3948_v52  ;;  %v805_v8 = vsel %vm804_vm11, %v3618_v20, %v3616_v19  ;;  %v1035_v32 = vrot.slane %v4015_v42, %v3429_v45 }
 0x4a3   : > { %v968_v44 = vadd.f32 %v964_v37, %v924_v53  ;;  %v881_v33 = vadd.f32 %v877_v31, %v837_v39  ;;  %v882_v55 = vadd.f32 %v878_v36, %v838_v11  ;;  %v973_v16 = vpop.permute.xlu0 %972  ;;  %v887_v34 = vpop.permute.xlu1 %886  ;;  %v951_v13 = vrot.slane %v4001_v47, %v3957_v51 }
 0x4a4   : > { %v791_v10 = vmul.f32 %v6122_v50, %v761_v58  ;;  %v984_v57 = vsel %vm980_vm15, %v3648_v27, %v973_v16  ;;  %v894_v15 = vsel %vm892_vm13, %v887_v34, %v3634_v24  ;;  %v895_v19 = vsel %vm892_vm13, %v885_v35, %v887_v34  ;;  %v6128_v34 = vld [vmem:[#allocation19_spill] sm:$0xff] }
 0x4a5   : > { %v955_v20 = vrot.slane %v4001_v47, %v3945_v4  ;;  %v1008_v0 = vmul.f32 %v991_v5, %v984_v57  ;;  %v921_v30 = vmul.f32 %v907_v6, %v895_v19  ;;  %v922_v28 = vmul.f32 %v911_v18, %v894_v15  ;;  %2279 = vrot.lane.b32.xlu0 %v3740_v60, %s6123_s11 }
 0x4a6   : > { %2193 = vrot.lane.b32.xlu1 %v3746_v61, %s6119_s16  ;;  %v795_v7 = vadd.f32 %v791_v10, %v751_v48  ;;  %v6124_v9 = vrot.slane %v3979_v62, %v3948_v52  ;;  %v849_v35 = vsel %vm848_vm12, %v3626_v22, %v3624_v21  ;;  %v1079_v58 = vrot.slane %v4038_v1, %v3429_v45  ;;  %v6127_v48 = vld [vmem:[#allocation95_spill] sm:$0xff] }
 0x4a7   : > { %v1012_v5 = vadd.f32 %v1008_v0, %v968_v44  ;;  %v925_v53 = vadd.f32 %v921_v30, %v881_v33  ;;  %v926_v39 = vadd.f32 %v922_v28, %v882_v55  ;;  %v1017_v11 = vpop.permute.xlu0 %1016  ;;  %v931_v40 = vpop.permute.xlu1 %930  ;;  %v995_v6 = vrot.slane %v4003_v46, %v3957_v51 }
 0x4a8   : > { %v835_v3 = vmul.f32 %v6124_v9, %v805_v8  ;;  %v1028_v62 = vsel %vm1024_vm0, %v3656_v29, %v1017_v11  ;;  %v938_v59 = vsel %vm936_vm14, %v931_v40, %v3642_v26  ;;  %v939_v21 = vsel %vm936_vm14, %v929_v12, %v931_v40  ;;  %v6133_v40 = vld [vmem:[#allocation21_spill] sm:$0xff] }
 0x4a9   : > { %v999_v22 = vrot.slane %v4003_v46, %v3945_v4  ;;  %v1052_v2 = vmul.f32 %v1035_v32, %v1028_v62  ;;  %v965_v17 = vmul.f32 %v951_v13, %v939_v21  ;;  %v966_v18 = vmul.f32 %v955_v20, %v938_v59  ;;  %2323 = vrot.lane.b32.xlu0 %v3740_v60, %s6125_s12  ;;  %v6129_v13 = vld [vmem:[#allocation17_spill] sm:$0xff] }
 0x4aa   : > { %2237 = vrot.lane.b32.xlu1 %v3746_v61, %s6121_s17  ;;  %v839_v37 = vadd.f32 %v835_v3, %v795_v7  ;;  %v6126_v31 = vrot.slane %v3993_v49, %v3948_v52  ;;  %v893_v12 = vsel %vm892_vm13, %v3634_v24, %v3632_v23  ;;  %v1123_v50 = vrot.slane %v6127_v48, %v3429_v45  ;;  %v6132_v7 = vld [vmem:[#allocation96_spill] sm:$0xff] }
 0x4ab   : > { %v1056_v10 = vadd.f32 %v1052_v2, %v1012_v5  ;;  %v969_v8 = vadd.f32 %v965_v17, %v925_v53  ;;  %v970_v32 = vadd.f32 %v966_v18, %v926_v39  ;;  %v1061_v44 = vpop.permute.xlu0 %1060  ;;  %v975_v33 = vpop.permute.xlu1 %974  ;;  %v1039_v55 = vrot.slane %v4015_v42, %v3957_v51 }
 0x4ac   : > { %v879_v36 = vmul.f32 %v6126_v31, %v849_v35  ;;  %v1072_v49 = vsel %vm1068_vm1, %v6128_v34, %v1061_v44  ;;  %v982_v57 = vsel %vm980_vm15, %v975_v33, %v6129_v13  ;;  %v983_v23 = vsel %vm980_vm15, %v973_v16, %v975_v33  ;;  %v6138_v33 = vld [vmem:[#allocation20_spill] sm:$0xff] }
 0x4ad   : > { %v1043_v24 = vrot.slane %v4015_v42, %v3945_v4  ;;  %v1096_v15 = vmul.f32 %v1079_v58, %v1072_v49  ;;  %v1009_v19 = vmul.f32 %v995_v6, %v983_v23  ;;  %v1010_v20 = vmul.f32 %v999_v22, %v982_v57  ;;  %2367 = vrot.lane.b32.xlu0 %v3740_v60, %s6130_s27  ;;  %v6134_v6 = vld [vmem:[#allocation18_spill] sm:$0xff] }
 0x4ae   : > { %2281 = vrot.lane.b32.xlu1 %v3746_v61, %s6123_s11  ;;  %v883_v0 = vadd.f32 %v879_v36, %v839_v37  ;;  %v6131_v30 = vrot.slane %v3995_v56, %v3948_v52  ;;  %v937_v16 = vsel %vm936_vm14, %v3642_v26, %v3640_v25  ;;  %v1167_v9 = vrot.slane %v6132_v7, %v3429_v45 }
 0x4af   : > { %v1100_v3 = vadd.f32 %v1096_v15, %v1056_v10  ;;  %v1013_v35 = vadd.f32 %v1009_v19, %v969_v8  ;;  %v1014_v58 = vadd.f32 %v1010_v20, %v970_v32  ;;  %v1105_v5 = vpop.permute.xlu0 %1104  ;;  %v1019_v53 = vpop.permute.xlu1 %1018  ;;  %v1083_v39 = vrot.slane %v4038_v1, %v3957_v51  ;;  %v6137_v32 = vld [vmem:[#allocation23_spill] sm:$0xff] }
 0x4b0   : > { %v923_v28 = vmul.f32 %v6131_v30, %v893_v12  ;;  %v1116_v56 = vsel %vm1112_vm2, %v6133_v40, %v1105_v5  ;;  %v1026_v62 = vsel %vm1024_vm0, %v1019_v53, %v6134_v6  ;;  %v1027_v25 = vsel %vm1024_vm0, %v1017_v11, %v1019_v53 }
 0x4b1   : > { %v1087_v26 = vrot.slane %v4038_v1, %v3945_v4  ;;  %v1140_v59 = vmul.f32 %v1123_v50, %v1116_v56  ;;  %v1053_v21 = vmul.f32 %v1039_v55, %v1027_v25  ;;  %v1054_v22 = vmul.f32 %v1043_v24, %v1026_v62  ;;  %2411 = vrot.lane.b32.xlu0 %v3740_v60, %s6135_s26 }
 0x4b2   : > { %2325 = vrot.lane.b32.xlu1 %v3746_v61, %s6125_s12  ;;  %v927_v2 = vadd.f32 %v923_v28, %v883_v0  ;;  %v6136_v17 = vrot.slane %v4001_v47, %v3948_v52  ;;  %v981_v11 = vsel %vm980_vm15, %v6129_v13, %v3648_v27  ;;  %v1211_v37 = vrot.slane %v4075_v38, %v3429_v45  ;;  %s3209_s12 = smov [#allocation7]  }
 0x4b3   : > { %v1144_v31 = vadd.f32 %v1140_v59, %v1100_v3  ;;  %v1057_v36 = vadd.f32 %v1053_v21, %v1013_v35  ;;  %v1058_v12 = vadd.f32 %v1054_v22, %v1014_v58  ;;  %v1149_v50 = vpop.permute.xlu0 %1148  ;;  %v1063_v10 = vpop.permute.xlu1 %1062  ;;  %v1127_v8 = vrot.slane %v6127_v48, %v3957_v51  ;;  %v6141_v35 = vld [vmem:[#allocation25_spill] sm:$0xff]  ;;  %v6142_v58 = vld [vmem:[#allocation22_spill] sm:$0xff] }
 0x4b4   : > { %v967_v18 = vmul.f32 %v6136_v17, %v937_v16  ;;  %v1160_v47 = vsel %vm1156_vm3, %v6137_v32, %v1149_v50  ;;  %v1070_v55 = vsel %vm1068_vm1, %v1063_v10, %v6138_v33  ;;  %v1071_v27 = vsel %vm1068_vm1, %v1061_v44, %v1063_v10 }
 0x4b5   : > { %v1131_v49 = vrot.slane %v6127_v48, %v3945_v4  ;;  %v1184_v13 = vmul.f32 %v1167_v9, %v1160_v47  ;;  %v1097_v57 = vmul.f32 %v1083_v39, %v1071_v27  ;;  %v1098_v23 = vmul.f32 %v1087_v26, %v1070_v55  ;;  %2455 = vrot.lane.b32.xlu0 %v3740_v60, %s6139_s14 }
 0x4b6   : > { %2369 = vrot.lane.b32.xlu1 %v3746_v61, %s6130_s27  ;;  %v971_v24 = vadd.f32 %v967_v18, %v927_v2  ;;  %v6140_v15 = vrot.slane %v4003_v46, %v3948_v52  ;;  %v1025_v44 = vsel %vm1024_vm0, %v6134_v6, %v3656_v29  ;;  %v1255_v20 = vrot.slane %v4079_v54, %v3429_v45  ;;  %s3084_s27 = sshll.u32 %s3209_s12, 4  ;;  %s3085_s27 = int_to_ptr.vmem [resolvable:$false] %s3084_s27 }
 0x4b7   : > { %v1188_v0 = vadd.f32 %v1184_v13, %v1144_v31  ;;  %v1101_v30 = vadd.f32 %v1097_v57, %v1057_v36  ;;  %v1102_v28 = vadd.f32 %v1098_v23, %v1058_v12  ;;  %v1193_v16 = vpop.permute.xlu0 %1192  ;;  %v1107_v9 = vpop.permute.xlu1 %1106  ;;  %v1171_v3 = vrot.slane %v6132_v7, %v3957_v51  ;;  %v6145_v31 = vld [vmem:[#allocation27_spill] sm:$0xff]  ;;  %v6146_v36 = vld [vmem:[#allocation24_spill] sm:$0xff] }
 0x4b8   : > { %v1011_v19 = vmul.f32 %v6140_v15, %v981_v11  ;;  %v1204_v46 = vsel %vm1200_vm4, %v6141_v35, %v1193_v16  ;;  %v1114_v53 = vsel %vm1112_vm2, %v1107_v9, %v6142_v58  ;;  %v1115_v29 = vsel %vm1112_vm2, %v1105_v5, %v1107_v9  ;;  %v4430_v57 = vld [vmem:[#allocation5 + $0x42] ss:$8 sm:$0xf]  ;;  %v4432_v23 = vld [vmem:[#allocation5 + $0x43] ss:$8 sm:$0xf] }
 0x4b9   : > { %v1175_v39 = vrot.slane %v6132_v7, %v3945_v4  ;;  %v1228_v56 = vmul.f32 %v1211_v37, %v1204_v46  ;;  %v1141_v6 = vmul.f32 %v1127_v8, %v1115_v29  ;;  %v1142_v62 = vmul.f32 %v1131_v49, %v1114_v53  ;;  %2499 = vrot.lane.b32.xlu0 %v3740_v60, %s6143_s6 }
 0x4ba   : > { %2413 = vrot.lane.b32.xlu1 %v3746_v61, %s6135_s26  ;;  %v1015_v25 = vadd.f32 %v1011_v19, %v971_v24  ;;  %v6144_v26 = vrot.slane %v4015_v42, %v3948_v52  ;;  %v1069_v5 = vsel %vm1068_vm1, %v6138_v33, %v6128_v34  ;;  %v1299_v21 = vrot.slane %v4081_v63, %v3429_v45  ;;  %s3086_s26 = scalar_lea.vmem %s3085_s27, 1024 }
 0x4bb   : > { %v1232_v22 = vadd.f32 %v1228_v56, %v1188_v0  ;;  %v1145_v2 = vadd.f32 %v1141_v6, %v1101_v30  ;;  %v1146_v17 = vadd.f32 %v1142_v62, %v1102_v28  ;;  %v1237_v18 = vpop.permute.xlu0 %1236  ;;  %v1151_v11 = vpop.permute.xlu1 %1150  ;;  %v1215_v37 = vrot.slane %v4075_v38, %v3957_v51  ;;  %v6148_v0 = vld [vmem:[#allocation29_spill] sm:$0xff]  ;;  %v6149_v30 = vld [vmem:[#allocation26_spill] sm:$0xff] }
 0x4bc   : > { %v1055_v59 = vmul.f32 %v6144_v26, %v1025_v44  ;;  %v1248_v42 = vsel %vm1244_vm5, %v6145_v31, %v1237_v18  ;;  %v1158_v12 = vsel %vm1156_vm3, %v1151_v11, %v6146_v36  ;;  %v1159_v34 = vsel %vm1156_vm3, %v1149_v50, %v1151_v11  ;;  %v4462_v62 = vld [vmem:[#allocation5 + $0x44] ss:$8 sm:$0xf] }
 0x4bd   : > { %v1219_v10 = vrot.slane %v4075_v38, %v3945_v4  ;;  %v1272_v8 = vmul.f32 %v1255_v20, %v1248_v42  ;;  %v1185_v47 = vmul.f32 %v1171_v3, %v1159_v34  ;;  %v1186_v33 = vmul.f32 %v1175_v39, %v1158_v12  ;;  %2543 = vrot.lane.b32.xlu0 %v3740_v60, %s3205_s29  ;;  %v6152_v11 = vld [vmem:[#allocation28_spill] sm:$0xff] }
 0x4be   : > { %2457 = vrot.lane.b32.xlu1 %v3746_v61, %s6139_s14  ;;  %v1059_v55 = vadd.f32 %v1055_v59, %v1015_v25  ;;  %v6147_v27 = vrot.slane %v4038_v1, %v3948_v52  ;;  %v1113_v50 = vsel %vm1112_vm2, %v6142_v58, %v6133_v40  ;;  %v1157_v13 = vsel %vm1156_vm3, %v6146_v36, %v6137_v32 }
 0x4bf   : > { %v1276_v24 = vadd.f32 %v1272_v8, %v1232_v22  ;;  %v1189_v15 = vadd.f32 %v1185_v47, %v1145_v2  ;;  %v1190_v19 = vadd.f32 %v1186_v33, %v1146_v17  ;;  %v1281_v44 = vpop.permute.xlu0 %1280  ;;  %v1195_v1 = vpop.permute.xlu1 %1194  ;;  %v1259_v20 = vrot.slane %v4079_v54, %v3957_v51  ;;  %v4471_v2 = vld [vmem:[#allocation5 + $0x45] ss:$8 sm:$0xf]  ;;  %v4473_v17 = vld [vmem:[#allocation5 + $0x46] ss:$8 sm:$0xf] }
 0x4c0   : > { %v1099_v49 = vmul.f32 %v6147_v27, %v1069_v5  ;;  %v1292_v40 = vsel %vm1288_vm6, %v6148_v0, %v1281_v44  ;;  %v1202_v32 = vsel %vm1200_vm4, %v1195_v1, %v6149_v30  ;;  %v1203_v28 = vsel %vm1200_vm4, %v1193_v16, %v1195_v1  ;;  %v4503_v27 = vld [vmem:[#allocation5 + $0x47] ss:$8 sm:$0xf] }
 0x4c1   : > { %v1263_v9 = vrot.slane %v4079_v54, %v3945_v4  ;;  %v1316_v3 = vmul.f32 %v1299_v21, %v1292_v40  ;;  %v1229_v46 = vmul.f32 %v1215_v37, %v1203_v28  ;;  %v1230_v58 = vmul.f32 %v1219_v10, %v1202_v32  ;;  %2587 = vrot.lane.b32.xlu0 %v3740_v60, %s3206_s15  ;;  %v4522_v32 = vld [vmem:[#allocation5 + $0x62] ss:$8 sm:$0xf] }
 0x4c2   : > { %2501 = vrot.lane.b32.xlu1 %v3746_v61, %s6143_s6  ;;  %v1103_v53 = vadd.f32 %v1099_v49, %v1059_v55  ;;  %v6150_v29 = vrot.slane %v6127_v48, %v3948_v52  ;;  %v1201_v6 = vsel %vm1200_vm4, %v6149_v30, %v6141_v35  ;;  %v6151_v21 = vrot.slane %v6132_v7, %v3948_v52  ;;  %v4520_v30 = vld [vmem:[#allocation5 + $0x61] ss:$8 sm:$0xf] }
 0x4c3   : > { %v4464_v25 = vadd.f32 %v1316_v3, %v1276_v24  ;;  %v1233_v26 = vadd.f32 %v1229_v46, %v1189_v15  ;;  %v1234_v59 = vadd.f32 %v1230_v58, %v1190_v19  ;;  %v4466_v5 = vpop.permute.xlu0 %1324  ;;  %v1239_v48 = vpop.permute.xlu1 %1238  ;;  %v1303_v42 = vrot.slane %v4081_v63, %v3957_v51  ;;  %v4532_v3 = vld [vmem:[#allocation5 + $0x64] ss:$8 sm:$0xf] }
 0x4c4   : > { %v1143_v39 = vmul.f32 %v6150_v29, %v1113_v50  ;;  %v1187_v22 = vmul.f32 %v6151_v21, %v1157_v13  ;;  %v1246_v35 = vsel %vm1244_vm5, %v1239_v48, %v6152_v11  ;;  %v1247_v37 = vsel %vm1244_vm5, %v1237_v18, %v1239_v48  ;;  %v6156_v46 = vld [vmem:[#allocation90_spill] sm:$0xff]  ;;  %v6165_v55 = vld [vmem:[#allocation39_spill] sm:$0xff] }
 0x4c5   : > { %vm1376_vm8 = vcmp.lt.s32.totalorder %v3416_v14, 15  ;;  %v1273_v36 = vmul.f32 %v1259_v20, %v1247_v37  ;;  %v1274_v12 = vmul.f32 %v1263_v9, %v1246_v35  ;;  %2631 = vrot.lane.b32.xlu0 %v3740_v60, %s3207_s10  ;;  %v1307_v7 = vrot.slane %v4081_v63, %v3945_v4  ;;  %v6158_v35 = vld [vmem:[#allocation31_spill] sm:$0xff]  ;;  %v6159_v37 = vld [vmem:[#allocation32_spill] sm:$0xff] }
 0x4c6   : > { %2545 = vrot.lane.b32.xlu1 %v3746_v61, %s3205_s29  ;;  %v1147_v34 = vadd.f32 %v1143_v39, %v1103_v53  ;;  %v6153_v18 = vrot.slane %v4075_v38, %v3948_v52  ;;  %v1245_v8 = vsel %vm1244_vm5, %v6152_v11, %v6145_v31  ;;  %vm1420_vm9 = vcmp.lt.s32.totalorder %v3416_v14, 14  ;;  %v6154_v31 = vld [vmem:[#allocation30_spill] sm:$0xff]  ;;  %s3208_s29 = smov 77  }
 0x4c7   : > { %v1277_v38 = vadd.f32 %v1273_v36, %v1233_v26  ;;  %v1278_v49 = vadd.f32 %v1274_v12, %v1234_v59  ;;  %v4505_v50 = vpop.permute.xlu0 %1368  ;;  %v1283_v13 = vpop.permute.xlu1 %1282  ;;  %v1289_v15 = vsel %vm1288_vm6, %v6154_v31, %v6148_v0  ;;  %v6155_v20 = vrot.slane %v4079_v54, %v3948_v52  ;;  %v4530_v0 = vld [vmem:[#allocation5 + $0x63] ss:$8 sm:$0xf]  ;;  %v4543_v26 = vld [vmem:[#allocation5 + $0x66] ss:$8 sm:$0xf] }
 0x4c8   : > { %v1231_v10 = vmul.f32 %v6153_v18, %v1201_v6  ;;  %v1191_v24 = vadd.f32 %v1187_v22, %v1147_v34  ;;  %v1290_v19 = vsel %vm1288_vm6, %v1283_v13, %v6154_v31  ;;  %v1291_v1 = vsel %vm1288_vm6, %v1281_v44, %v1283_v13  ;;  %v4541_v6 = vld [vmem:[#allocation5 + $0x65] ss:$8 sm:$0xf] }
 0x4c9   : > { %v1275_v40 = vmul.f32 %v6155_v20, %v1245_v8  ;;  %vm1464_vm10 = vcmp.lt.s32.totalorder %v3416_v14, 13  ;;  %v1317_v28 = vmul.f32 %v1303_v42, %v1291_v1  ;;  %v1318_v9 = vmul.f32 %v1307_v7, %v1290_v19  ;;  %2675 = vrot.lane.b32.xlu0 %v3740_v60, %s3208_s29  ;;  %v6161_v13 = vld [vmem:[#allocation33_spill] sm:$0xff] }
 0x4ca   : > { %2589 = vrot.lane.b32.xlu1 %v3746_v61, %s3206_s15  ;;  %v1235_v44 = vadd.f32 %v1231_v10, %v1191_v24  ;;  %v1638_v58 = vrot.slane %v6156_v46, %v3429_v45  ;;  %v6157_v29 = vrot.slane %v4081_v63, %v3948_v52  ;;  %v1343_v59 = vrot.slane %v4108_v41, %v3429_v45  ;;  %v6160_v10 = vld [vmem:[#allocation15_spill] sm:$0xff]  ;;  %s2872_s15 = sshll.u32 %s3262_s22, 9  ;;  %s2752_s22 = scalar_lea.sflag [#allocation4], %s3380_s23 }
 0x4cb   : > { %v4547_v48 = vadd.f32 %v1317_v28, %v1277_v38  ;;  %v4549_v21 = vadd.f32 %v1318_v9, %v1278_v49  ;;  %v1413_v22 = vpop.permute.xlu0 %1412  ;;  %v1327_v11 = vpop.permute.xlu1 %1326  ;;  %v1333_v42 = vsel %vm1332_vm7, %v6159_v37, %v6158_v35  ;;  %v1336_v12 = vsel %vm1332_vm7, %v6158_v35, %v4466_v5  ;;  %v6162_v28 = vld [vmem:[#allocation34_spill] sm:$0xff]  ;;  %s5746_s17 = scalar_lea.hbm %s5800_s5, %s2872_s15 }
 0x4cc   : > { %v1319_v39 = vmul.f32 %v6157_v29, %v1289_v15  ;;  %v1279_v7 = vadd.f32 %v1275_v40, %v1235_v44  ;;  %vm1508_vm11 = vcmp.lt.s32.totalorder %v3416_v14, 3  ;;  %v1387_v18 = vrot.slane %v4430_v57, %v3429_v45  ;;  %v6163_v44 = vld [vmem:[#allocation35_spill] sm:$0xff] }
 0x4cd   : > { %2679 = vrot.lane.b32.xlu0 %v6160_v10, %s3208_s29  ;;  %v1380_v24 = vsel %vm1376_vm8, %v6161_v13, %v4505_v50  ;;  %v4587_v15 = vmul.f32 %v1355_v43, %v1333_v42  ;;  %vm1552_vm12 = vcmp.lt.s32.totalorder %v3416_v14, 2  ;;  %v1360_v19 = vmul.f32 %v1343_v59, %v1336_v12 }
 0x4ce   : > { %2633 = vrot.lane.b32.xlu1 %v3746_v61, %s3207_s10  ;;  %v4582_v31 = vadd.f32 %v1319_v39, %v1279_v7  ;;  %v1431_v1 = vrot.slane %v4432_v23, %v3429_v45  ;;  %v4596_v9 = vsel %vm1376_vm8, %v6162_v28, %v6161_v13  ;;  %v1424_v29 = vsel %vm1420_vm9, %v6163_v44, %v1413_v22  ;;  %v6164_v7 = vld [vmem:[#allocation37_spill] sm:$0xff]  ;;  %s6434_s10 = sshll.u32 %s3380_s23, 5 }
 0x4cf   : > { %v1457_v20 = vpop.permute.xlu0 %1456  ;;  %v1371_v40 = vpop.permute.xlu1 %1370  ;;  %v1347_v43 = vrot.slane %v4108_v41, %v3957_v51  ;;  %v1351_v39 = vrot.slane %v4108_v41, %v3945_v4  ;;  %v1404_v59 = vmul.f32 %v1387_v18, %v1380_v24  ;;  %v1335_v35 = vsel %vm1332_vm7, %v4466_v5, %v1327_v11  ;;  %s257_s7 = scalar_lea.vmem [#allocation7], %s6434_s10 }
 0x4d0   : > { %v1475_v42 = vrot.slane %v4462_v62, %v3429_v45  ;;  %v1391_v12 = vrot.slane %v4430_v57, %v3957_v51  ;;  %v1468_v10 = vsel %vm1464_vm10, %v6164_v7, %v1457_v20  ;;  %v1395_v41 = vrot.slane %v4430_v57, %v3945_v4  ;;  %s2765_s13 = sshll.u32 %s257_s7, 4  ;;  %s5750_s13 = int_to_ptr.vmem [resolvable:$true] %s2765_s13 }
 0x4d1   : > { %v1519_v18 = vrot.slane %v4471_v2, %v3429_v45  ;;  %v1435_v5 = vrot.slane %v4432_v23, %v3957_v51  ;;  %vm1596_vm13 = vcmp.lt.s32.totalorder %v3416_v14, 1  ;;  %v1364_v13 = vadd.f32 %v1360_v19, %v4464_v25  ;;  %s3080_s11 = scalar_lea.vmem %s5750_s13, 512  ;;  %p3087_p10 = scmp.lt.s32.totalorder %s5750_s13, %s3085_s27 }
 0x4d2   : > { %2677 = vrot.lane.b32.xlu1 %v3746_v61, %s3208_s29  ;;  %v1448_v24 = vmul.f32 %v1431_v1, %v1424_v29  ;;  %v1334_v49 = vsel %vm1332_vm7, %v1327_v11, %v6159_v37  ;;  %v1439_v8 = vrot.slane %v4432_v23, %v3945_v4  ;;  %v1361_v54 = vmul.f32 %v1347_v43, %v1335_v35  ;;  %v6166_v11 = vld [vmem:[#allocation16_spill] sm:$0xff]  ;;  %p3081_p4 = scmp.ne.s32.totalorder %s5750_s13, %s3080_s11  ;;  %p3088_p13 = scmp.lt.s32.totalorder %s3086_s26, %s3080_s11 }
 0x4d3   : > { %v1501_v38 = vpop.permute.xlu0 %1500  ;;  %v1415_v34 = vpop.permute.xlu1 %1414  ;;  %v1379_v36 = vsel %vm1376_vm8, %v4505_v50, %v1371_v40  ;;  %v1563_v25 = vrot.slane %v4473_v17, %v3429_v45  ;;  %v1408_v19 = vadd.f32 %v1404_v59, %v1364_v13  ;;  %v1492_v1 = vmul.f32 %v1475_v42, %v1468_v10 }
 0x4d4   : > { %v1512_v63 = vsel %vm1508_vm11, %v6165_v55, %v1501_v38  ;;  %v1479_v37 = vrot.slane %v4462_v62, %v3957_v51  ;;  %v1483_v29 = vrot.slane %v4462_v62, %v3945_v4  ;;  %v1362_v43 = vmul.f32 %v1351_v39, %v1334_v49  ;;  %v6167_v39 = vld [vmem:[#allocation36_spill] sm:$0xff]  ;;  %p3082_p6 = pnand %p3081_p4, %p3332_p12  ;;  %p3089_p3 = por %p3088_p13, %p3087_p10 }
 0x4d5   : > { %v1378_v50 = vsel %vm1376_vm8, %v1371_v40, %v6162_v28  ;;  %v1607_v35 = vrot.slane %v4503_v27, %v3429_v45  ;;  %v1523_v59 = vrot.slane %v4471_v2, %v3957_v51  ;;  %v1452_v42 = vadd.f32 %v1448_v24, %v1408_v19  ;;  %v6168_v28 = vld [vmem:[#allocation41_spill] sm:$0xff]  ;;  %v6169_v19 = vld [vmem:[#allocation38_spill] sm:$0xff] }
 0x4d6   : > { %2681 = vrot.lane.b32.xlu1 %v6166_v11, %s3208_s29  ;;  %v1405_v10 = vmul.f32 %v1391_v12, %v1379_v36  ;;  %v1536_v13 = vmul.f32 %v1519_v18, %v1512_v63  ;;  %v1423_v11 = vsel %vm1420_vm9, %v1413_v22, %v1415_v34  ;;  %v1365_v49 = vadd.f32 %v1361_v54, %v4547_v48  ;;  %p3083_p8 = pneg %p3082_p6 }
 0x4d7   : > { %v1545_v33 = vpop.permute.xlu0 %1544  ;;  %v1459_v53 = vpop.permute.xlu1 %1458  ;;  %v1422_v40 = vsel %vm1420_vm9, %v1415_v34, %v6167_v39  ;;  %v1527_v24 = vrot.slane %v4471_v2, %v3945_v4  ;;  %v1496_v36 = vadd.f32 %v1492_v1, %v1452_v42  ;;  %v1406_v63 = vmul.f32 %v1395_v41, %v1378_v50  ;;  %v6170_v42 = vld [vmem:[#allocation43_spill] sm:$0xff] }
 0x4d8   : > { %v1556_v47 = vsel %vm1552_vm12, %v6168_v28, %v1545_v33  ;;  %v1467_v22 = vsel %vm1464_vm10, %v1457_v20, %v1459_v53  ;;  %v1449_v18 = vmul.f32 %v1435_v5, %v1423_v11  ;;  %v1466_v54 = vsel %vm1464_vm10, %v1459_v53, %v6169_v19  ;;  %v6171_v11 = vld [vmem:[#allocation40_spill] sm:$0xff]  ;;  %p3090_p7 = pnand %p3089_p3, %p3083_p8 }
 0x4d9   : > { %v1580_v12 = vmul.f32 %v1563_v25, %v1556_v47  ;;  %v1567_v48 = vrot.slane %v4473_v17, %v3957_v51  ;;  %v1571_v34 = vrot.slane %v4473_v17, %v3945_v4  ;;  %vm5961_vm14 = vcmp.lt.s32.totalorder %v3416_v14, 127 }
 0x4da   : > { %v1366_v1 = vadd.f32 %v1362_v43, %v4549_v21  ;;  %v1409_v41 = vadd.f32 %v1405_v10, %v1365_v49  ;;  %v1540_v47 = vadd.f32 %v1536_v13, %v1496_v36  ;;  %v1450_v25 = vmul.f32 %v1439_v8, %v1422_v40  ;;  %v4686_v13 = vld [vmem:[#allocation5 + $0x67] ss:$8 sm:$0xf] }
 0x4db   : > { %v1589_v50 = vpop.permute.xlu0 %1588  ;;  %v1503_v20 = vpop.permute.xlu1 %1502  ;;  %v1493_v5 = vmul.f32 %v1479_v37, %v1467_v22  ;;  %vm5958_vm15 = vcmp.lt.s32.totalorder %v3416_v14, 126  ;;  %v1494_v10 = vmul.f32 %v1483_v29, %v1466_v54  ;;  %v1421_v37 = vsel %vm1420_vm9, %v6167_v39, %v6163_v44  ;;  %v4695_v29 = vld [vmem:[#allocation5 + $0x80] ss:$8 sm:$0xf] }
 0x4dc   : > { %v1600_v53 = vsel %vm1596_vm13, %v6170_v42, %v1589_v50  ;;  %v1510_v56 = vsel %vm1508_vm11, %v1503_v20, %v6171_v11  ;;  %v1511_v16 = vsel %vm1508_vm11, %v1501_v38, %v1503_v20  ;;  %v1410_v21 = vadd.f32 %v1406_v63, %v1366_v1  ;;  %v6172_v1 = vld [vmem:[#allocation42_spill] sm:$0xff] }
 0x4dd   : > { %v1584_v43 = vadd.f32 %v1580_v12, %v1540_v47  ;;  %v1624_v8 = vmul.f32 %v1607_v35, %v1600_v53  ;;  %v1453_v49 = vadd.f32 %v1449_v18, %v1409_v41  ;;  %v1611_v40 = vrot.slane %v4503_v27, %v3957_v51  ;;  %v4697_v35 = vld [vmem:[#allocation5 + $0x81] ss:$8 sm:$0xf]  ;;  %v4701_v18 = vld [vmem:[#allocation5 + $0x82] ss:$8 sm:$0xf] }
 0x4de   : > { %v1655_v38 = vmul.f32 %v1638_v58, %v3740_v60  ;;  %vm5957_vm0 = vcmp.lt.s32.totalorder %v3416_v14, 125  ;;  %v1454_v36 = vadd.f32 %v1450_v25, %v1410_v21  ;;  %v1537_v44 = vmul.f32 %v1523_v59, %v1511_v16  ;;  %v4728_v53 = vld [vmem:[#allocation5 + $0x83] ss:$8 sm:$0xf] }
 0x4df   : > { %v1628_v63 = vadd.f32 %v1624_v8, %v1584_v43  ;;  %v1538_v39 = vmul.f32 %v1527_v24, %v1510_v56  ;;  %v4699_v12 = vpop.permute.xlu0 %1663  ;;  %v1547_v22 = vpop.permute.xlu1 %1546  ;;  %v1497_v54 = vadd.f32 %v1493_v5, %v1453_v49  ;;  %v1615_v41 = vrot.slane %v4503_v27, %v3945_v4 }
 0x4e0   : > { %v1554_v60 = vsel %vm1552_vm12, %v1547_v22, %v6172_v1  ;;  %v1555_v58 = vsel %vm1552_vm12, %v1545_v33, %v1547_v22  ;;  %vm5955_vm1 = vcmp.lt.s32.totalorder %v3416_v14, 115  ;;  %v1498_v16 = vadd.f32 %v1494_v10, %v1454_v36  ;;  %v4745_v36 = vld [vmem:[#allocation5 + $0x84] ss:$8 sm:$0xf] }
 0x4e1   : > { %v1581_v56 = vmul.f32 %v1567_v48, %v1555_v58  ;;  %v1582_v59 = vmul.f32 %v1571_v34, %v1554_v60  ;;  %v4711_v24 = vadd.f32 %v1655_v38, %v1628_v63  ;;  %v6174_v47 = vrot.slane %v4430_v57, %v3948_v52  ;;  %v6178_v22 = vld [vmem:[#allocation46_spill] sm:$0xff] }
 0x4e2   : > { %v1367_v48 = vadd.f32 %v4587_v15, %v4582_v31  ;;  %vm5956_vm2 = vcmp.lt.s32.totalorder %v3416_v14, 114  ;;  %v1541_v57 = vadd.f32 %v1537_v44, %v1497_v54  ;;  %v6175_v10 = vrot.slane %v4432_v23, %v3948_v52  ;;  %v6176_v15 = vld [vmem:[#allocation44_spill] sm:$0xff] }
 0x4e3   : > { %6173 = vst [vmem:[#allocation95_spill] sm:$0xff] %v4711_v24  ;;  %v1407_v25 = vmul.f32 %v6174_v47, %v4596_v9  ;;  %v1542_v9 = vadd.f32 %v1538_v39, %v1498_v16  ;;  %v4730_v21 = vpop.permute.xlu0 %1707  ;;  %v1591_v43 = vpop.permute.xlu1 %1590  ;;  %v1465_v31 = vsel %vm1464_vm10, %v6169_v19, %v6164_v7  ;;  %vm5959_vm3 = vcmp.lt.s32.totalorder %v3416_v14, 113  ;;  %v6177_v19 = vld [vmem:[#allocation45_spill] sm:$0xff] }
 0x4e4   : > { %v1451_v8 = vmul.f32 %v6175_v10, %v1421_v37  ;;  %v1598_v49 = vsel %vm1596_vm13, %v1591_v43, %v6176_v15  ;;  %v1599_v38 = vsel %vm1596_vm13, %v1589_v50, %v1591_v43  ;;  %v1585_v63 = vadd.f32 %v1581_v56, %v1541_v57  ;;  %v6183_v57 = vld [vmem:[#allocation48_spill] sm:$0xff] }
 0x4e5   : > { %v1586_v44 = vadd.f32 %v1582_v59, %v1542_v9  ;;  %v1625_v23 = vmul.f32 %v1611_v40, %v1599_v38  ;;  %v1626_v37 = vmul.f32 %v1615_v41, %v1598_v49  ;;  %v1411_v39 = vadd.f32 %v1407_v25, %v1367_v48  ;;  %v4760_v40 = vld [vmem:[#allocation5 + $0x85] ss:$8 sm:$0xf]  ;;  %v4762_v41 = vld [vmem:[#allocation5 + $0x86] ss:$8 sm:$0xf] }
 0x4e6   : > { %v1509_v7 = vsel %vm1508_vm11, %v6171_v11, %v6165_v55  ;;  %v1672_v54 = vsel %vm5961_vm14, %v6178_v22, %v6177_v19  ;;  %v6179_v60 = vrot.slane %v4462_v62, %v3948_v52  ;;  %6180 = vst [vmem:[#allocation19_spill] sm:$0xff] %v4762_v41  ;;  %v6181_v11 = vrot.slane %v6156_v46, %v3957_v51  ;;  %v6182_v48 = vld [vmem:[#allocation47_spill] sm:$0xff]  ;;  %v6256_v22 = vld [vmem:[#allocation84_spill] sm:$0xff] }
 0x4e7   : > { %v1629_v16 = vadd.f32 %v1625_v23, %v1585_v63  ;;  %v1630_v56 = vadd.f32 %v1626_v37, %v1586_v44  ;;  %v4764_v59 = vpop.permute.xlu0 %1751  ;;  %v4766_v55 = vpop.permute.xlu1 %1665  ;;  %v1455_v25 = vadd.f32 %v1451_v8, %v1411_v39  ;;  %v1553_v62 = vsel %vm1552_vm12, %v6172_v1, %v6168_v28  ;;  %v4791_v10 = vld [vmem:[#allocation5 + $0x87] ss:$8 sm:$0xf] }
 0x4e8   : > { %v1495_v58 = vmul.f32 %v6179_v60, %v1465_v31  ;;  %v1656_v47 = vmul.f32 %v6181_v11, %v3746_v61  ;;  %v1716_v9 = vsel %vm5958_vm15, %v6183_v57, %v6182_v48  ;;  %vm5962_vm4 = vcmp.lt.s32.totalorder %v3416_v14, 112  ;;  %6186 = vst [vmem:[#allocation17_spill] sm:$0xff] %v4791_v10  ;;  %v6187_v8 = vld [vmem:[#allocation94_spill] sm:$0xff]  ;;  %v6189_v63 = vld [vmem:[#allocation49_spill] sm:$0xff]  ;;  %v6233_v57 = vld [vmem:[#allocation67_spill] sm:$0xff] }
 0x4e9   : > { %vm1979_vm5 = vcmp.lt.s32.totalorder %v3416_v14, 111  ;;  %vm2023_vm6 = vcmp.lt.s32.totalorder %v3416_v14, 110  ;;  %v6184_v46 = vrot.slane %v4471_v2, %v3948_v52  ;;  %v6185_v28 = vrot.slane %v4520_v30, %v3945_v4  ;;  %v6190_v44 = vld [vmem:[#allocation50_spill] sm:$0xff] }
 0x4ea   : > { %v1661_v31 = vadd.f32 %v6187_v8, %v1630_v56  ;;  %v4794_v49 = vadd.f32 %v1656_v47, %v1629_v16  ;;  %v1597_v38 = vsel %vm1596_vm13, %v6176_v15, %v6170_v42  ;;  %v1760_v2 = vsel %vm5957_vm0, %v6190_v44, %v6189_v63  ;;  %v4817_v60 = vld [vmem:[#allocation5 + $0xa0] ss:$8 sm:$0xf]  ;;  %v4819_v16 = vld [vmem:[#allocation5 + $0xa1] ss:$8 sm:$0xf] }
 0x4eb   : > { %v1539_v43 = vmul.f32 %v6184_v46, %v1509_v7  ;;  %v1701_v1 = vmul.f32 %v6185_v28, %v1672_v54  ;;  %vm2067_vm7 = vcmp.lt.s32.totalorder %v3416_v14, 109  ;;  %vm2111_vm8 = vcmp.lt.s32.totalorder %v3416_v14, 99  ;;  %6193 = vst [vmem:[#allocation21_spill] sm:$0xff] %v4817_v60  ;;  %6194 = vst [vmem:[#allocation18_spill] sm:$0xff] %v4819_v16  ;;  %v4821_v11 = vpop.permute.xlu0 %1795  ;;  %v4823_v47 = vpop.permute.xlu1 %1709  ;;  %v6203_v37 = vld [vmem:[#allocation54_spill] sm:$0xff] }
 0x4ec   : > { %6188 = vst [vmem:[#allocation96_spill] sm:$0xff] %v4794_v49  ;;  %v1499_v39 = vadd.f32 %v1495_v58, %v1455_v25  ;;  %v6191_v7 = vrot.slane %v4473_v17, %v3948_v52  ;;  %v6192_v15 = vrot.slane %v4522_v32, %v3945_v4  ;;  %vm2155_vm9 = vcmp.lt.s32.totalorder %v3416_v14, 98  ;;  %6195 = vst [vmem:[#allocation23_spill] sm:$0xff] %v4821_v11  ;;  %v6197_v58 = vld [vmem:[#allocation51_spill] sm:$0xff]  ;;  %v6198_v25 = vld [vmem:[#allocation52_spill] sm:$0xff] }
 0x4ed   : > { %v1705_v56 = vadd.f32 %v1701_v1, %v1661_v31  ;;  %6196 = vst [vmem:[#allocation20_spill] sm:$0xff] %v4823_v47  ;;  %v1804_v17 = vsel %vm5955_vm1, %v6198_v25, %v6197_v58  ;;  %vm2199_vm10 = vcmp.lt.s32.totalorder %v3416_v14, 97  ;;  %vm2243_vm11 = vcmp.lt.s32.totalorder %v3416_v14, 96  ;;  %v4841_v31 = vld [vmem:[#allocation5 + $0xa2] ss:$8 sm:$0xf] }
 0x4ee   : > { %v1583_v42 = vmul.f32 %v6191_v7, %v1553_v62  ;;  %v1745_v54 = vmul.f32 %v6192_v15, %v1716_v9  ;;  %vm2287_vm12 = vcmp.lt.s32.totalorder %v3416_v14, 95  ;;  %vm2331_vm13 = vcmp.lt.s32.totalorder %v3416_v14, 94  ;;  %6201 = vst [vmem:[#allocation25_spill] sm:$0xff] %v4841_v31  ;;  %v6202_v15 = vld [vmem:[#allocation53_spill] sm:$0xff]  ;;  %v6218_v49 = vld [vmem:[#allocation59_spill] sm:$0xff]  ;;  %v6234_v47 = vld [vmem:[#allocation68_spill] sm:$0xff] }
 0x4ef   : > { %v1543_v9 = vadd.f32 %v1539_v43, %v1499_v39  ;;  %v6199_v46 = vrot.slane %v4503_v27, %v3948_v52  ;;  %v6200_v1 = vrot.slane %v4530_v0, %v3945_v4  ;;  %v1848_v23 = vsel %vm5956_vm2, %v6203_v37, %v6202_v15  ;;  %v4852_v43 = vld [vmem:[#allocation5 + $0xa3] ss:$8 sm:$0xf]  ;;  %v4863_v61 = vld [vmem:[#allocation5 + $0xa5] ss:$8 sm:$0xf]  ;;  %v4865_v34 = vpop.permute.xlu0 %1839  ;;  %v4867_v5 = vpop.permute.xlu1 %1753 }
 0x4f0   : > { %v1749_v7 = vadd.f32 %v1745_v54, %v1705_v56  ;;  %v2350_v62 = vrot.slane %v4817_v60, %v3945_v4  ;;  %vm2375_vm1 = vcmp.lt.s32.totalorder %v3416_v14, 93  ;;  %v2394_v27 = vrot.slane %v4819_v16, %v3945_v4  ;;  %6204 = vst [vmem:[#allocation22_spill] sm:$0xff] %v4852_v43  ;;  %v6206_v54 = vld [vmem:[#allocation55_spill] sm:$0xff]  ;;  %v6207_v56 = vld [vmem:[#allocation56_spill] sm:$0xff]  ;;  %6209 = vst [vmem:[#allocation24_spill] sm:$0xff] %v4863_v61 }
 0x4f1   : > { %v1627_v28 = vmul.f32 %v6199_v46, %v1597_v38  ;;  %v1789_v8 = vmul.f32 %v6200_v1, %v1760_v2  ;;  %v1587_v38 = vadd.f32 %v1583_v42, %v1543_v9  ;;  %v6205_v2 = vrot.slane %v4532_v3, %v3945_v4  ;;  %v4861_v1 = vld [vmem:[#allocation5 + $0xa4] ss:$8 sm:$0xf]  ;;  %6210 = vst [vmem:[#allocation29_spill] sm:$0xff] %v4865_v34 }
 0x4f2   : > { %v1892_v46 = vsel %vm5959_vm3, %v6207_v56, %v6206_v54  ;;  %6208 = vst [vmem:[#allocation27_spill] sm:$0xff] %v4861_v1  ;;  %6211 = vst [vmem:[#allocation26_spill] sm:$0xff] %v4867_v5  ;;  %vm2419_vm2 = vcmp.lt.s32.totalorder %v3416_v14, 83  ;;  %v2438_v42 = vrot.slane %v4841_v31, %v3945_v4  ;;  %vm2463_vm0 = vcmp.lt.s32.totalorder %v3416_v14, 82  ;;  %v6219_v54 = vld [vmem:[#allocation60_spill] sm:$0xff]  ;;  %v6247_v11 = vld [vmem:[#allocation77_spill] sm:$0xff] }
 0x4f3   : > { %v1833_v39 = vmul.f32 %v6205_v2, %v1804_v17  ;;  %v1793_v50 = vadd.f32 %v1789_v8, %v1749_v7  ;;  %vm2507_vm15 = vcmp.lt.s32.totalorder %v3416_v14, 81  ;;  %v1631_v17 = vadd.f32 %v1627_v28, %v1587_v38  ;;  %v4879_v7 = vld [vmem:[#allocation5 + $0xa6] ss:$8 sm:$0xf]  ;;  %v4903_v24 = vpop.permute.xlu0 %1883  ;;  %v4905_v5 = vpop.permute.xlu1 %1797 }
 0x4f4   : > { %v6212_v9 = vrot.slane %v4541_v6, %v3945_v4  ;;  %v2482_v8 = vrot.slane %v4852_v43, %v3945_v4  ;;  %6213 = vst [vmem:[#allocation28_spill] sm:$0xff] %v4879_v7  ;;  %v4881_v33 = vld [vmem:[#allocation5 + $0xa7] ss:$8 sm:$0xf]  ;;  %v6215_v56 = vrot.slane %v4543_v26, %v3945_v4  ;;  %v2526_v25 = vrot.slane %v4861_v1, %v3945_v4 }
 0x4f5   : > { %6214 = vst [vmem:[#allocation30_spill] sm:$0xff] %v4881_v33  ;;  %v1837_v20 = vadd.f32 %v1833_v39, %v1793_v50  ;;  %vm5980_vm3 = vcmp.lt.s32.totalorder %v3416_v14, 80  ;;  %v6216_v28 = vld [vmem:[#allocation57_spill] sm:$0xff]  ;;  %v6217_v38 = vld [vmem:[#allocation58_spill] sm:$0xff]  ;;  %v1980_v50 = vsel %vm1979_vm5, %v6219_v54, %v6218_v49  ;;  %6222 = vst [vmem:[#allocation90_spill] sm:$0xff] %v4903_v24  ;;  %vm5977_vm14 = vcmp.lt.s32.totalorder %v3416_v14, 79 }
 0x4f6   : > { %v1877_v2 = vmul.f32 %v6212_v9, %v1848_v23  ;;  %v1921_v37 = vmul.f32 %v6215_v56, %v1892_v46  ;;  %v2570_v23 = vrot.slane %v4863_v61, %v3945_v4  ;;  %v1936_v9 = vsel %vm5962_vm4, %v6217_v38, %v6216_v28  ;;  %v6220_v39 = vld [vmem:[#allocation61_spill] sm:$0xff]  ;;  %v6221_v56 = vld [vmem:[#allocation62_spill] sm:$0xff]  ;;  %6223 = vst [vmem:[#allocation31_spill] sm:$0xff] %v4905_v5  ;;  %v6224_v49 = vld [vmem:[#allocation63_spill] sm:$0xff] }
 0x4f7   : > { %v2024_v46 = vsel %vm2023_vm6, %v6221_v56, %v6220_v39  ;;  %v2614_v38 = vrot.slane %v4879_v7, %v3945_v4  ;;  %vm5976_vm4 = vcmp.lt.s32.totalorder %v3416_v14, 78  ;;  %v6225_v28 = vld [vmem:[#allocation64_spill] sm:$0xff]  ;;  %v6228_v5 = vld [vmem:[#allocation93_spill] sm:$0xff]  ;;  %v6230_v34 = vrot.slane %v4686_v13, %v3945_v4  ;;  %v4955_v58 = vpop.permute.xlu1 %1841  ;;  %v6249_v61 = vld [vmem:[#allocation79_spill] sm:$0xff] }
 0x4f8   : > { %v1881_v44 = vadd.f32 %v1877_v2, %v1837_v20  ;;  %v2068_v56 = vsel %vm2067_vm7, %v6225_v28, %v6224_v49  ;;  %v6226_v20 = vld [vmem:[#allocation65_spill] sm:$0xff]  ;;  %v6227_v2 = vld [vmem:[#allocation66_spill] sm:$0xff]  ;;  %v4922_v24 = vadd.f32 %v6228_v5, %v1631_v17  ;;  %v6231_v54 = vrot.slane %v4695_v29, %v3945_v4  ;;  %6244 = vst [vmem:[#allocation33_spill] sm:$0xff] %v4955_v58 }
 0x4f9   : > { %v2112_v39 = vsel %vm2111_vm8, %v6227_v2, %v6226_v20  ;;  %v1965_v7 = vmul.f32 %v6230_v34, %v1936_v9  ;;  %v6232_v28 = vrot.slane %v4697_v35, %v3945_v4  ;;  %v2156_v2 = vsel %vm2155_vm9, %v6234_v47, %v6233_v57  ;;  %v6235_v5 = vld [vmem:[#allocation69_spill] sm:$0xff]  ;;  %v6236_v17 = vld [vmem:[#allocation70_spill] sm:$0xff]  ;;  %v6238_v34 = vld [vmem:[#allocation72_spill] sm:$0xff]  ;;  %v4953_v57 = vpop.permute.xlu0 %1927 }
 0x4fa   : > { %6229 = vst [vmem:[#allocation32_spill] sm:$0xff] %v4922_v24  ;;  %v1925_v15 = vadd.f32 %v1921_v37, %v1881_v44  ;;  %v2009_v33 = vmul.f32 %v6231_v54, %v1980_v50  ;;  %v2200_v44 = vsel %vm2199_vm10, %v6236_v17, %v6235_v5  ;;  %v6237_v37 = vld [vmem:[#allocation71_spill] sm:$0xff]  ;;  %v6239_v54 = vld [vmem:[#allocation73_spill] sm:$0xff]  ;;  %v6240_v50 = vld [vmem:[#allocation74_spill] sm:$0xff]  ;;  %v6245_v17 = vrot.slane %v4701_v18, %v3945_v4 }
 0x4fb   : > { %v2053_v49 = vmul.f32 %v6232_v28, %v2024_v46  ;;  %v2244_v9 = vsel %vm2243_vm11, %v6238_v34, %v6237_v37  ;;  %v2288_v28 = vsel %vm2287_vm12, %v6240_v50, %v6239_v54  ;;  %v6241_v46 = vld [vmem:[#allocation75_spill] sm:$0xff]  ;;  %v6242_v20 = vld [vmem:[#allocation76_spill] sm:$0xff]  ;;  %6243 = vst [vmem:[#allocation15_spill] sm:$0xff] %v4953_v57  ;;  %v6246_v34 = vrot.slane %v4728_v53, %v3945_v4  ;;  %v6248_v50 = vld [vmem:[#allocation78_spill] sm:$0xff] }
 0x4fc   : > { %v2332_v47 = vsel %vm2331_vm13, %v6242_v20, %v6241_v46  ;;  %v2097_v5 = vmul.f32 %v6245_v17, %v2068_v56  ;;  %v2376_v54 = vsel %vm2375_vm1, %v6248_v50, %v6247_v11  ;;  %v6250_v20 = vld [vmem:[#allocation80_spill] sm:$0xff]  ;;  %v6251_v58 = vrot.slane %v4745_v36, %v3945_v4  ;;  %v6253_v56 = vld [vmem:[#allocation81_spill] sm:$0xff]  ;;  %v6254_v17 = vld [vmem:[#allocation82_spill] sm:$0xff] }
 0x4fd   : > { %v4963_v37 = vmul.f32 %v6246_v34, %v2112_v39  ;;  %v2420_v46 = vsel %vm2419_vm2, %v6250_v20, %v6249_v61  ;;  %v2464_v39 = vsel %vm2463_vm0, %v6254_v17, %v6253_v56  ;;  %v6255_v34 = vld [vmem:[#allocation83_spill] sm:$0xff]  ;;  %v1969_v11 = vadd.f32 %v1965_v7, %v1925_v15  ;;  %v6260_v7 = vld [vmem:[#allocation85_spill] sm:$0xff] }
 0x4fe   : > { %v4976_v57 = vmul.f32 %v6251_v58, %v2156_v2  ;;  %v2508_v50 = vsel %vm2507_vm15, %v6256_v22, %v6255_v34  ;;  %v6257_v24 = vrot.slane %v4760_v40, %v3945_v4  ;;  %v6258_v58 = vrot.slane %v4762_v41, %v3945_v4  ;;  %v6261_v22 = vld [vmem:[#allocation86_spill] sm:$0xff]  ;;  %v6292_v60 = vld [vmem:[#allocation53_spill] sm:$0xff]  ;;  %v6312_v41 = vld [vmem:[#allocation52_spill] sm:$0xff] }
 0x4ff   : > { %v6259_v61 = vrot.slane %v4791_v10, %v3945_v4  ;;  %v5001_v56 = vmul.f32 %v2350_v62, %v2332_v47  ;;  %v5005_v15 = vmul.f32 %v2438_v42, %v2420_v46  ;;  %v5019_v47 = vmul.f32 %v2526_v25, %v2508_v50  ;;  %v6263_v62 = vld [vmem:[#allocation87_spill] sm:$0xff] }
 0x500   : > { %6252 = vst [vmem:[#allocation34_spill] sm:$0xff] %v4976_v57  ;;  %v4989_v20 = vmul.f32 %v6257_v24, %v2200_v44  ;;  %v4994_v2 = vmul.f32 %v6258_v58, %v2244_v9  ;;  %v5003_v57 = vmul.f32 %v2394_v27, %v2376_v54  ;;  %v2552_v24 = vsel %vm5980_vm3, %v6261_v22, %v6260_v7  ;;  %v5013_v9 = vpop.permute.xlu0 %1971  ;;  %v5015_v58 = vpop.permute.xlu1 %1885  ;;  %v6264_v27 = vld [vmem:[#allocation88_spill] sm:$0xff]  ;;  %v6267_v46 = vld [vmem:[#allocation91_spill] sm:$0xff]  ;;  %v6278_v7 = vld [vmem:[#allocation46_spill] sm:$0xff] }
 0x501   : > { %v4999_v17 = vmul.f32 %v6259_v61, %v2288_v28  ;;  %v5017_v61 = vmul.f32 %v2482_v8, %v2464_v39  ;;  %6262 = vst [vmem:[#allocation35_spill] sm:$0xff] %v5019_v47  ;;  %v2596_v42 = vsel %vm5977_vm14, %v6264_v27, %v6263_v62  ;;  %v2013_v28 = vadd.f32 %v2009_v33, %v1969_v11  ;;  %v6268_v54 = vld [vmem:[#allocation92_spill] sm:$0xff]  ;;  %v6298_v10 = vld [vmem:[#allocation95_spill] sm:$0xff] }
 0x502   : > { %v5033_v25 = vmul.f32 %v2570_v23, %v2552_v24  ;;  %v5041_v11 = vmul.f32 %v2614_v38, %v2596_v42  ;;  %v5047_v44 = vsel %vm5976_vm4, %v6268_v54, %v6267_v46  ;;  %vm6270_vm4 = vcmp.lt.s32.totalorder %v3416_v14, 127 }
 0x503   : > { %6269 = vst [vmem:[#allocation16_spill] sm:$0xff] %v5047_v44  ;;  %v2057_v23 = vadd.f32 %v2053_v49, %v2013_v28  ;;  %v6272_v8 = vrot.slane %v4520_v30, %v3948_v52  ;;  %v6273_v27 = vrot.slane %v4522_v32, %v3948_v52  ;;  %vm6275_vm14 = vcmp.lt.s32.totalorder %v3416_v14, 127 }
 0x504   : > { %6265 = vst [vmem:[#allocation37_spill] sm:$0xff] %v5033_v25  ;;  %6266 = vst [vmem:[#allocation39_spill] sm:$0xff] %v5041_v11  ;;  %v5053_v50 = vpop.permute.xlu0 %2015  ;;  %v5055_v39 = vpop.permute.xlu1 %1929  ;;  %v1674_v28 = vsel %vm6275_vm14, %v4699_v12, %v4766_v55  ;;  %v6290_v16 = vrot.slane %v4520_v30, %v3957_v51  ;;  %v6291_v25 = vld [vmem:[#allocation29_spill] sm:$0xff]  ;;  %v6315_v1 = vrot.slane %v4532_v3, %v3429_v45 }
 0x505   : > { %v2101_v54 = vadd.f32 %v2097_v5, %v2057_v23  ;;  %v1675_v23 = vsel %vm6270_vm4, %v6177_v19, %v4699_v12  ;;  %vm6271_vm4 = vcmp.lt.s32.totalorder %v3416_v14, 126  ;;  %v1673_v12 = vsel %vm6275_vm14, %v4766_v55, %v6278_v7  ;;  %v6285_v55 = vld [vmem:[#allocation20_spill] sm:$0xff] }
 0x506   : > { %v1719_v49 = vsel %vm6271_vm4, %v6182_v48, %v4730_v21  ;;  %v1702_v19 = vmul.f32 %v6272_v8, %v1675_v23  ;;  %vm6274_vm4 = vcmp.lt.s32.totalorder %v3416_v14, 125  ;;  %v6279_v8 = vld [vmem:[#allocation24_spill] sm:$0xff]  ;;  %v6280_v5 = vrot.slane %v4530_v0, %v3948_v52 }
 0x507   : > { %v2145_v33 = vadd.f32 %v4963_v37, %v2101_v54  ;;  %v1746_v48 = vmul.f32 %v6273_v27, %v1719_v49  ;;  %v1763_v44 = vsel %vm6274_vm4, %v6189_v63, %v4764_v59  ;;  %v6276_v49 = vld [vmem:[#allocation34_spill] sm:$0xff]  ;;  %v6277_v63 = vld [vmem:[#allocation32_spill] sm:$0xff]  ;;  %vm6284_vm4 = vcmp.lt.s32.totalorder %v3416_v14, 115 }
 0x508   : > { %v5085_v24 = vpop.permute.xlu0 %2059  ;;  %v5089_v38 = vpop.permute.xlu1 %1973  ;;  %v1706_v22 = vadd.f32 %v1702_v19, %v6277_v63  ;;  %v1790_v11 = vmul.f32 %v6280_v5, %v1763_v44  ;;  %v6282_v19 = vld [vmem:[#allocation23_spill] sm:$0xff]  ;;  %vm6286_vm14 = vcmp.lt.s32.totalorder %v3416_v14, 126  ;;  %v6287_v44 = vld [vmem:[#allocation48_spill] sm:$0xff]  ;;  %v6296_v5 = vrot.slane %v4532_v3, %v3948_v52 }
 0x509   : > { %v2189_v62 = vadd.f32 %v6276_v49, %v2145_v33  ;;  %v6281_v33 = vrot.slane %v4520_v30, %v3429_v45  ;;  %v6283_v63 = vld [vmem:[#allocation51_spill] sm:$0xff]  ;;  %v1718_v7 = vsel %vm6286_vm14, %v4730_v21, %v6285_v55  ;;  %vm6288_vm3 = vmmov %vm6286_vm14  ;;  %v1700_v21 = vmul.f32 %v6290_v16, %v1673_v12  ;;  %v6310_v12 = vld [vmem:[#allocation30_spill] sm:$0xff] }
 0x50a   : > { %v1807_v27 = vsel %vm6284_vm4, %v6283_v63, %v6282_v19  ;;  %v1750_v31 = vadd.f32 %v1746_v48, %v1706_v22  ;;  %vm6293_vm4 = vcmp.lt.s32.totalorder %v3416_v14, 114  ;;  %v6294_v48 = vld [vmem:[#allocation26_spill] sm:$0xff]  ;;  %vm6295_vm14 = vcmp.lt.s32.totalorder %v3416_v14, 125 }
 0x50b   : > { %v1699_v49 = vmul.f32 %v6281_v33, %v1674_v28  ;;  %v1717_v28 = vsel %vm6288_vm3, %v6285_v55, %v6287_v44  ;;  %v6289_v33 = vld [vmem:[#allocation28_spill] sm:$0xff]  ;;  %v1851_v22 = vsel %vm6293_vm4, %v6292_v60, %v6291_v25  ;;  %v1762_v55 = vsel %vm6295_vm14, %v4764_v59, %v6294_v48  ;;  %vm6301_vm3 = vmmov %vm6295_vm14 }
 0x50c   : > { %v5117_v42 = vpop.permute.xlu0 %2103  ;;  %v5119_v46 = vpop.permute.xlu1 %2017  ;;  %v2233_v44 = vadd.f32 %v4989_v20, %v2189_v62  ;;  %v1834_v63 = vmul.f32 %v6296_v5, %v1807_v27  ;;  %v6297_v30 = vrot.slane %v4522_v32, %v3429_v45  ;;  %v1794_v43 = vadd.f32 %v1790_v11, %v1750_v31  ;;  %v6300_v62 = vld [vmem:[#allocation50_spill] sm:$0xff] }
 0x50d   : > { %v1703_v4 = vadd.f32 %v1699_v49, %v6298_v10  ;;  %v6299_v59 = vrot.slane %v4522_v32, %v3957_v51  ;;  %v1761_v27 = vsel %vm6301_vm3, %v6294_v48, %v6300_v62  ;;  %v6303_v10 = vrot.slane %v4530_v0, %v3429_v45  ;;  %v6304_v11 = vld [vmem:[#allocation90_spill] sm:$0xff]  ;;  %v6305_v32 = vld [vmem:[#allocation55_spill] sm:$0xff] }
 0x50e   : > { %v1743_v16 = vmul.f32 %v6297_v30, %v1718_v7  ;;  %v6302_v30 = vrot.slane %v4541_v6, %v3948_v52  ;;  %vm6306_vm4 = vcmp.lt.s32.totalorder %v3416_v14, 113  ;;  %vm6308_vm14 = vcmp.lt.s32.totalorder %v3416_v14, 115 }
 0x50f   : > { %v1744_v20 = vmul.f32 %v6299_v59, %v1717_v28  ;;  %v1787_v31 = vmul.f32 %v6303_v10, %v1762_v55  ;;  %v1895_v49 = vsel %vm6306_vm4, %v6305_v32, %v6304_v11  ;;  %v6307_v28 = vld [vmem:[#allocation31_spill] sm:$0xff]  ;;  %v6309_v59 = vld [vmem:[#allocation96_spill] sm:$0xff]  ;;  %v2277_v55 = vadd.f32 %v4994_v2, %v2233_v44  ;;  %vm6313_vm3 = vmmov %vm6308_vm14 }
 0x510   : > { %v5153_v37 = vpop.permute.xlu0 %2147  ;;  %v5155_v54 = vpop.permute.xlu1 %2061  ;;  %v1878_v60 = vmul.f32 %v6302_v30, %v1851_v22  ;;  %v1806_v48 = vsel %vm6308_vm14, %v6282_v19, %v6307_v28  ;;  %v1704_v62 = vadd.f32 %v1700_v21, %v6309_v59  ;;  %v1838_v30 = vadd.f32 %v1834_v63, %v1794_v43  ;;  %v6316_v2 = vld [vmem:[#allocation15_spill] sm:$0xff]  ;;  %v6317_v43 = vld [vmem:[#allocation57_spill] sm:$0xff] }
 0x511   : > { %v1747_v10 = vadd.f32 %v1743_v16, %v1703_v4  ;;  %v6311_v32 = vrot.slane %v4530_v0, %v3957_v51  ;;  %v1805_v19 = vsel %vm6313_vm3, %v6307_v28, %v6312_v41  ;;  %v6314_v21 = vrot.slane %v4543_v26, %v3948_v52  ;;  %v6319_v0 = vld [vmem:[#allocation33_spill] sm:$0xff]  ;;  %v6321_v28 = vld [vmem:[#allocation54_spill] sm:$0xff] }
 0x512   : > { %v1831_v22 = vmul.f32 %v6315_v1, %v1806_v48  ;;  %vm6318_vm4 = vcmp.lt.s32.totalorder %v3416_v14, 112  ;;  %vm6320_vm14 = vcmp.lt.s32.totalorder %v3416_v14, 114  ;;  %v1748_v16 = vadd.f32 %v1744_v20, %v1704_v62 }
 0x513   : > { %v1788_v47 = vmul.f32 %v6311_v32, %v1761_v27  ;;  %v1922_v59 = vmul.f32 %v6314_v21, %v1895_v49  ;;  %v1939_v4 = vsel %vm6318_vm4, %v6317_v43, %v6316_v2  ;;  %v1850_v63 = vsel %vm6320_vm14, %v6291_v25, %v6319_v0  ;;  %vm6322_vm3 = vmmov %vm6320_vm14  ;;  %v6324_v21 = vld [vmem:[#allocation59_spill] sm:$0xff] }
 0x514   : > { %v5208_v34 = vpop.permute.xlu0 %2191  ;;  %v5210_v23 = vpop.permute.xlu1 %2105  ;;  %v1882_v27 = vadd.f32 %v1878_v60, %v1838_v30  ;;  %v1791_v49 = vadd.f32 %v1787_v31, %v1747_v10  ;;  %v1849_v1 = vsel %vm6322_vm3, %v6319_v0, %v6321_v28  ;;  %v6323_v48 = vrot.slane %v4532_v3, %v3957_v51 }
 0x515   : > { %v1983_v25 = vsel %vm1979_vm5, %v6324_v21, %v5013_v9  ;;  %vm6325_vm4 = vcmp.lt.s32.totalorder %v3416_v14, 113  ;;  %v2321_v20 = vadd.f32 %v4999_v17, %v2277_v55  ;;  %v1792_v31 = vadd.f32 %v1788_v47, %v1748_v16 }
 0x516   : > { %v1832_v32 = vmul.f32 %v6323_v48, %v1805_v19  ;;  %v1894_v60 = vsel %vm6325_vm4, %v6304_v11, %v5015_v58  ;;  %v6326_v62 = vrot.slane %v4686_v13, %v3948_v52  ;;  %v6327_v3 = vrot.slane %v4541_v6, %v3429_v45  ;;  %v6329_v48 = vld [vmem:[#allocation56_spill] sm:$0xff]  ;;  %vm6330_vm14 = vmmov %vm6325_vm4 }
 0x517   : > { %v2566_v19 = vrot.slane %v6279_v8, %v3957_v51  ;;  %v1926_v43 = vadd.f32 %v1922_v59, %v1882_v27  ;;  %v1835_v0 = vadd.f32 %v1831_v22, %v1791_v49  ;;  %v6328_v28 = vrot.slane %v4541_v6, %v3957_v51  ;;  %v6333_v6 = vld [vmem:[#allocation61_spill] sm:$0xff] }
 0x518   : > { %v5250_v5 = vpop.permute.xlu0 %2235  ;;  %v5252_v7 = vpop.permute.xlu1 %2149  ;;  %v1966_v30 = vmul.f32 %v6326_v62, %v1939_v4  ;;  %v1875_v10 = vmul.f32 %v6327_v3, %v1850_v63  ;;  %v1893_v17 = vsel %vm6330_vm14, %v5015_v58, %v6329_v48  ;;  %v6331_v4 = vrot.slane %v4695_v29, %v3948_v52 }
 0x519   : > { %v1876_v11 = vmul.f32 %v6328_v28, %v1849_v1  ;;  %v6332_v22 = vrot.slane %v4543_v26, %v3429_v45  ;;  %v2027_v16 = vsel %vm2023_vm6, %v6333_v6, %v5053_v50  ;;  %vm6334_vm3 = vcmp.lt.s32.totalorder %v3416_v14, 112  ;;  %v6336_v28 = vld [vmem:[#allocation58_spill] sm:$0xff] }
 0x51a   : > { %v2010_v63 = vmul.f32 %v6331_v4, %v1983_v25  ;;  %v1938_v58 = vsel %vm6334_vm3, %v6316_v2, %v5055_v39  ;;  %v1836_v27 = vadd.f32 %v1832_v32, %v1792_v31  ;;  %v2606_v49 = vrot.slane %v6289_v33, %v3429_v45  ;;  %vm6337_vm4 = vmmov %vm6334_vm3 }
 0x51b   : > { %v1919_v59 = vmul.f32 %v6332_v22, %v1894_v60  ;;  %v2610_v1 = vrot.slane %v6289_v33, %v3957_v51  ;;  %v2365_v21 = vadd.f32 %v5001_v56, %v2321_v20  ;;  %v1970_v25 = vadd.f32 %v1966_v30, %v1926_v43  ;;  %v6340_v56 = vld [vmem:[#allocation63_spill] sm:$0xff] }
 0x51c   : > { %v5295_v44 = vpop.permute.xlu0 %2279  ;;  %v5297_v41 = vpop.permute.xlu1 %2193  ;;  %v1879_v60 = vadd.f32 %v1875_v10, %v1835_v0  ;;  %v6335_v62 = vrot.slane %v4543_v26, %v3957_v51  ;;  %v1937_v2 = vsel %vm6337_vm4, %v5055_v39, %v6336_v28  ;;  %v6338_v32 = vrot.slane %v4697_v35, %v3948_v52 }
 0x51d   : > { %v6339_v48 = vrot.slane %v4686_v13, %v3429_v45  ;;  %v2071_v20 = vsel %vm2067_vm7, %v6340_v56, %v5085_v24  ;;  %v1982_v26 = vsel %vm1979_vm5, %v5013_v9, %v5089_v38  ;;  %v1880_v10 = vadd.f32 %v1876_v11, %v1836_v27 }
 0x51e   : > { %v1920_v3 = vmul.f32 %v6335_v62, %v1893_v17  ;;  %v2054_v31 = vmul.f32 %v6338_v32, %v2027_v16  ;;  %v2014_v43 = vadd.f32 %v2010_v63, %v1970_v25  ;;  %v1923_v0 = vadd.f32 %v1919_v59, %v1879_v60  ;;  %v6341_v17 = vld [vmem:[#allocation60_spill] sm:$0xff]  ;;  %v6347_v32 = vld [vmem:[#allocation62_spill] sm:$0xff] }
 0x51f   : > { %v1963_v4 = vmul.f32 %v6339_v48, %v1938_v58  ;;  %v1981_v22 = vsel %vm1979_vm5, %v5089_v38, %v6341_v17  ;;  %v6342_v6 = vrot.slane %v4686_v13, %v3957_v51  ;;  %v6343_v58 = vld [vmem:[#allocation65_spill] sm:$0xff]  ;;  %v2026_v11 = vsel %vm2023_vm6, %v5053_v50, %v5119_v46 }
 0x520   : > { %v5330_v47 = vpop.permute.xlu0 %2323  ;;  %v5332_v55 = vpop.permute.xlu1 %2237  ;;  %v2115_v9 = vsel %vm2111_vm8, %v6343_v58, %v5117_v42  ;;  %v2409_v63 = vadd.f32 %v5003_v57, %v2365_v21  ;;  %v1924_v59 = vadd.f32 %v1920_v3, %v1880_v10  ;;  %v6344_v38 = vrot.slane %v4701_v18, %v3948_v52  ;;  %v6351_v10 = vld [vmem:[#allocation64_spill] sm:$0xff] }
 0x521   : > { %v1964_v16 = vmul.f32 %v6342_v6, %v1937_v2  ;;  %v6345_v13 = vrot.slane %v4695_v29, %v3429_v45  ;;  %v2650_v60 = vrot.slane %v6310_v12, %v3429_v45  ;;  %v2058_v62 = vadd.f32 %v2054_v31, %v2014_v43 }
 0x522   : > { %v2098_v27 = vmul.f32 %v6344_v38, %v2071_v20  ;;  %v1967_v28 = vadd.f32 %v1963_v4, %v1923_v0  ;;  %v6346_v2 = vrot.slane %v4695_v29, %v3957_v51  ;;  %v2025_v57 = vsel %vm2023_vm6, %v5119_v46, %v6347_v32  ;;  %v6350_v29 = vld [vmem:[#allocation67_spill] sm:$0xff] }
 0x523   : > { %v2007_v25 = vmul.f32 %v6345_v13, %v1982_v26  ;;  %v6348_v48 = vrot.slane %v4728_v53, %v3948_v52  ;;  %v6349_v31 = vrot.slane %v4697_v35, %v3429_v45  ;;  %v2159_v20 = vsel %vm2155_vm9, %v6350_v29, %v5153_v37  ;;  %v5455_v13 = vld [vmem:[#allocation5 + $0xc0] ss:$8 sm:$0xf] }
 0x524   : > { %v5374_v30 = vpop.permute.xlu0 %2367  ;;  %v5376_v39 = vpop.permute.xlu1 %2281  ;;  %v2008_v50 = vmul.f32 %v6346_v2, %v1981_v22  ;;  %v2070_v46 = vsel %vm2067_vm7, %v5085_v24, %v5155_v54  ;;  %v1968_v26 = vadd.f32 %v1964_v16, %v1924_v59  ;;  %v2069_v43 = vsel %vm2067_vm7, %v5155_v54, %v6351_v10 }
 0x525   : > { %v2142_v56 = vmul.f32 %v6348_v48, %v2115_v9  ;;  %v2051_v4 = vmul.f32 %v6349_v31, %v2026_v11  ;;  %v2654_v0 = vrot.slane %v6310_v12, %v3957_v51  ;;  %v2453_v17 = vadd.f32 %v5005_v15, %v2409_v63  ;;  %v6353_v11 = vld [vmem:[#allocation69_spill] sm:$0xff]  ;;  %v6359_v48 = vld [vmem:[#allocation71_spill] sm:$0xff] }
 0x526   : > { %v2102_v22 = vadd.f32 %v2098_v27, %v2058_v62  ;;  %v2011_v6 = vadd.f32 %v2007_v25, %v1967_v28  ;;  %v6352_v58 = vrot.slane %v4697_v35, %v3957_v51  ;;  %v2203_v24 = vsel %vm2199_vm10, %v6353_v11, %v5208_v34 }
 0x527   : > { %v2012_v16 = vadd.f32 %v2008_v50, %v1968_v26  ;;  %v6354_v54 = vrot.slane %v4745_v36, %v3948_v52  ;;  %v6355_v38 = vrot.slane %v4701_v18, %v3429_v45  ;;  %v2114_v35 = vsel %vm2111_vm8, %v5117_v42, %v5210_v23  ;;  %v6357_v50 = vld [vmem:[#allocation66_spill] sm:$0xff] }
 0x528   : > { %v5409_v21 = vpop.permute.xlu0 %2411  ;;  %v5411_v3 = vpop.permute.xlu1 %2325  ;;  %v2052_v9 = vmul.f32 %v6352_v58, %v2025_v57  ;;  %v2146_v25 = vadd.f32 %v2142_v56, %v2102_v22  ;;  %v2055_v62 = vadd.f32 %v2051_v4, %v2011_v6  ;;  %v6356_v28 = vrot.slane %v4701_v18, %v3957_v51  ;;  %v6363_v58 = vld [vmem:[#allocation19_spill] sm:$0xff] }
 0x529   : > { %v2186_v59 = vmul.f32 %v6354_v54, %v2159_v20  ;;  %v2095_v15 = vmul.f32 %v6355_v38, %v2070_v46  ;;  %v2113_v32 = vsel %vm2111_vm8, %v5210_v23, %v6357_v50  ;;  %v6358_v42 = vrot.slane %v4760_v40, %v3948_v52  ;;  %v6366_v54 = vld [vmem:[#allocation73_spill] sm:$0xff] }
 0x52a   : > { %v2096_v2 = vmul.f32 %v6356_v28, %v2069_v43  ;;  %v2247_v31 = vsel %vm2243_vm11, %v6359_v48, %v5250_v5  ;;  %v2158_v18 = vsel %vm2155_vm9, %v5153_v37, %v5252_v7  ;;  %v2497_v56 = vadd.f32 %v5017_v61, %v2453_v17  ;;  %v6362_v37 = vld [vmem:[#allocation68_spill] sm:$0xff] }
 0x52b   : > { %v2230_v57 = vmul.f32 %v6358_v42, %v2203_v24  ;;  %v2056_v4 = vadd.f32 %v2052_v9, %v2012_v16  ;;  %v6360_v23 = vrot.slane %v4728_v53, %v3429_v45  ;;  %v2694_v20 = vrot.slane %v5455_v13, %v3429_v45  ;;  %v6370_v42 = vld [vmem:[#allocation70_spill] sm:$0xff] }
 0x52c   : > { %v5451_v63 = vpop.permute.xlu0 %2455  ;;  %v5453_v27 = vpop.permute.xlu1 %2369  ;;  %v2698_v46 = vrot.slane %v5455_v13, %v3957_v51  ;;  %v2190_v26 = vadd.f32 %v2186_v59, %v2146_v25  ;;  %v2099_v10 = vadd.f32 %v2095_v15, %v2055_v62  ;;  %v6361_v43 = vrot.slane %v4728_v53, %v3957_v51  ;;  %v6367_v15 = vld [vmem:[#allocation35_spill] sm:$0xff]  ;;  %v6368_v25 = vld [vmem:[#allocation89_spill] sm:$0xff] }
 0x52d   : > { %v2139_v29 = vmul.f32 %v6360_v23, %v2114_v35  ;;  %v2157_v61 = vsel %vm2155_vm9, %v5252_v7, %v6362_v37  ;;  %v6364_v9 = vrot.slane %v6363_v58, %v3948_v52  ;;  %v6365_v24 = vrot.slane %v4745_v36, %v3429_v45  ;;  %v6375_v37 = vld [vmem:[#allocation72_spill] sm:$0xff] }
 0x52e   : > { %v2140_v22 = vmul.f32 %v6361_v43, %v2113_v32  ;;  %v2291_v53 = vsel %vm2287_vm12, %v6366_v54, %v5295_v44  ;;  %v2202_v7 = vsel %vm2199_vm10, %v5208_v34, %v5297_v41  ;;  %v2100_v59 = vadd.f32 %v2096_v2, %v2056_v4  ;;  %v6372_v2 = vld [vmem:[#allocation17_spill] sm:$0xff] }
 0x52f   : > { %v2274_v11 = vmul.f32 %v6364_v9, %v2247_v31  ;;  %v2183_v16 = vmul.f32 %v6365_v24, %v2158_v18  ;;  %v2234_v38 = vadd.f32 %v2230_v57, %v2190_v26  ;;  %v2541_v35 = vadd.f32 %v6367_v15, %v2497_v56  ;;  %v6371_v31 = vld [vmem:[#allocation75_spill] sm:$0xff]  ;;  %v6377_v54 = vld [vmem:[#allocation21_spill] sm:$0xff] }
 0x530   : > { %v5490_v17 = vpop.permute.xlu0 %2499  ;;  %v2414_v6 = vpop.permute.xlu1 %2413  ;;  %v2702_v62 = vrot.slane %v5455_v13, %v6368_v25  ;;  %v2143_v28 = vadd.f32 %v2139_v29, %v2099_v10  ;;  %v6369_v50 = vrot.slane %v4745_v36, %v3957_v51  ;;  %v2201_v48 = vsel %vm2199_vm10, %v5297_v41, %v6370_v42  ;;  %v6382_v15 = vld [vmem:[#allocation37_spill] sm:$0xff] }
 0x531   : > { %v2335_v34 = vsel %vm2331_vm13, %v6371_v31, %v5330_v47  ;;  %v6373_v57 = vrot.slane %v6372_v2, %v3948_v52  ;;  %v6374_v56 = vrot.slane %v4760_v40, %v3429_v45  ;;  %v2246_v36 = vsel %vm2243_vm11, %v5250_v5, %v5332_v55 }
 0x532   : > { %v2184_v32 = vmul.f32 %v6369_v50, %v2157_v61  ;;  %v2706_v29 = vrot.slane %v5455_v13, %v3948_v52  ;;  %v2144_v26 = vadd.f32 %v2140_v22, %v2100_v59  ;;  %v2278_v10 = vadd.f32 %v2274_v11, %v2234_v38  ;;  %v6381_v59 = vld [vmem:[#allocation74_spill] sm:$0xff] }
 0x533   : > { %v2318_v18 = vmul.f32 %v6373_v57, %v2291_v53  ;;  %v2227_v4 = vmul.f32 %v6374_v56, %v2202_v7  ;;  %v2187_v43 = vadd.f32 %v2183_v16, %v2143_v28  ;;  %v2245_v61 = vsel %vm2243_vm11, %v5332_v55, %v6375_v37  ;;  %v6379_v7 = vld [vmem:[#allocation77_spill] sm:$0xff]  ;;  %v6384_v57 = vld [vmem:[#allocation18_spill] sm:$0xff] }
 0x534   : > { %v5530_v23 = vpop.permute.xlu0 %2543  ;;  %v2458_v41 = vpop.permute.xlu1 %2457  ;;  %v6376_v9 = vrot.slane %v4760_v40, %v3957_v51  ;;  %v6378_v5 = vrot.slane %v6377_v54, %v3948_v52  ;;  %v2379_v22 = vsel %vm2375_vm1, %v6379_v7, %v5374_v30  ;;  %v2290_v11 = vsel %vm2287_vm12, %v5295_v44, %v5376_v39 }
 0x535   : > { %v2188_v16 = vadd.f32 %v2184_v32, %v2144_v26  ;;  %v6380_v55 = vrot.slane %v6363_v58, %v3429_v45  ;;  %v2289_v38 = vsel %vm2287_vm12, %v5376_v39, %v6381_v59  ;;  %v2585_v28 = vadd.f32 %v6382_v15, %v2541_v35 }
 0x536   : > { %v2228_v24 = vmul.f32 %v6376_v9, %v2201_v48  ;;  %v2362_v53 = vmul.f32 %v6378_v5, %v2335_v34  ;;  %v2322_v50 = vadd.f32 %v2318_v18, %v2278_v10  ;;  %v2231_v42 = vadd.f32 %v2227_v4, %v2187_v43  ;;  %v6387_v18 = vld [vmem:[#allocation79_spill] sm:$0xff]  ;;  %v6388_v4 = vld [vmem:[#allocation76_spill] sm:$0xff] }
 0x537   : > { %v2271_v40 = vmul.f32 %v6380_v55, %v2246_v36  ;;  %v6383_v48 = vrot.slane %v6363_v58, %v3957_v51  ;;  %v2334_v44 = vsel %vm2331_vm13, %v5330_v47, %v5411_v3  ;;  %v6385_v56 = vrot.slane %v6384_v57, %v3948_v52 }
 0x538   : > { %v2588_v32 = vpop.permute.xlu0 %2587  ;;  %v2502_v34 = vpop.permute.xlu1 %2501  ;;  %v6386_v39 = vrot.slane %v6372_v2, %v3429_v45  ;;  %v2423_v58 = vsel %vm2419_vm2, %v6387_v18, %v5409_v21  ;;  %v2333_v47 = vsel %vm2331_vm13, %v5411_v3, %v6388_v4  ;;  %v2232_v26 = vadd.f32 %v2228_v24, %v2188_v16  ;;  %v6392_v24 = vld [vmem:[#allocation78_spill] sm:$0xff] }
 0x539   : > { %v2272_v31 = vmul.f32 %v6383_v48, %v2245_v61  ;;  %v2406_v36 = vmul.f32 %v6385_v56, %v2379_v22  ;;  %v2366_v10 = vadd.f32 %v2362_v53, %v2322_v50  ;;  %v6389_v43 = vrot.slane %v6372_v2, %v3957_v51  ;;  %v6391_v22 = vld [vmem:[#allocation81_spill] sm:$0xff] }
 0x53a   : > { %v2315_v35 = vmul.f32 %v6386_v39, %v2290_v11  ;;  %v2378_v61 = vsel %vm2375_vm1, %v5374_v30, %v5453_v27  ;;  %v2275_v9 = vadd.f32 %v2271_v40, %v2231_v42  ;;  %v6390_v5 = vrot.slane %v6377_v54, %v3429_v45  ;;  %v6393_v11 = vld [vmem:[#allocation25_spill] sm:$0xff]  ;;  %v6398_v39 = vld [vmem:[#allocation22_spill] sm:$0xff] }
 0x53b   : > { %v2316_v37 = vmul.f32 %v6389_v43, %v2289_v38  ;;  %v2467_v3 = vsel %vm2463_vm0, %v6391_v22, %v5451_v63  ;;  %v2377_v2 = vsel %vm2375_vm1, %v5453_v27, %v6392_v24  ;;  %v2276_v53 = vadd.f32 %v2272_v31, %v2232_v26  ;;  %v6397_v31 = vld [vmem:[#allocation80_spill] sm:$0xff] }
 0x53c   : > { %v2359_v7 = vmul.f32 %v6390_v5, %v2334_v44  ;;  %v6394_v16 = vrot.slane %v6393_v11, %v3948_v52  ;;  %v6395_v55 = vrot.slane %v6377_v54, %v3957_v51  ;;  %v2422_v59 = vsel %vm2419_vm2, %v5409_v21, %v2414_v6  ;;  %v2632_v38 = vpop.permute.xlu0 %2631  ;;  %v2546_v15 = vpop.permute.xlu1 %2545 }
 0x53d   : > { %v2410_v50 = vadd.f32 %v2406_v36, %v2366_v10  ;;  %v2319_v42 = vadd.f32 %v2315_v35, %v2275_v9  ;;  %v6396_v27 = vrot.slane %v6384_v57, %v3429_v45  ;;  %v2421_v44 = vsel %vm2419_vm2, %v2414_v6, %v6397_v31  ;;  %v6403_v10 = vld [vmem:[#allocation39_spill] sm:$0xff]  ;;  %v6413_v31 = vld [vmem:[#allocation86_spill] sm:$0xff] }
 0x53e   : > { %v2450_v30 = vmul.f32 %v6394_v16, %v2423_v58  ;;  %v2360_v40 = vmul.f32 %v6395_v55, %v2333_v47  ;;  %v2320_v56 = vadd.f32 %v2316_v37, %v2276_v53  ;;  %v6399_v54 = vrot.slane %v6398_v39, %v3948_v52  ;;  %v6402_v47 = vld [vmem:[#allocation82_spill] sm:$0xff] }
 0x53f   : > { %v2403_v48 = vmul.f32 %v6396_v27, %v2378_v61  ;;  %v6400_v21 = vrot.slane %v6384_v57, %v3957_v51  ;;  %v2466_v36 = vsel %vm2463_vm0, %v5451_v63, %v2458_v41  ;;  %vm2683_vm1 = vcmp.lt.s32.totalorder %v3416_v14, 77  ;;  %v6404_v61 = vld [vmem:[#allocation83_spill] sm:$0xff] }
 0x540   : > { %v2494_v18 = vmul.f32 %v6399_v54, %v2467_v3  ;;  %v2363_v35 = vadd.f32 %v2359_v7, %v2319_v42  ;;  %v6401_v4 = vrot.slane %v6393_v11, %v3429_v45  ;;  %v2465_v26 = vsel %vm2463_vm0, %v2458_v41, %v6402_v47  ;;  %v2590_v7 = vpop.permute.xlu1 %2589  ;;  %v6407_v41 = vld [vmem:[#allocation84_spill] sm:$0xff] }
 0x541   : > { %v2404_v58 = vmul.f32 %v6400_v21, %v2377_v2  ;;  %v2629_v43 = vadd.f32 %v6403_v10, %v2585_v28  ;;  %v2454_v37 = vadd.f32 %v2450_v30, %v2410_v50  ;;  %v2364_v57 = vadd.f32 %v2360_v40, %v2320_v56  ;;  %v6408_v30 = vld [vmem:[#allocation85_spill] sm:$0xff]  ;;  %v6411_v50 = vld [vmem:[#allocation27_spill] sm:$0xff] }
 0x542   : > { %v2447_v6 = vmul.f32 %v6401_v4, %v2422_v59  ;;  %v2511_v63 = vsel %vm2507_vm15, %v6404_v61, %v5490_v17  ;;  %v6405_v9 = vrot.slane %v6393_v11, %v3957_v51  ;;  %v2407_v22 = vadd.f32 %v2403_v48, %v2363_v35  ;;  %v2676_v59 = vpop.permute.xlu0 %2675  ;;  %v6416_v56 = vld [vmem:[#allocation87_spill] sm:$0xff] }
 0x543   : > { %v6406_v3 = vrot.slane %v6398_v39, %v3429_v45  ;;  %v2509_v28 = vsel %vm2507_vm15, %v2502_v34, %v6407_v41  ;;  %v2510_v2 = vsel %vm2507_vm15, %v5490_v17, %v2502_v34  ;;  %v2498_v53 = vadd.f32 %v2494_v18, %v2454_v37  ;;  %v6424_v10 = vld [vmem:[#allocation91_spill] sm:$0xff] }
 0x544   : > { %v2448_v5 = vmul.f32 %v6405_v9, %v2421_v44  ;;  %v2408_v16 = vadd.f32 %v2404_v58, %v2364_v57  ;;  %vm6409_vm0 = vcmp.lt.s32.totalorder %v3416_v14, 80  ;;  %v6410_v55 = vrot.slane %v6398_v39, %v3957_v51 }
 0x545   : > { %v2491_v24 = vmul.f32 %v6406_v3, %v2466_v36  ;;  %v2555_v11 = vsel %vm6409_vm0, %v6408_v30, %v5530_v23  ;;  %v6412_v42 = vrot.slane %v6411_v50, %v3948_v52  ;;  %v2451_v48 = vadd.f32 %v2447_v6, %v2407_v22  ;;  %vm6414_vm15 = vmmov %vm6409_vm0  ;;  %v2634_v36 = vpop.permute.xlu1 %2633  ;;  %v6428_v3 = vld [vmem:[#allocation92_spill] sm:$0xff] }
 0x546   : > { %v2492_v40 = vmul.f32 %v6410_v55, %v2465_v26  ;;  %v2553_v17 = vsel %vm6414_vm15, %v2546_v15, %v6413_v31  ;;  %vm6415_vm2 = vmmov %vm6409_vm0  ;;  %v2452_v44 = vadd.f32 %v2448_v5, %v2408_v16  ;;  %vm6417_vm5 = vcmp.lt.s32.totalorder %v3416_v14, 79 }
 0x547   : > { %v2538_v27 = vmul.f32 %v6412_v42, %v2511_v63  ;;  %v2554_v34 = vsel %vm6415_vm2, %v5530_v23, %v2546_v15  ;;  %v2599_v39 = vsel %vm6417_vm5, %v6416_v56, %v2588_v32  ;;  %v6418_v54 = vrot.slane %v6411_v50, %v3429_v45  ;;  %v6421_v23 = vld [vmem:[#allocation88_spill] sm:$0xff]  ;;  %vm6422_vm6 = vmmov %vm6417_vm5 }
 0x548   : > { %v6419_v21 = vrot.slane %v6411_v50, %v3957_v51  ;;  %v6420_v35 = vrot.slane %v6279_v8, %v3948_v52  ;;  %v2495_v6 = vadd.f32 %v2491_v24, %v2451_v48  ;;  %v2597_v15 = vsel %vm6422_vm6, %v2590_v7, %v6421_v23  ;;  %vm6423_vm7 = vmmov %vm6417_vm5 }
 0x549   : > { %v2535_v18 = vmul.f32 %v6418_v54, %v2510_v2  ;;  %v2598_v47 = vsel %vm6423_vm7, %v2588_v32, %v2590_v7  ;;  %v2496_v26 = vadd.f32 %v2492_v40, %v2452_v44  ;;  %vm6425_vm8 = vcmp.lt.s32.totalorder %v3416_v14, 78  ;;  %v2678_v2 = vpop.permute.xlu1 %2677 }
 0x54a   : > { %v2536_v58 = vmul.f32 %v6419_v21, %v2509_v28  ;;  %v2582_v4 = vmul.f32 %v6420_v35, %v2555_v11  ;;  %v2643_v37 = vsel %vm6425_vm8, %v6424_v10, %v2632_v38  ;;  %v6426_v57 = vrot.slane %v6279_v8, %v3429_v45  ;;  %vm6429_vm9 = vmmov %vm6425_vm8  ;;  %v6435_v10 = vld [vmem:[#allocation13_spill] sm:$0xff] }
 0x54b   : > { %v2580_v63 = vmul.f32 %v2566_v19, %v2553_v17  ;;  %v2542_v9 = vadd.f32 %v2538_v27, %v2498_v53  ;;  %v6427_v5 = vrot.slane %v6289_v33, %v3948_v52  ;;  %v2641_v32 = vsel %vm6429_vm9, %v2634_v36, %v6428_v3  ;;  %vm6430_vm10 = vmmov %vm6425_vm8  ;;  %v2680_v19 = vpop.permute.xlu0 %2679 }
 0x54c   : > { %v2579_v61 = vmul.f32 %v6426_v57, %v2554_v34  ;;  %v2642_v7 = vsel %vm6430_vm10, %v2632_v38, %v2634_v36  ;;  %v2539_v24 = vadd.f32 %v2535_v18, %v2495_v6  ;;  %v2540_v41 = vadd.f32 %v2536_v58, %v2496_v26  ;;  %v6436_v57 = vld [vmem:[#allocation11_spill] sm:$0xff] }
 0x54d   : > { %v2626_v22 = vmul.f32 %v6427_v5, %v2599_v39  ;;  %v2623_v28 = vmul.f32 %v2606_v49, %v2598_v47  ;;  %v2624_v8 = vmul.f32 %v2610_v1, %v2597_v15  ;;  %v2586_v53 = vadd.f32 %v2582_v4, %v2542_v9  ;;  %v6432_v1 = vld [vmem:[#allocation16_spill] sm:$0xff]  ;;  %v2682_v34 = vpop.permute.xlu1 %2681 }
 0x54e   : > { %v6431_v16 = vrot.slane %v6310_v12, %v3948_v52  ;;  %v2685_v38 = vsel %vm2683_vm1, %v2678_v2, %v2680_v19  ;;  %v2686_v11 = vsel %vm2683_vm1, %v2676_v59, %v2678_v2  ;;  %v2583_v55 = vadd.f32 %v2579_v61, %v2539_v24  ;;  %v6438_v5 = vld [vmem:[#allocation12_spill] sm:$0xff] }
 0x54f   : > { %v2584_v40 = vadd.f32 %v2580_v63, %v2540_v41  ;;  %v2667_v33 = vmul.f32 %v2650_v60, %v2642_v7  ;;  %v2668_v49 = vmul.f32 %v2654_v0, %v2641_v32  ;;  %v6433_v50 = vrot.slane %v6310_v12, %v6368_v25  ;;  %v6437_v63 = vld [vmem:[#allocation14_spill] sm:$0xff] }
 0x550   : > { %v2670_v30 = vmul.f32 %v6431_v16, %v2643_v37  ;;  %v2630_v27 = vadd.f32 %v2626_v22, %v2586_v53  ;;  %v2627_v48 = vadd.f32 %v2623_v28, %v2583_v55  ;;  %v2711_v17 = vmul.f32 %v2694_v20, %v2686_v11 }
 0x551   : > { %v2669_v42 = vmul.f32 %v6433_v50, %v6432_v1  ;;  %v2628_v31 = vadd.f32 %v2624_v8, %v2584_v40  ;;  %v2712_v60 = vmul.f32 %v2698_v46, %v2685_v38  ;;  %v2684_v0 = vsel %vm2683_vm1, %v2680_v19, %v2682_v34 }
 0x552   : > { %v2674_v44 = vadd.f32 %v2670_v30, %v2630_v27  ;;  %v2687_v12 = vsel %vm2683_vm1, %v2682_v34, %v2676_v59  ;;  %v2671_v39 = vadd.f32 %v2667_v33, %v2627_v48  ;;  %v2713_v18 = vmul.f32 %v2702_v62, %v2684_v0 }
 0x553   : > { %v2673_v56 = vadd.f32 %v2669_v42, %v2629_v43  ;;  %v2672_v54 = vadd.f32 %v2668_v49, %v2628_v31  ;;  %v2714_v51 = vmul.f32 %v2706_v29, %v2687_v12 }
 0x554   : > { %v2715_v20 = vadd.f32 %v2711_v17, %v2671_v39 }
 0x555   : > { %v2716_v46 = vadd.f32 %v2712_v60, %v2672_v54  ;;  %v2717_v21 = vadd.f32 %v2713_v18, %v2673_v56  ;;  %v2718_v43 = vadd.f32 %v2714_v51, %v2674_v44 }
 0x557   : > { %v2719_v58 = vadd.f32 %v2717_v21, %v2715_v20  ;;  %v2720_v36 = vadd.f32 %v2718_v43, %v2716_v46 }
 0x559   : > { %v2864_v35 = vclamps-f32 %v2719_v58, 30.0  ;;  %v2865_v14 = vclamps-f32 %v2720_v36, 30.0 }
 0x55b   : > { %v2725_v59 = vsub.f32 0.0, %v2864_v35  ;;  %v2726_v4 = vsub.f32 0.0, %v2865_v14 }
 0x55d   : > { %v2727_v6 = vmul.f32 1.442695, %v2725_v59  ;;  %v2729_v23 = vmul.f32 1.442695, %v2726_v4 }
 0x55f   : > { %3014 = vpow2.f32 %v2727_v6 }
 0x560   : > { %3016 = vpow2.f32 %v2729_v23 }
 0x569   : > { %v3015_v25 = vpop.eup %3014 }
 0x56a   : > { %v3017_v62 = vpop.eup %3016  ;;  %v2731_v52 = vadd.f32 1.0, %v3015_v25 }
 0x56b   : > { %v2732_v13 = vadd.f32 1.0, %v3017_v62 }
 0x56c   : > { %3018 = vrcp.f32 %v2731_v52 }
 0x56d   : > { %3020 = vrcp.f32 %v2732_v13 }
 0x576   : > { %v3019_v29 = vpop.eup %3018 }
 0x577   : > { %v3021_v15 = vpop.eup %3020  ;;  %v2738_v47 = vrot.slane %v3019_v29, %v3429_v45 }
 0x578   : > { %v2742_v26 = vrot.slane %v3021_v15, %v3429_v45 }
 0x579   : > { %v2743_v37 = vmul.f32 %v2738_v47, %v6435_v10  ;;  %v2745_v61 = vmul.f32 %v2738_v47, %v6436_v57 }
 0x57a   : > { %v2744_v9 = vmul.f32 %v2742_v26, %v6437_v63  ;;  %v2746_v22 = vmul.f32 %v2742_v26, %v6438_v5 }
 0x57b   : > { %2747 = vst [vmem:[%s257_s7] sm:$0xff] %v2743_v37  ;;  %2749 = vst [vmem:[%s257_s7 + $0x10] sm:$0xff] %v2745_v61 }
 0x57c   : > { %2748 = vst [vmem:[%s257_s7 + $0x8] sm:$0xff] %v2744_v9  ;;  %2750 = vst [vmem:[%s257_s7 + $0x18] sm:$0xff] %v2746_v22 }
 0x57d   : > { %3093 = shalt.err (!%p3090_p7)
}
 0x57e   : > { %s3094_s14 = scalar_lea.hbm %s5746_s17, 512  ;;  %s3098_s15 = scalar_lea.hbm %s5800_s5, 1024 }
 0x57f   : > { %p3095_p9 = scmp.ne.s32.totalorder %s5746_s17, %s3094_s14  ;;  %p3099_p5 = scmp.lt.u32.totalorder %s5746_s17, %s5800_s5 }
 0x580   : > { %p3100_p11 = scmp.lt.u32.totalorder %s3098_s15, %s3094_s14  ;;  %p3102_p4 = scmp.lt.u32.totalorder %s3094_s14, %s5746_s17 }
 0x581   : > { %p3096_p2 = pnand %p3095_p9, %p3332_p12 }
 0x582   : > { %p3101_p1 = por %p3100_p11, %p3099_p5 }
 0x583   : > { %p3097_p0 = pneg %p3096_p2 }
 0x584   : > { %p3103_p6 = por %p3102_p4, %p3101_p1 }
 0x586   : > { %p3104_p8 = pnand %p3103_p6, %p3097_p0 }
 0x588   : > { %3107 = shalt.err (!%p3104_p8)
}
 0x589   : > { %s3210_s28 = smov 256  }
 0x58a   : > { %2903 = dma.vmem_to_hbm [thread:$0]  (%p3332_p12), %s5750_s13, 512, %s5746_s17, %s2752_s22, %s3210_s28, %s3210_s28, %s6076_s24  }
 0x58b PF: > { %s2780_s16 = sand.u32 1, %s3138_s18   ;;  %p6439_p10 = scmp.ne.s32.totalorder %s5996_s25, 0 }
 0x58c   : > { %p6440_p13 = scmp.ge.s32.totalorder %s3150_s21, 2  ;;  %s2781_s11 = scalar_lea.sflag [#allocation4], %s2780_s16 }
 0x58e   : > { %p2914_p3 = pnand %p6440_p13, %p6439_p10 }
 0x590   : > { %3133 = dma.done.wait (!%p2914_p3), %s2781_s11, 512  }
 0x591   : > { %3135 = vsyncadd (!%p2914_p3), %s2781_s11, 4294966784  ;;  %p19_p7 = scmp.ge.s32.totalorder %s3297_s30, 4   ;;  %s6441_s18 = smov %s3142_s19 }
 0x592   : > { %s6442_s19 = smov %s3146_s20  ;;  %s6443_s20 = smov %s3328_s8 }
 0x593   : > { %s6444_s21 = smov %s3297_s30  ;;  %21 = sbr.rel (!%p19_p7) target bundleno = 6 (0x6), region = 137 }
 0x59a   :  { %2786 = vsyncpa [#allocation3], 1 }
 0x59b   :  { %2788 = vsyncpa [#allocation3 + $0x1], 1 }
 0x59c   :  { %2789 = vsyncpa [#allocation6], 1 }
 0x59d   :  { %2790 = vsyncpa [#allocation4], 1 }
 0x59e   :  { %2792 = vsyncpa [#allocation4 + $0x1], 1 }

</bundles_post_ra>
